<compile_context>
chip_gen: v6e
topology: v6e:2x2x1
jax: 0.10.0
libtpu: 0.0.40
codegen_flags: <defaults>
</compile_context>

<pallas_src>
import functools

import jax
import jax.numpy as jnp
from jax.experimental import pallas as pl
from jax.experimental.pallas import tpu as pltpu

_INV_SQRT2 = 0.7071067811865476  # python float -> trace-time constant (no captured array)


# ----------------------------- Pallas kernel ------------------------------- #

def moe_expert_kernel(x_ref, w1_ref, b1_ref, w2_ref, b2_ref, cw_ref, o_ref):
    """One token tile [TM, D]: run all E expert FFNs and combine their outputs.

    grid = (n_token_tiles,). Expert weights use constant index_maps so they are
    DMA'd once and stay VMEM-resident; the expert loop is unrolled in-kernel so
    expert e+1's MXU pushes overlap expert e's GELU VALU work; the output tile
    is written exactly once.
    """
    x = x_ref[...]                       # [TM, D] bf16
    cw = cw_ref[...]                     # [TM, E] f32 combine weights
    num_experts = w1_ref.shape[0]

    acc = jnp.zeros(o_ref.shape, jnp.float32)
    for e in range(num_experts):         # static unroll (E is small)
        h = jnp.dot(x, w1_ref[e], preferred_element_type=jnp.float32) + b1_ref[e]
        # exact (erf) GELU in f32, matching nn.GELU() default
        h = 0.5 * h * (1.0 + jax.lax.erf(h * _INV_SQRT2))
        y = jnp.dot(h.astype(jnp.bfloat16), w2_ref[e],
                    preferred_element_type=jnp.float32) + b2_ref[e]   # [TM, O] f32
        acc = acc + cw[:, e:e + 1] * y   # static lane slice of this expert's column
    o_ref[...] = acc


# ------------------------------- wrapper ----------------------------------- #

def moe_forward(x, params, *, k=2, capacity_factor=1.5, tm=128):
    B, S, D = x.shape
    E, _, H = params["w1"].shape
    O = params["w2"].shape[2]
    T = B * S

    xf = x.reshape(T, D).astype(jnp.float32)

    # --- router: softmax(x @ wr) in plain XLA (too small for its own kernel) ---
    logits = xf @ params["wr"]
    probs = jax.nn.softmax(logits, axis=-1)

    # --- top-k routing + capacity-limited FCFS dispatch (vectorized cumsum) ---
    topk_p, topk_i = jax.lax.top_k(probs, k)                  # [T, k]
    topk_p = topk_p / jnp.sum(topk_p, axis=-1, keepdims=True)
    capacity = int((T / E) * capacity_factor)

    flat_idx = topk_i.reshape(-1)            # (token, slot) order == torch b,s,i loops
    flat_p = topk_p.reshape(-1)
    onehot = jax.nn.one_hot(flat_idx, E, dtype=jnp.int32)     # [T*k, E]
    # number of earlier assignments to the same expert (first-come-first-served)
    pos_in_expert = jnp.sum((jnp.cumsum(onehot, axis=0) - onehot) * onehot, axis=-1)
    keep = pos_in_expert < capacity
    cw_flat = jnp.where(keep, flat_p, 0.0)
    cw = (cw_flat[:, None] * onehot.astype(jnp.float32)).reshape(T, k, E).sum(axis=1)  # [T, E]
    expert_counts = jnp.minimum(jnp.sum(onehot, axis=0), capacity).astype(jnp.int32)

    # --- pad token axis to a multiple of the tile (padded rows have cw == 0) ---
    TM = tm
    n_tiles = pl.cdiv(T, TM)
    T_pad = n_tiles * TM

    xb = xf.astype(jnp.bfloat16)
    if T_pad != T:
        xb = jnp.pad(xb, ((0, T_pad - T), (0, 0)))
        cw = jnp.pad(cw, ((0, T_pad - T), (0, 0)))

    w1b = params["w1"].astype(jnp.bfloat16)
    w2b = params["w2"].astype(jnp.bfloat16)

    out = pl.pallas_call(
        moe_expert_kernel,
        out_shape=jax.ShapeDtypeStruct((T_pad, O), jnp.float32),
        grid=(n_tiles,),
        in_specs=[
            pl.BlockSpec((TM, D), lambda i: (i, 0)),          # token tile
            pl.BlockSpec((E, D, H), lambda i: (0, 0, 0)),     # VMEM-resident weights
            pl.BlockSpec((E, 1, H), lambda i: (0, 0, 0)),
            pl.BlockSpec((E, H, O), lambda i: (0, 0, 0)),
            pl.BlockSpec((E, 1, O), lambda i: (0, 0, 0)),
            pl.BlockSpec((TM, E), lambda i: (i, 0)),          # combine weights tile
        ],
        out_specs=pl.BlockSpec((TM, O), lambda i: (i, 0)),
        compiler_params=pltpu.CompilerParams(
            dimension_semantics=("parallel",),                # shards across TCs on v7x
        ),
    )(xb, w1b, params["b1"], w2b, params["b2"], cw)

    out = out[:T]
    metrics = {"expert_counts": expert_counts, "aux_loss": None}
    return out.reshape(B, S, O), metrics


# -------------------------- pure-JAX reference ------------------------------ #

def moe_reference(x, params, *, k=2, capacity_factor=1.5):
    B, S, D = x.shape
    E, _, H = params["w1"].shape
    O = params["w2"].shape[2]
    T = B * S
    xf = x.reshape(T, D).astype(jnp.float32)

    logits = xf @ params["wr"]
    probs = jax.nn.softmax(logits, axis=-1)
    topk_p, topk_i = jax.lax.top_k(probs, k)
    topk_p = topk_p / jnp.sum(topk_p, axis=-1, keepdims=True)
    capacity = int((T / E) * capacity_factor)

    # serial FCFS capacity dispatch (mirrors the PyTorch b/s/i loops exactly)
    def step(counts, args):
        ei, p = args
        keepit = counts[ei] < capacity
        counts = counts.at[ei].add(keepit.astype(jnp.int32))
        return counts, jnp.where(keepit, p, 0.0) * jax.nn.one_hot(ei, E, dtype=jnp.float32)

    _, cw_steps = jax.lax.scan(step, jnp.zeros((E,), jnp.int32),
                               (topk_i.reshape(-1), topk_p.reshape(-1)))
    cw = cw_steps.reshape(T, k, E).sum(axis=1)                # [T, E]

    xb = xf.astype(jnp.bfloat16)
    out = jnp.zeros((T, O), jnp.float32)
    for e in range(E):
        h = jnp.dot(xb, params["w1"][e].astype(jnp.bfloat16),
                    preferred_element_type=jnp.float32) + params["b1"][e]
        h = 0.5 * h * (1.0 + jax.lax.erf(h * _INV_SQRT2))
        y = jnp.dot(h.astype(jnp.bfloat16), params["w2"][e].astype(jnp.bfloat16),
                    preferred_element_type=jnp.float32) + params["b2"][e]
        out = out + cw[:, e:e + 1] * y
    return out.reshape(B, S, O)


# --------------------------------- main ------------------------------------- #

if __name__ == "__main__":
    # lane-dense toy config: T = 256 tokens (2 parallel tiles), D = H = O = 128, E = 8
    B, S = 2, 128
    D_IN, HIDDEN, D_OUT = 128, 128, 128
    NUM_EXPERTS, K = 8, 2

    key = jax.random.PRNGKey(0)
    kx, kr, k1, kb1, k2, kb2 = jax.random.split(key, 6)

    x = jax.random.normal(kx, (B, S, D_IN), dtype=jnp.float32)

    params = {
        # router: nn.Linear(D_IN, E, bias=False), init normal(std=0.01); stored [D, E]
        "wr": 0.01 * jax.random.normal(kr, (D_IN, NUM_EXPERTS), dtype=jnp.float32),
        # expert FFNs, stored transposed for row-major token matmuls
        "w1": (1.0 / jnp.sqrt(D_IN)) * jax.random.normal(
            k1, (NUM_EXPERTS, D_IN, HIDDEN), dtype=jnp.float32),
        "b1": 0.01 * jax.random.normal(kb1, (NUM_EXPERTS, 1, HIDDEN), dtype=jnp.float32),
        "w2": (1.0 / jnp.sqrt(HIDDEN)) * jax.random.normal(
            k2, (NUM_EXPERTS, HIDDEN, D_OUT), dtype=jnp.float32),
        "b2": 0.01 * jax.random.normal(kb2, (NUM_EXPERTS, 1, D_OUT), dtype=jnp.float32),
    }

    out, metrics = jax.jit(
        functools.partial(moe_forward, k=K, capacity_factor=1.5, tm=128))(x, params)
    out = jax.block_until_ready(out)

    ref = moe_reference(x, params, k=K, capacity_factor=1.5)
    assert out.shape == (B, S, D_OUT)
    assert jnp.allclose(out, ref, atol=2e-3, rtol=2e-3), "mismatch vs JAX reference"

    print("KERNEL_OK")
</pallas_src>

<mosaic_0001>
module attributes {stable_mosaic.version = 11 : i64} {
  func.func @moe_expert_kernel(%arg0: i32, %arg1: memref<128x128xbf16, #tpu.memory_space<vmem>>, %arg2: memref<8x128x128xbf16, #tpu.memory_space<vmem>>, %arg3: memref<8x1x128xf32, #tpu.memory_space<vmem>>, %arg4: memref<8x128x128xbf16, #tpu.memory_space<vmem>>, %arg5: memref<8x1x128xf32, #tpu.memory_space<vmem>>, %arg6: memref<128x8xf32, #tpu.memory_space<vmem>>, %arg7: memref<128x128xf32, #tpu.memory_space<vmem>>) attributes {dimension_semantics = [#tpu.dimension_semantics<parallel>], iteration_bounds = array<i64: 2>, scalar_prefetch = 0 : i64, scratch_operands = 0 : i64, tpu.core_type = #tpu.core_type<tc>, window_params = [{transform_indices = @transform_0, window_bounds = array<i64: 128, 128>}, {pipeline_mode = #tpu.pipeline_mode<synchronous>, transform_indices = @transform_1, window_bounds = array<i64: 8, 128, 128>}, {pipeline_mode = #tpu.pipeline_mode<synchronous>, transform_indices = @transform_2, window_bounds = array<i64: 8, 1, 128>}, {pipeline_mode = #tpu.pipeline_mode<synchronous>, transform_indices = @transform_3, window_bounds = array<i64: 8, 128, 128>}, {pipeline_mode = #tpu.pipeline_mode<synchronous>, transform_indices = @transform_4, window_bounds = array<i64: 8, 1, 128>}, {transform_indices = @transform_5, window_bounds = array<i64: 128, 8>}, {transform_indices = @transform_6, window_bounds = array<i64: 128, 128>}]} {
    %c0 = arith.constant 0 : index
    %c0_0 = arith.constant 0 : index
    %0 = vector.load %arg1[%c0, %c0_0] : memref<128x128xbf16, #tpu.memory_space<vmem>>, vector<128x128xbf16>
    %c0_1 = arith.constant 0 : index
    %c0_2 = arith.constant 0 : index
    %1 = vector.load %arg6[%c0_1, %c0_2] : memref<128x8xf32, #tpu.memory_space<vmem>>, vector<128x8xf32>
    %cst = arith.constant 0.000000e+00 : f32
    %2 = vector.broadcast %cst : f32 to vector<128x128xf32>
    %c0_3 = arith.constant 0 : index
    %c0_4 = arith.constant 0 : index
    %c0_5 = arith.constant 0 : index
    %3 = vector.load %arg2[%c0_3, %c0_4, %c0_5] : memref<8x128x128xbf16, #tpu.memory_space<vmem>>, vector<1x128x128xbf16>
    %4 = vector.shape_cast %3 : vector<1x128x128xbf16> to vector<128x128xbf16>
    %cst_6 = arith.constant dense<0.000000e+00> : vector<128x128xf32>
    %5 = tpu.matmul %0, %4, %cst_6 {dimension_numbers = #tpu.dot_dimension_numbers<[1], [0], [0], [1], [0, 0, 1, 1], [], []>} : vector<128x128xbf16>, vector<128x128xbf16>, vector<128x128xf32> -> vector<128x128xf32>
    %c0_7 = arith.constant 0 : index
    %c0_8 = arith.constant 0 : index
    %c0_9 = arith.constant 0 : index
    %6 = vector.load %arg3[%c0_7, %c0_8, %c0_9] : memref<8x1x128xf32, #tpu.memory_space<vmem>>, vector<1x1x128xf32>
    %7 = vector.shape_cast %6 : vector<1x1x128xf32> to vector<1x128xf32>
    %8 = vector.broadcast %7 : vector<1x128xf32> to vector<128x128xf32>
    %9 = arith.addf %5, %8 : vector<128x128xf32>
    %cst_10 = arith.constant 5.000000e-01 : f32
    %10 = vector.broadcast %cst_10 : f32 to vector<128x128xf32>
    %11 = arith.mulf %10, %9 : vector<128x128xf32>
    %cst_11 = arith.constant 0.707106769 : f32
    %12 = vector.broadcast %cst_11 : f32 to vector<128x128xf32>
    %13 = arith.mulf %9, %12 : vector<128x128xf32>
    %14 = math.erf %13 : vector<128x128xf32>
    %cst_12 = arith.constant 1.000000e+00 : f32
    %15 = vector.broadcast %cst_12 : f32 to vector<128x128xf32>
    %16 = arith.addf %15, %14 : vector<128x128xf32>
    %17 = arith.mulf %11, %16 : vector<128x128xf32>
    %18 = arith.truncf %17 : vector<128x128xf32> to vector<128x128xbf16>
    %c0_13 = arith.constant 0 : index
    %c0_14 = arith.constant 0 : index
    %c0_15 = arith.constant 0 : index
    %19 = vector.load %arg4[%c0_13, %c0_14, %c0_15] : memref<8x128x128xbf16, #tpu.memory_space<vmem>>, vector<1x128x128xbf16>
    %20 = vector.shape_cast %19 : vector<1x128x128xbf16> to vector<128x128xbf16>
    %cst_16 = arith.constant dense<0.000000e+00> : vector<128x128xf32>
    %21 = tpu.matmul %18, %20, %cst_16 {dimension_numbers = #tpu.dot_dimension_numbers<[1], [0], [0], [1], [0, 0, 1, 1], [], []>} : vector<128x128xbf16>, vector<128x128xbf16>, vector<128x128xf32> -> vector<128x128xf32>
    %c0_17 = arith.constant 0 : index
    %c0_18 = arith.constant 0 : index
    %c0_19 = arith.constant 0 : index
    %22 = vector.load %arg5[%c0_17, %c0_18, %c0_19] : memref<8x1x128xf32, #tpu.memory_space<vmem>>, vector<1x1x128xf32>
    %23 = vector.shape_cast %22 : vector<1x1x128xf32> to vector<1x128xf32>
    %24 = vector.broadcast %23 : vector<1x128xf32> to vector<128x128xf32>
    %25 = arith.addf %21, %24 : vector<128x128xf32>
    %26 = vector.extract_strided_slice %1 {offsets = [0, 0], sizes = [128, 1], strides = [1, 1]} : vector<128x8xf32> to vector<128x1xf32>
    %27 = vector.broadcast %26 : vector<128x1xf32> to vector<128x128xf32>
    %28 = arith.mulf %27, %25 : vector<128x128xf32>
    %29 = arith.addf %2, %28 : vector<128x128xf32>
    %c1 = arith.constant 1 : index
    %c0_20 = arith.constant 0 : index
    %c0_21 = arith.constant 0 : index
    %30 = vector.load %arg2[%c1, %c0_20, %c0_21] : memref<8x128x128xbf16, #tpu.memory_space<vmem>>, vector<1x128x128xbf16>
    %31 = vector.shape_cast %30 : vector<1x128x128xbf16> to vector<128x128xbf16>
    %cst_22 = arith.constant dense<0.000000e+00> : vector<128x128xf32>
    %32 = tpu.matmul %0, %31, %cst_22 {dimension_numbers = #tpu.dot_dimension_numbers<[1], [0], [0], [1], [0, 0, 1, 1], [], []>} : vector<128x128xbf16>, vector<128x128xbf16>, vector<128x128xf32> -> vector<128x128xf32>
    %c1_23 = arith.constant 1 : index
    %c0_24 = arith.constant 0 : index
    %c0_25 = arith.constant 0 : index
    %33 = vector.load %arg3[%c1_23, %c0_24, %c0_25] : memref<8x1x128xf32, #tpu.memory_space<vmem>>, vector<1x1x128xf32>
    %34 = vector.shape_cast %33 : vector<1x1x128xf32> to vector<1x128xf32>
    %35 = vector.broadcast %34 : vector<1x128xf32> to vector<128x128xf32>
    %36 = arith.addf %32, %35 : vector<128x128xf32>
    %cst_26 = arith.constant 5.000000e-01 : f32
    %37 = vector.broadcast %cst_26 : f32 to vector<128x128xf32>
    %38 = arith.mulf %37, %36 : vector<128x128xf32>
    %cst_27 = arith.constant 0.707106769 : f32
    %39 = vector.broadcast %cst_27 : f32 to vector<128x128xf32>
    %40 = arith.mulf %36, %39 : vector<128x128xf32>
    %41 = math.erf %40 : vector<128x128xf32>
    %cst_28 = arith.constant 1.000000e+00 : f32
    %42 = vector.broadcast %cst_28 : f32 to vector<128x128xf32>
    %43 = arith.addf %42, %41 : vector<128x128xf32>
    %44 = arith.mulf %38, %43 : vector<128x128xf32>
    %45 = arith.truncf %44 : vector<128x128xf32> to vector<128x128xbf16>
    %c1_29 = arith.constant 1 : index
    %c0_30 = arith.constant 0 : index
    %c0_31 = arith.constant 0 : index
    %46 = vector.load %arg4[%c1_29, %c0_30, %c0_31] : memref<8x128x128xbf16, #tpu.memory_space<vmem>>, vector<1x128x128xbf16>
    %47 = vector.shape_cast %46 : vector<1x128x128xbf16> to vector<128x128xbf16>
    %cst_32 = arith.constant dense<0.000000e+00> : vector<128x128xf32>
    %48 = tpu.matmul %45, %47, %cst_32 {dimension_numbers = #tpu.dot_dimension_numbers<[1], [0], [0], [1], [0, 0, 1, 1], [], []>} : vector<128x128xbf16>, vector<128x128xbf16>, vector<128x128xf32> -> vector<128x128xf32>
    %c1_33 = arith.constant 1 : index
    %c0_34 = arith.constant 0 : index
    %c0_35 = arith.constant 0 : index
    %49 = vector.load %arg5[%c1_33, %c0_34, %c0_35] : memref<8x1x128xf32, #tpu.memory_space<vmem>>, vector<1x1x128xf32>
    %50 = vector.shape_cast %49 : vector<1x1x128xf32> to vector<1x128xf32>
    %51 = vector.broadcast %50 : vector<1x128xf32> to vector<128x128xf32>
    %52 = arith.addf %48, %51 : vector<128x128xf32>
    %53 = vector.extract_strided_slice %1 {offsets = [0, 1], sizes = [128, 1], strides = [1, 1]} : vector<128x8xf32> to vector<128x1xf32>
    %54 = vector.broadcast %53 : vector<128x1xf32> to vector<128x128xf32>
    %55 = arith.mulf %54, %52 : vector<128x128xf32>
    %56 = arith.addf %29, %55 : vector<128x128xf32>
    %c2 = arith.constant 2 : index
    %c0_36 = arith.constant 0 : index
    %c0_37 = arith.constant 0 : index
    %57 = vector.load %arg2[%c2, %c0_36, %c0_37] : memref<8x128x128xbf16, #tpu.memory_space<vmem>>, vector<1x128x128xbf16>
    %58 = vector.shape_cast %57 : vector<1x128x128xbf16> to vector<128x128xbf16>
    %cst_38 = arith.constant dense<0.000000e+00> : vector<128x128xf32>
    %59 = tpu.matmul %0, %58, %cst_38 {dimension_numbers = #tpu.dot_dimension_numbers<[1], [0], [0], [1], [0, 0, 1, 1], [], []>} : vector<128x128xbf16>, vector<128x128xbf16>, vector<128x128xf32> -> vector<128x128xf32>
    %c2_39 = arith.constant 2 : index
    %c0_40 = arith.constant 0 : index
    %c0_41 = arith.constant 0 : index
    %60 = vector.load %arg3[%c2_39, %c0_40, %c0_41] : memref<8x1x128xf32, #tpu.memory_space<vmem>>, vector<1x1x128xf32>
    %61 = vector.shape_cast %60 : vector<1x1x128xf32> to vector<1x128xf32>
    %62 = vector.broadcast %61 : vector<1x128xf32> to vector<128x128xf32>
    %63 = arith.addf %59, %62 : vector<128x128xf32>
    %cst_42 = arith.constant 5.000000e-01 : f32
    %64 = vector.broadcast %cst_42 : f32 to vector<128x128xf32>
    %65 = arith.mulf %64, %63 : vector<128x128xf32>
    %cst_43 = arith.constant 0.707106769 : f32
    %66 = vector.broadcast %cst_43 : f32 to vector<128x128xf32>
    %67 = arith.mulf %63, %66 : vector<128x128xf32>
    %68 = math.erf %67 : vector<128x128xf32>
    %cst_44 = arith.constant 1.000000e+00 : f32
    %69 = vector.broadcast %cst_44 : f32 to vector<128x128xf32>
    %70 = arith.addf %69, %68 : vector<128x128xf32>
    %71 = arith.mulf %65, %70 : vector<128x128xf32>
    %72 = arith.truncf %71 : vector<128x128xf32> to vector<128x128xbf16>
    %c2_45 = arith.constant 2 : index
    %c0_46 = arith.constant 0 : index
    %c0_47 = arith.constant 0 : index
    %73 = vector.load %arg4[%c2_45, %c0_46, %c0_47] : memref<8x128x128xbf16, #tpu.memory_space<vmem>>, vector<1x128x128xbf16>
    %74 = vector.shape_cast %73 : vector<1x128x128xbf16> to vector<128x128xbf16>
    %cst_48 = arith.constant dense<0.000000e+00> : vector<128x128xf32>
    %75 = tpu.matmul %72, %74, %cst_48 {dimension_numbers = #tpu.dot_dimension_numbers<[1], [0], [0], [1], [0, 0, 1, 1], [], []>} : vector<128x128xbf16>, vector<128x128xbf16>, vector<128x128xf32> -> vector<128x128xf32>
    %c2_49 = arith.constant 2 : index
    %c0_50 = arith.constant 0 : index
    %c0_51 = arith.constant 0 : index
    %76 = vector.load %arg5[%c2_49, %c0_50, %c0_51] : memref<8x1x128xf32, #tpu.memory_space<vmem>>, vector<1x1x128xf32>
    %77 = vector.shape_cast %76 : vector<1x1x128xf32> to vector<1x128xf32>
    %78 = vector.broadcast %77 : vector<1x128xf32> to vector<128x128xf32>
    %79 = arith.addf %75, %78 : vector<128x128xf32>
    %80 = vector.extract_strided_slice %1 {offsets = [0, 2], sizes = [128, 1], strides = [1, 1]} : vector<128x8xf32> to vector<128x1xf32>
    %81 = vector.broadcast %80 : vector<128x1xf32> to vector<128x128xf32>
    %82 = arith.mulf %81, %79 : vector<128x128xf32>
    %83 = arith.addf %56, %82 : vector<128x128xf32>
    %c3 = arith.constant 3 : index
    %c0_52 = arith.constant 0 : index
    %c0_53 = arith.constant 0 : index
    %84 = vector.load %arg2[%c3, %c0_52, %c0_53] : memref<8x128x128xbf16, #tpu.memory_space<vmem>>, vector<1x128x128xbf16>
    %85 = vector.shape_cast %84 : vector<1x128x128xbf16> to vector<128x128xbf16>
    %cst_54 = arith.constant dense<0.000000e+00> : vector<128x128xf32>
    %86 = tpu.matmul %0, %85, %cst_54 {dimension_numbers = #tpu.dot_dimension_numbers<[1], [0], [0], [1], [0, 0, 1, 1], [], []>} : vector<128x128xbf16>, vector<128x128xbf16>, vector<128x128xf32> -> vector<128x128xf32>
    %c3_55 = arith.constant 3 : index
    %c0_56 = arith.constant 0 : index
    %c0_57 = arith.constant 0 : index
    %87 = vector.load %arg3[%c3_55, %c0_56, %c0_57] : memref<8x1x128xf32, #tpu.memory_space<vmem>>, vector<1x1x128xf32>
    %88 = vector.shape_cast %87 : vector<1x1x128xf32> to vector<1x128xf32>
    %89 = vector.broadcast %88 : vector<1x128xf32> to vector<128x128xf32>
    %90 = arith.addf %86, %89 : vector<128x128xf32>
    %cst_58 = arith.constant 5.000000e-01 : f32
    %91 = vector.broadcast %cst_58 : f32 to vector<128x128xf32>
    %92 = arith.mulf %91, %90 : vector<128x128xf32>
    %cst_59 = arith.constant 0.707106769 : f32
    %93 = vector.broadcast %cst_59 : f32 to vector<128x128xf32>
    %94 = arith.mulf %90, %93 : vector<128x128xf32>
    %95 = math.erf %94 : vector<128x128xf32>
    %cst_60 = arith.constant 1.000000e+00 : f32
    %96 = vector.broadcast %cst_60 : f32 to vector<128x128xf32>
    %97 = arith.addf %96, %95 : vector<128x128xf32>
    %98 = arith.mulf %92, %97 : vector<128x128xf32>
    %99 = arith.truncf %98 : vector<128x128xf32> to vector<128x128xbf16>
    %c3_61 = arith.constant 3 : index
    %c0_62 = arith.constant 0 : index
    %c0_63 = arith.constant 0 : index
    %100 = vector.load %arg4[%c3_61, %c0_62, %c0_63] : memref<8x128x128xbf16, #tpu.memory_space<vmem>>, vector<1x128x128xbf16>
    %101 = vector.shape_cast %100 : vector<1x128x128xbf16> to vector<128x128xbf16>
    %cst_64 = arith.constant dense<0.000000e+00> : vector<128x128xf32>
    %102 = tpu.matmul %99, %101, %cst_64 {dimension_numbers = #tpu.dot_dimension_numbers<[1], [0], [0], [1], [0, 0, 1, 1], [], []>} : vector<128x128xbf16>, vector<128x128xbf16>, vector<128x128xf32> -> vector<128x128xf32>
    %c3_65 = arith.constant 3 : index
    %c0_66 = arith.constant 0 : index
    %c0_67 = arith.constant 0 : index
    %103 = vector.load %arg5[%c3_65, %c0_66, %c0_67] : memref<8x1x128xf32, #tpu.memory_space<vmem>>, vector<1x1x128xf32>
    %104 = vector.shape_cast %103 : vector<1x1x128xf32> to vector<1x128xf32>
    %105 = vector.broadcast %104 : vector<1x128xf32> to vector<128x128xf32>
    %106 = arith.addf %102, %105 : vector<128x128xf32>
    %107 = vector.extract_strided_slice %1 {offsets = [0, 3], sizes = [128, 1], strides = [1, 1]} : vector<128x8xf32> to vector<128x1xf32>
    %108 = vector.broadcast %107 : vector<128x1xf32> to vector<128x128xf32>
    %109 = arith.mulf %108, %106 : vector<128x128xf32>
    %110 = arith.addf %83, %109 : vector<128x128xf32>
    %c4 = arith.constant 4 : index
    %c0_68 = arith.constant 0 : index
    %c0_69 = arith.constant 0 : index
    %111 = vector.load %arg2[%c4, %c0_68, %c0_69] : memref<8x128x128xbf16, #tpu.memory_space<vmem>>, vector<1x128x128xbf16>
    %112 = vector.shape_cast %111 : vector<1x128x128xbf16> to vector<128x128xbf16>
    %cst_70 = arith.constant dense<0.000000e+00> : vector<128x128xf32>
    %113 = tpu.matmul %0, %112, %cst_70 {dimension_numbers = #tpu.dot_dimension_numbers<[1], [0], [0], [1], [0, 0, 1, 1], [], []>} : vector<128x128xbf16>, vector<128x128xbf16>, vector<128x128xf32> -> vector<128x128xf32>
    %c4_71 = arith.constant 4 : index
    %c0_72 = arith.constant 0 : index
    %c0_73 = arith.constant 0 : index
    %114 = vector.load %arg3[%c4_71, %c0_72, %c0_73] : memref<8x1x128xf32, #tpu.memory_space<vmem>>, vector<1x1x128xf32>
    %115 = vector.shape_cast %114 : vector<1x1x128xf32> to vector<1x128xf32>
    %116 = vector.broadcast %115 : vector<1x128xf32> to vector<128x128xf32>
    %117 = arith.addf %113, %116 : vector<128x128xf32>
    %cst_74 = arith.constant 5.000000e-01 : f32
    %118 = vector.broadcast %cst_74 : f32 to vector<128x128xf32>
    %119 = arith.mulf %118, %117 : vector<128x128xf32>
    %cst_75 = arith.constant 0.707106769 : f32
    %120 = vector.broadcast %cst_75 : f32 to vector<128x128xf32>
    %121 = arith.mulf %117, %120 : vector<128x128xf32>
    %122 = math.erf %121 : vector<128x128xf32>
    %cst_76 = arith.constant 1.000000e+00 : f32
    %123 = vector.broadcast %cst_76 : f32 to vector<128x128xf32>
    %124 = arith.addf %123, %122 : vector<128x128xf32>
    %125 = arith.mulf %119, %124 : vector<128x128xf32>
    %126 = arith.truncf %125 : vector<128x128xf32> to vector<128x128xbf16>
    %c4_77 = arith.constant 4 : index
    %c0_78 = arith.constant 0 : index
    %c0_79 = arith.constant 0 : index
    %127 = vector.load %arg4[%c4_77, %c0_78, %c0_79] : memref<8x128x128xbf16, #tpu.memory_space<vmem>>, vector<1x128x128xbf16>
    %128 = vector.shape_cast %127 : vector<1x128x128xbf16> to vector<128x128xbf16>
    %cst_80 = arith.constant dense<0.000000e+00> : vector<128x128xf32>
    %129 = tpu.matmul %126, %128, %cst_80 {dimension_numbers = #tpu.dot_dimension_numbers<[1], [0], [0], [1], [0, 0, 1, 1], [], []>} : vector<128x128xbf16>, vector<128x128xbf16>, vector<128x128xf32> -> vector<128x128xf32>
    %c4_81 = arith.constant 4 : index
    %c0_82 = arith.constant 0 : index
    %c0_83 = arith.constant 0 : index
    %130 = vector.load %arg5[%c4_81, %c0_82, %c0_83] : memref<8x1x128xf32, #tpu.memory_space<vmem>>, vector<1x1x128xf32>
    %131 = vector.shape_cast %130 : vector<1x1x128xf32> to vector<1x128xf32>
    %132 = vector.broadcast %131 : vector<1x128xf32> to vector<128x128xf32>
    %133 = arith.addf %129, %132 : vector<128x128xf32>
    %134 = vector.extract_strided_slice %1 {offsets = [0, 4], sizes = [128, 1], strides = [1, 1]} : vector<128x8xf32> to vector<128x1xf32>
    %135 = vector.broadcast %134 : vector<128x1xf32> to vector<128x128xf32>
    %136 = arith.mulf %135, %133 : vector<128x128xf32>
    %137 = arith.addf %110, %136 : vector<128x128xf32>
    %c5 = arith.constant 5 : index
    %c0_84 = arith.constant 0 : index
    %c0_85 = arith.constant 0 : index
    %138 = vector.load %arg2[%c5, %c0_84, %c0_85] : memref<8x128x128xbf16, #tpu.memory_space<vmem>>, vector<1x128x128xbf16>
    %139 = vector.shape_cast %138 : vector<1x128x128xbf16> to vector<128x128xbf16>
    %cst_86 = arith.constant dense<0.000000e+00> : vector<128x128xf32>
    %140 = tpu.matmul %0, %139, %cst_86 {dimension_numbers = #tpu.dot_dimension_numbers<[1], [0], [0], [1], [0, 0, 1, 1], [], []>} : vector<128x128xbf16>, vector<128x128xbf16>, vector<128x128xf32> -> vector<128x128xf32>
    %c5_87 = arith.constant 5 : index
    %c0_88 = arith.constant 0 : index
    %c0_89 = arith.constant 0 : index
    %141 = vector.load %arg3[%c5_87, %c0_88, %c0_89] : memref<8x1x128xf32, #tpu.memory_space<vmem>>, vector<1x1x128xf32>
    %142 = vector.shape_cast %141 : vector<1x1x128xf32> to vector<1x128xf32>
    %143 = vector.broadcast %142 : vector<1x128xf32> to vector<128x128xf32>
    %144 = arith.addf %140, %143 : vector<128x128xf32>
    %cst_90 = arith.constant 5.000000e-01 : f32
    %145 = vector.broadcast %cst_90 : f32 to vector<128x128xf32>
    %146 = arith.mulf %145, %144 : vector<128x128xf32>
    %cst_91 = arith.constant 0.707106769 : f32
    %147 = vector.broadcast %cst_91 : f32 to vector<128x128xf32>
    %148 = arith.mulf %144, %147 : vector<128x128xf32>
    %149 = math.erf %148 : vector<128x128xf32>
    %cst_92 = arith.constant 1.000000e+00 : f32
    %150 = vector.broadcast %cst_92 : f32 to vector<128x128xf32>
    %151 = arith.addf %150, %149 : vector<128x128xf32>
    %152 = arith.mulf %146, %151 : vector<128x128xf32>
    %153 = arith.truncf %152 : vector<128x128xf32> to vector<128x128xbf16>
    %c5_93 = arith.constant 5 : index
    %c0_94 = arith.constant 0 : index
    %c0_95 = arith.constant 0 : index
    %154 = vector.load %arg4[%c5_93, %c0_94, %c0_95] : memref<8x128x128xbf16, #tpu.memory_space<vmem>>, vector<1x128x128xbf16>
    %155 = vector.shape_cast %154 : vector<1x128x128xbf16> to vector<128x128xbf16>
    %cst_96 = arith.constant dense<0.000000e+00> : vector<128x128xf32>
    %156 = tpu.matmul %153, %155, %cst_96 {dimension_numbers = #tpu.dot_dimension_numbers<[1], [0], [0], [1], [0, 0, 1, 1], [], []>} : vector<128x128xbf16>, vector<128x128xbf16>, vector<128x128xf32> -> vector<128x128xf32>
    %c5_97 = arith.constant 5 : index
    %c0_98 = arith.constant 0 : index
    %c0_99 = arith.constant 0 : index
    %157 = vector.load %arg5[%c5_97, %c0_98, %c0_99] : memref<8x1x128xf32, #tpu.memory_space<vmem>>, vector<1x1x128xf32>
    %158 = vector.shape_cast %157 : vector<1x1x128xf32> to vector<1x128xf32>
    %159 = vector.broadcast %158 : vector<1x128xf32> to vector<128x128xf32>
    %160 = arith.addf %156, %159 : vector<128x128xf32>
    %161 = vector.extract_strided_slice %1 {offsets = [0, 5], sizes = [128, 1], strides = [1, 1]} : vector<128x8xf32> to vector<128x1xf32>
    %162 = vector.broadcast %161 : vector<128x1xf32> to vector<128x128xf32>
    %163 = arith.mulf %162, %160 : vector<128x128xf32>
    %164 = arith.addf %137, %163 : vector<128x128xf32>
    %c6 = arith.constant 6 : index
    %c0_100 = arith.constant 0 : index
    %c0_101 = arith.constant 0 : index
    %165 = vector.load %arg2[%c6, %c0_100, %c0_101] : memref<8x128x128xbf16, #tpu.memory_space<vmem>>, vector<1x128x128xbf16>
    %166 = vector.shape_cast %165 : vector<1x128x128xbf16> to vector<128x128xbf16>
    %cst_102 = arith.constant dense<0.000000e+00> : vector<128x128xf32>
    %167 = tpu.matmul %0, %166, %cst_102 {dimension_numbers = #tpu.dot_dimension_numbers<[1], [0], [0], [1], [0, 0, 1, 1], [], []>} : vector<128x128xbf16>, vector<128x128xbf16>, vector<128x128xf32> -> vector<128x128xf32>
    %c6_103 = arith.constant 6 : index
    %c0_104 = arith.constant 0 : index
    %c0_105 = arith.constant 0 : index
    %168 = vector.load %arg3[%c6_103, %c0_104, %c0_105] : memref<8x1x128xf32, #tpu.memory_space<vmem>>, vector<1x1x128xf32>
    %169 = vector.shape_cast %168 : vector<1x1x128xf32> to vector<1x128xf32>
    %170 = vector.broadcast %169 : vector<1x128xf32> to vector<128x128xf32>
    %171 = arith.addf %167, %170 : vector<128x128xf32>
    %cst_106 = arith.constant 5.000000e-01 : f32
    %172 = vector.broadcast %cst_106 : f32 to vector<128x128xf32>
    %173 = arith.mulf %172, %171 : vector<128x128xf32>
    %cst_107 = arith.constant 0.707106769 : f32
    %174 = vector.broadcast %cst_107 : f32 to vector<128x128xf32>
    %175 = arith.mulf %171, %174 : vector<128x128xf32>
    %176 = math.erf %175 : vector<128x128xf32>
    %cst_108 = arith.constant 1.000000e+00 : f32
    %177 = vector.broadcast %cst_108 : f32 to vector<128x128xf32>
    %178 = arith.addf %177, %176 : vector<128x128xf32>
    %179 = arith.mulf %173, %178 : vector<128x128xf32>
    %180 = arith.truncf %179 : vector<128x128xf32> to vector<128x128xbf16>
    %c6_109 = arith.constant 6 : index
    %c0_110 = arith.constant 0 : index
    %c0_111 = arith.constant 0 : index
    %181 = vector.load %arg4[%c6_109, %c0_110, %c0_111] : memref<8x128x128xbf16, #tpu.memory_space<vmem>>, vector<1x128x128xbf16>
    %182 = vector.shape_cast %181 : vector<1x128x128xbf16> to vector<128x128xbf16>
    %cst_112 = arith.constant dense<0.000000e+00> : vector<128x128xf32>
    %183 = tpu.matmul %180, %182, %cst_112 {dimension_numbers = #tpu.dot_dimension_numbers<[1], [0], [0], [1], [0, 0, 1, 1], [], []>} : vector<128x128xbf16>, vector<128x128xbf16>, vector<128x128xf32> -> vector<128x128xf32>
    %c6_113 = arith.constant 6 : index
    %c0_114 = arith.constant 0 : index
    %c0_115 = arith.constant 0 : index
    %184 = vector.load %arg5[%c6_113, %c0_114, %c0_115] : memref<8x1x128xf32, #tpu.memory_space<vmem>>, vector<1x1x128xf32>
    %185 = vector.shape_cast %184 : vector<1x1x128xf32> to vector<1x128xf32>
    %186 = vector.broadcast %185 : vector<1x128xf32> to vector<128x128xf32>
    %187 = arith.addf %183, %186 : vector<128x128xf32>
    %188 = vector.extract_strided_slice %1 {offsets = [0, 6], sizes = [128, 1], strides = [1, 1]} : vector<128x8xf32> to vector<128x1xf32>
    %189 = vector.broadcast %188 : vector<128x1xf32> to vector<128x128xf32>
    %190 = arith.mulf %189, %187 : vector<128x128xf32>
    %191 = arith.addf %164, %190 : vector<128x128xf32>
    %c7 = arith.constant 7 : index
    %c0_116 = arith.constant 0 : index
    %c0_117 = arith.constant 0 : index
    %192 = vector.load %arg2[%c7, %c0_116, %c0_117] : memref<8x128x128xbf16, #tpu.memory_space<vmem>>, vector<1x128x128xbf16>
    %193 = vector.shape_cast %192 : vector<1x128x128xbf16> to vector<128x128xbf16>
    %cst_118 = arith.constant dense<0.000000e+00> : vector<128x128xf32>
    %194 = tpu.matmul %0, %193, %cst_118 {dimension_numbers = #tpu.dot_dimension_numbers<[1], [0], [0], [1], [0, 0, 1, 1], [], []>} : vector<128x128xbf16>, vector<128x128xbf16>, vector<128x128xf32> -> vector<128x128xf32>
    %c7_119 = arith.constant 7 : index
    %c0_120 = arith.constant 0 : index
    %c0_121 = arith.constant 0 : index
    %195 = vector.load %arg3[%c7_119, %c0_120, %c0_121] : memref<8x1x128xf32, #tpu.memory_space<vmem>>, vector<1x1x128xf32>
    %196 = vector.shape_cast %195 : vector<1x1x128xf32> to vector<1x128xf32>
    %197 = vector.broadcast %196 : vector<1x128xf32> to vector<128x128xf32>
    %198 = arith.addf %194, %197 : vector<128x128xf32>
    %cst_122 = arith.constant 5.000000e-01 : f32
    %199 = vector.broadcast %cst_122 : f32 to vector<128x128xf32>
    %200 = arith.mulf %199, %198 : vector<128x128xf32>
    %cst_123 = arith.constant 0.707106769 : f32
    %201 = vector.broadcast %cst_123 : f32 to vector<128x128xf32>
    %202 = arith.mulf %198, %201 : vector<128x128xf32>
    %203 = math.erf %202 : vector<128x128xf32>
    %cst_124 = arith.constant 1.000000e+00 : f32
    %204 = vector.broadcast %cst_124 : f32 to vector<128x128xf32>
    %205 = arith.addf %204, %203 : vector<128x128xf32>
    %206 = arith.mulf %200, %205 : vector<128x128xf32>
    %207 = arith.truncf %206 : vector<128x128xf32> to vector<128x128xbf16>
    %c7_125 = arith.constant 7 : index
    %c0_126 = arith.constant 0 : index
    %c0_127 = arith.constant 0 : index
    %208 = vector.load %arg4[%c7_125, %c0_126, %c0_127] : memref<8x128x128xbf16, #tpu.memory_space<vmem>>, vector<1x128x128xbf16>
    %209 = vector.shape_cast %208 : vector<1x128x128xbf16> to vector<128x128xbf16>
    %cst_128 = arith.constant dense<0.000000e+00> : vector<128x128xf32>
    %210 = tpu.matmul %207, %209, %cst_128 {dimension_numbers = #tpu.dot_dimension_numbers<[1], [0], [0], [1], [0, 0, 1, 1], [], []>} : vector<128x128xbf16>, vector<128x128xbf16>, vector<128x128xf32> -> vector<128x128xf32>
    %c7_129 = arith.constant 7 : index
    %c0_130 = arith.constant 0 : index
    %c0_131 = arith.constant 0 : index
    %211 = vector.load %arg5[%c7_129, %c0_130, %c0_131] : memref<8x1x128xf32, #tpu.memory_space<vmem>>, vector<1x1x128xf32>
    %212 = vector.shape_cast %211 : vector<1x1x128xf32> to vector<1x128xf32>
    %213 = vector.broadcast %212 : vector<1x128xf32> to vector<128x128xf32>
    %214 = arith.addf %210, %213 : vector<128x128xf32>
    %215 = vector.extract_strided_slice %1 {offsets = [0, 7], sizes = [128, 1], strides = [1, 1]} : vector<128x8xf32> to vector<128x1xf32>
    %216 = vector.broadcast %215 : vector<128x1xf32> to vector<128x128xf32>
    %217 = arith.mulf %216, %214 : vector<128x128xf32>
    %218 = arith.addf %191, %217 : vector<128x128xf32>
    %c0_132 = arith.constant 0 : index
    %c0_133 = arith.constant 0 : index
    %219 = vector.load %arg7[%c0_132, %c0_133] : memref<128x128xf32, #tpu.memory_space<vmem>>, vector<128x128xf32>
    tpu.vector_store %arg7[%c0_132, %c0_133], %218 {strides = array<i32>} : memref<128x128xf32, #tpu.memory_space<vmem>>, vector<128x128xf32>,
    return
  }
  func.func @transform_0(%arg0: i32) -> (i32, i32) {
    %c0_i32 = arith.constant 0 : i32
    %c0_i32_0 = arith.constant 0 : i32
    return %arg0, %c0_i32 : i32, i32
  }
  func.func @transform_1(%arg0: i32) -> (i32, i32, i32) {
    %c0_i32 = arith.constant 0 : i32
    %c0_i32_0 = arith.constant 0 : i32
    %c0_i32_1 = arith.constant 0 : i32
    %c0_i32_2 = arith.constant 0 : i32
    return %c0_i32, %c0_i32_0, %c0_i32_1 : i32, i32, i32
  }
  func.func @transform_2(%arg0: i32) -> (i32, i32, i32) {
    %c0_i32 = arith.constant 0 : i32
    %c0_i32_0 = arith.constant 0 : i32
    %c0_i32_1 = arith.constant 0 : i32
    %c0_i32_2 = arith.constant 0 : i32
    return %c0_i32, %c0_i32_0, %c0_i32_1 : i32, i32, i32
  }
  func.func @transform_3(%arg0: i32) -> (i32, i32, i32) {
    %c0_i32 = arith.constant 0 : i32
    %c0_i32_0 = arith.constant 0 : i32
    %c0_i32_1 = arith.constant 0 : i32
    %c0_i32_2 = arith.constant 0 : i32
    return %c0_i32, %c0_i32_0, %c0_i32_1 : i32, i32, i32
  }
  func.func @transform_4(%arg0: i32) -> (i32, i32, i32) {
    %c0_i32 = arith.constant 0 : i32
    %c0_i32_0 = arith.constant 0 : i32
    %c0_i32_1 = arith.constant 0 : i32
    %c0_i32_2 = arith.constant 0 : i32
    return %c0_i32, %c0_i32_0, %c0_i32_1 : i32, i32, i32
  }
  func.func @transform_5(%arg0: i32) -> (i32, i32) {
    %c0_i32 = arith.constant 0 : i32
    %c0_i32_0 = arith.constant 0 : i32
    return %arg0, %c0_i32 : i32, i32
  }
  func.func @transform_6(%arg0: i32) -> (i32, i32) {
    %c0_i32 = arith.constant 0 : i32
    %c0_i32_0 = arith.constant 0 : i32
    return %arg0, %c0_i32 : i32, i32
  }
}

</mosaic_0001>

<bundles_post_ra>
// kernel: eq.1
= control target key start
LH: loop header
LB: loop body
LE: loop exit
PB: predicated region body
PF: predicated region fallthrough
CT: control target
= control target key end

     0   :  { %vm5_vm0 = vcmask 1041409   ;;  %vm9_vm1 = vcmask 1042434   ;;  %vm13_vm2 = vcmask 1043459   ;;  %s1477_s30 = smov 126   ;;  %s1478_s8 = smov 122   ;;  %vm15_vm3 = vcmask 15360   ;;  %s2515_s0 = inlined_call_operand.vmem [shape: s32[256,2], index: 0, kind: input, shape index: {}]   ;;  %s2516_s1 = inlined_call_operand.vmem [shape: s32[512], index: 1, kind: output, shape index: {}]  }
   0x1   :  { %v1162_v0 = vld [vmem:[%s2515_s0 + $0x3f] sm:$0x1]   ;;  %v1170_v5 = vld [vmem:[%s2515_s0 + $0x3d] sm:$0x1]   ;;  %v1166_v11 = vld [vmem:[%s2515_s0 + $0x3e] sm:$0x1]  }
   0x2   :  { %v1163_v1 = vld [vmem:[%s2515_s0 + $0x7e] sm:$0x2]   ;;  %v1171_v6 = vld [vmem:[%s2515_s0 + $0x7c] sm:$0x2]   ;;  %v1167_v14 = vld [vmem:[%s2515_s0 + $0x7d] sm:$0x2]  }
   0x3   :  { %v1164_v2 = vld [vmem:[%s2515_s0 + $0xbd] sm:$0x4]   ;;  %v22_v4 = vsel %vm5_vm0, %v1163_v1, %v1162_v0  ;;  %v1172_v7 = vld [vmem:[%s2515_s0 + $0xbb] sm:$0x4]   ;;  %v58_v9 = vsel %vm5_vm0, %v1171_v6, %v1170_v5  ;;  %v1168_v15 = vld [vmem:[%s2515_s0 + $0xbc] sm:$0x4]   ;;  %v40_v18 = vsel %vm5_vm0, %v1167_v14, %v1166_v11 }
   0x4   :  { %v1165_v3 = vld [vmem:[%s2515_s0 + $0xfc] sm:$0x8]   ;;  %v26_v8 = vsel %vm9_vm1, %v1164_v2, %v22_v4  ;;  %v1173_v10 = vld [vmem:[%s2515_s0 + $0xfa] sm:$0x8]   ;;  %v62_v13 = vsel %vm9_vm1, %v1172_v7, %v58_v9  ;;  %v1169_v16 = vld [vmem:[%s2515_s0 + $0xfb] sm:$0x8]   ;;  %v44_v22 = vsel %vm9_vm1, %v1168_v15, %v40_v18 }
   0x5   :  { %v30_v12 = vsel %vm13_vm2, %v1165_v3, %v26_v8  ;;  %v66_v17 = vsel %vm13_vm2, %v1173_v10, %v62_v13  ;;  %v1174_v19 = vld [vmem:[%s2515_s0 + $0x3c] sm:$0x1]   ;;  %v1178_v25 = vld [vmem:[%s2515_s0 + $0x3b] sm:$0x1]   ;;  %v48_v26 = vsel %vm13_vm2, %v1169_v16, %v44_v22  ;;  %v1182_v33 = vld [vmem:[%s2515_s0 + $0x3a] sm:$0x1]  }
   0x6   :  { %31 = vrot.lane.b32.xlu0 %v30_v12, %s1477_s30  ;;  %v1175_v20 = vld [vmem:[%s2515_s0 + $0x7b] sm:$0x2]   ;;  %67 = vrot.lane.b32.xlu1 %v66_v17, %s1478_s8  ;;  %v1179_v28 = vld [vmem:[%s2515_s0 + $0x7a] sm:$0x2]   ;;  %s1479_s25 = smov 124   ;;  %s1480_s30 = smov 120  }
   0x7   :  { %v1176_v21 = vld [vmem:[%s2515_s0 + $0xba] sm:$0x4]   ;;  %v76_v23 = vsel %vm5_vm0, %v1175_v20, %v1174_v19  ;;  %v1180_v29 = vld [vmem:[%s2515_s0 + $0xb9] sm:$0x4]   ;;  %v94_v32 = vsel %vm5_vm0, %v1179_v28, %v1178_v25  ;;  %v1183_v34 = vld [vmem:[%s2515_s0 + $0x79] sm:$0x2]  }
   0x8   :  { %v1177_v24 = vld [vmem:[%s2515_s0 + $0xf9] sm:$0x8]   ;;  %v80_v27 = vsel %vm9_vm1, %v1176_v21, %v76_v23  ;;  %v1181_v30 = vld [vmem:[%s2515_s0 + $0xf8] sm:$0x8]   ;;  %v1184_v35 = vld [vmem:[%s2515_s0 + $0xb8] sm:$0x4]   ;;  %v98_v36 = vsel %vm9_vm1, %v1180_v29, %v94_v32  ;;  %v112_v37 = vsel %vm5_vm0, %v1183_v34, %v1182_v33 }
   0x9   :  { %v84_v31 = vsel %vm13_vm2, %v1177_v24, %v80_v27  ;;  %v1185_v38 = vld [vmem:[%s2515_s0 + $0xf7] sm:$0x8]   ;;  %v1186_v39 = vld [vmem:[%s2515_s0 + $0x39] sm:$0x1]   ;;  %v102_v40 = vsel %vm13_vm2, %v1181_v30, %v98_v36  ;;  %v116_v41 = vsel %vm9_vm1, %v1184_v35, %v112_v37  ;;  %v1190_v47 = vld [vmem:[%s2515_s0 + $0x38] sm:$0x1]  }
   0xa   :  { %49 = vrot.lane.b32.xlu0 %v48_v26, %s1479_s25  ;;  %85 = vrot.lane.b32.xlu1 %v84_v31, %s1480_s30  ;;  %v1187_v42 = vld [vmem:[%s2515_s0 + $0x78] sm:$0x2]   ;;  %v120_v45 = vsel %vm13_vm2, %v1185_v38, %v116_v41  ;;  %v1191_v48 = vld [vmem:[%s2515_s0 + $0x77] sm:$0x2]   ;;  %s1481_s18 = smov 118   ;;  %s1482_s23 = smov 116  }
   0xb   :  { %v1188_v43 = vld [vmem:[%s2515_s0 + $0xb7] sm:$0x4]   ;;  %v130_v46 = vsel %vm5_vm0, %v1187_v42, %v1186_v39  ;;  %v1192_v49 = vld [vmem:[%s2515_s0 + $0xb6] sm:$0x4]   ;;  %v148_v51 = vsel %vm5_vm0, %v1191_v48, %v1190_v47  ;;  %v1194_v53 = vld [vmem:[%s2515_s0 + $0x37] sm:$0x1]  }
   0xc   :  { %v1189_v44 = vld [vmem:[%s2515_s0 + $0xf6] sm:$0x8]   ;;  %v134_v50 = vsel %vm9_vm1, %v1188_v43, %v130_v46  ;;  %v1193_v52 = vld [vmem:[%s2515_s0 + $0xf5] sm:$0x8]   ;;  %v152_v54 = vsel %vm9_vm1, %v1192_v49, %v148_v51  ;;  %v1195_v55 = vld [vmem:[%s2515_s0 + $0x76] sm:$0x2]  }
   0xd   :  { %v1196_v56 = vld [vmem:[%s2515_s0 + $0xb5] sm:$0x4]   ;;  %v138_v57 = vsel %vm13_vm2, %v1189_v44, %v134_v50  ;;  %v166_v58 = vsel %vm5_vm0, %v1195_v55, %v1194_v53  ;;  %v1198_v59 = vld [vmem:[%s2515_s0 + $0x36] sm:$0x1]   ;;  %v156_v62 = vsel %vm13_vm2, %v1193_v52, %v152_v54  ;;  %v1202_v2 = vld [vmem:[%s2515_s0 + $0x35] sm:$0x1]  }
   0xe   :  { %103 = vrot.lane.b32.xlu0 %v102_v40, %s1481_s18  ;;  %121 = vrot.lane.b32.xlu1 %v120_v45, %s1482_s23  ;;  %v1199_v60 = vld [vmem:[%s2515_s0 + $0x75] sm:$0x2]   ;;  %v170_v63 = vsel %vm9_vm1, %v1196_v56, %v166_v58  ;;  %v1197_v0 = vld [vmem:[%s2515_s0 + $0xf4] sm:$0x8]   ;;  %s1483_s11 = smov 114   ;;  %s1484_s18 = smov 112  }
   0xf   :  { %v1200_v61 = vld [vmem:[%s2515_s0 + $0xb4] sm:$0x4]   ;;  %v184_v1 = vsel %vm5_vm0, %v1199_v60, %v1198_v59  ;;  %v1203_v5 = vld [vmem:[%s2515_s0 + $0x74] sm:$0x2]   ;;  %v1206_v8 = vld [vmem:[%s2515_s0 + $0x34] sm:$0x1]   ;;  %v174_v11 = vsel %vm13_vm2, %v1197_v0, %v170_v63 }
  0x10   :  { %v188_v3 = vsel %vm9_vm1, %v1200_v61, %v184_v1  ;;  %v1201_v4 = vld [vmem:[%s2515_s0 + $0xf3] sm:$0x8]   ;;  %v1204_v6 = vld [vmem:[%s2515_s0 + $0xb3] sm:$0x4]   ;;  %v202_v7 = vsel %vm5_vm0, %v1203_v5, %v1202_v2  ;;  %v1207_v9 = vld [vmem:[%s2515_s0 + $0x73] sm:$0x2]  }
  0x11   :  { %v1208_v10 = vld [vmem:[%s2515_s0 + $0xb2] sm:$0x4]   ;;  %v220_v12 = vsel %vm5_vm0, %v1207_v9, %v1206_v8  ;;  %v1210_v13 = vld [vmem:[%s2515_s0 + $0x33] sm:$0x1]   ;;  %v192_v14 = vsel %vm13_vm2, %v1201_v4, %v188_v3  ;;  %v206_v15 = vsel %vm9_vm1, %v1204_v6, %v202_v7  ;;  %v1205_v16 = vld [vmem:[%s2515_s0 + $0xf2] sm:$0x8]  }
  0x12   :  { %139 = vrot.lane.b32.xlu0 %v138_v57, %s1483_s11  ;;  %157 = vrot.lane.b32.xlu1 %v156_v62, %s1484_s18  ;;  %v1209_v17 = vld [vmem:[%s2515_s0 + $0xf1] sm:$0x8]   ;;  %v1211_v18 = vld [vmem:[%s2515_s0 + $0x72] sm:$0x2]   ;;  %v224_v19 = vsel %vm9_vm1, %v1208_v10, %v220_v12  ;;  %s1485_s4 = smov 110   ;;  %s1486_s9 = smov 108   ;;  %v210_v27 = vsel %vm13_vm2, %v1205_v16, %v206_v15 }
  0x13   :  { %v238_v20 = vsel %vm5_vm0, %v1211_v18, %v1210_v13  ;;  %v1212_v21 = vld [vmem:[%s2515_s0 + $0xb1] sm:$0x4]   ;;  %v1214_v22 = vld [vmem:[%s2515_s0 + $0x32] sm:$0x1]   ;;  %v1218_v26 = vld [vmem:[%s2515_s0 + $0x31] sm:$0x1]   ;;  %v228_v29 = vsel %vm13_vm2, %v1209_v17, %v224_v19 }
  0x14   :  { %v1215_v23 = vld [vmem:[%s2515_s0 + $0x71] sm:$0x2]   ;;  %v1219_v28 = vld [vmem:[%s2515_s0 + $0x70] sm:$0x2]   ;;  %v242_v30 = vsel %vm9_vm1, %v1212_v21, %v238_v20  ;;  %v1213_v31 = vld [vmem:[%s2515_s0 + $0xf0] sm:$0x8]  }
  0x15   :  { %v256_v24 = vsel %vm5_vm0, %v1215_v23, %v1214_v22  ;;  %v1216_v25 = vld [vmem:[%s2515_s0 + $0xb0] sm:$0x4]   ;;  %v1222_v32 = vld [vmem:[%s2515_s0 + $0x30] sm:$0x1]   ;;  %v274_v36 = vsel %vm5_vm0, %v1219_v28, %v1218_v26  ;;  %v1220_v37 = vld [vmem:[%s2515_s0 + $0xaf] sm:$0x4]   ;;  %v246_v42 = vsel %vm13_vm2, %v1213_v31, %v242_v30 }
  0x16   :  { %175 = vrot.lane.b32.xlu0 %v174_v11, %s1485_s4  ;;  %193 = vrot.lane.b32.xlu1 %v192_v14, %s1486_s9  ;;  %v1223_v33 = vld [vmem:[%s2515_s0 + $0x6f] sm:$0x2]   ;;  %v260_v34 = vsel %vm9_vm1, %v1216_v25, %v256_v24  ;;  %v1217_v35 = vld [vmem:[%s2515_s0 + $0xef] sm:$0x8]   ;;  %s1487_s22 = smov 106   ;;  %s1488_s29 = smov 104   ;;  %v278_v46 = vsel %vm9_vm1, %v1220_v37, %v274_v36 }
  0x17   :  { %v292_v38 = vsel %vm5_vm0, %v1223_v33, %v1222_v32  ;;  %v1224_v39 = vld [vmem:[%s2515_s0 + $0xae] sm:$0x4]   ;;  %v1226_v40 = vld [vmem:[%s2515_s0 + $0x2f] sm:$0x1]   ;;  %v1230_v43 = vld [vmem:[%s2515_s0 + $0x2e] sm:$0x1]   ;;  %v264_v45 = vsel %vm13_vm2, %v1217_v35, %v260_v34 }
  0x18   :  { %v1227_v41 = vld [vmem:[%s2515_s0 + $0x6e] sm:$0x2]   ;;  %v1231_v44 = vld [vmem:[%s2515_s0 + $0x6d] sm:$0x2]   ;;  %v1221_v47 = vld [vmem:[%s2515_s0 + $0xee] sm:$0x8]   ;;  %v296_v48 = vsel %vm9_vm1, %v1224_v39, %v292_v38 }
  0x19   :  { %v1225_v49 = vld [vmem:[%s2515_s0 + $0xed] sm:$0x8]   ;;  %v310_v50 = vsel %vm5_vm0, %v1227_v41, %v1226_v40  ;;  %v1228_v51 = vld [vmem:[%s2515_s0 + $0xad] sm:$0x4]   ;;  %s1489_s11 = smov 102   ;;  %v328_v52 = vsel %vm5_vm0, %v1231_v44, %v1230_v43  ;;  %s1490_s18 = smov 100   ;;  %v282_v56 = vsel %vm13_vm2, %v1221_v47, %v278_v46 }
  0x1a   :  { %211 = vrot.lane.b32.xlu0 %v210_v27, %s1487_s22  ;;  %229 = vrot.lane.b32.xlu1 %v228_v29, %s1488_s29  ;;  %v1232_v53 = vld [vmem:[%s2515_s0 + $0xac] sm:$0x4]   ;;  %v1234_v54 = vld [vmem:[%s2515_s0 + $0x2d] sm:$0x1]   ;;  %v300_v59 = vsel %vm13_vm2, %v1225_v49, %v296_v48  ;;  %v314_v60 = vsel %vm9_vm1, %v1228_v51, %v310_v50  ;;  %s1491_s29 = smov 98   ;;  %s1492_s7 = smov 96  }
  0x1b   :  { %v1235_v55 = vld [vmem:[%s2515_s0 + $0x6c] sm:$0x2]   ;;  %v1238_v57 = vld [vmem:[%s2515_s0 + $0x2c] sm:$0x1]   ;;  %v1229_v61 = vld [vmem:[%s2515_s0 + $0xec] sm:$0x8]   ;;  %v332_v62 = vsel %vm9_vm1, %v1232_v53, %v328_v52 }
  0x1c   :  { %v1239_v58 = vld [vmem:[%s2515_s0 + $0x6b] sm:$0x2]   ;;  %v1233_v63 = vld [vmem:[%s2515_s0 + $0xeb] sm:$0x8]   ;;  %v346_v0 = vsel %vm5_vm0, %v1235_v55, %v1234_v54  ;;  %v1236_v1 = vld [vmem:[%s2515_s0 + $0xab] sm:$0x4]   ;;  %v318_v6 = vsel %vm13_vm2, %v1229_v61, %v314_v60 }
  0x1d   :  { %v364_v2 = vsel %vm5_vm0, %v1239_v58, %v1238_v57  ;;  %v1240_v3 = vld [vmem:[%s2515_s0 + $0xaa] sm:$0x4]   ;;  %v1242_v4 = vld [vmem:[%s2515_s0 + $0x2b] sm:$0x1]   ;;  %v1246_v7 = vld [vmem:[%s2515_s0 + $0x2a] sm:$0x1]   ;;  %v336_v9 = vsel %vm13_vm2, %v1233_v63, %v332_v62  ;;  %v350_v10 = vsel %vm9_vm1, %v1236_v1, %v346_v0 }
  0x1e   :  { %247 = vrot.lane.b32.xlu0 %v246_v42, %s1489_s11  ;;  %265 = vrot.lane.b32.xlu1 %v264_v45, %s1490_s18  ;;  %v1243_v5 = vld [vmem:[%s2515_s0 + $0x6a] sm:$0x2]   ;;  %v1247_v8 = vld [vmem:[%s2515_s0 + $0x69] sm:$0x2]   ;;  %v368_v12 = vsel %vm9_vm1, %v1240_v3, %v364_v2  ;;  %s1493_s18 = smov 94   ;;  %s1494_s25 = smov 92  }
  0x1f   :  { %v1237_v11 = vld [vmem:[%s2515_s0 + $0xea] sm:$0x8]   ;;  %v1241_v13 = vld [vmem:[%s2515_s0 + $0xe9] sm:$0x8]   ;;  %v382_v14 = vsel %vm5_vm0, %v1243_v5, %v1242_v4  ;;  %v1244_v15 = vld [vmem:[%s2515_s0 + $0xa9] sm:$0x4]   ;;  %v400_v16 = vsel %vm5_vm0, %v1247_v8, %v1246_v7 }
  0x20   :  { %v1248_v17 = vld [vmem:[%s2515_s0 + $0xa8] sm:$0x4]   ;;  %v1250_v18 = vld [vmem:[%s2515_s0 + $0x29] sm:$0x1]   ;;  %v354_v20 = vsel %vm13_vm2, %v1237_v11, %v350_v10  ;;  %v1254_v21 = vld [vmem:[%s2515_s0 + $0x28] sm:$0x1]   ;;  %v372_v23 = vsel %vm13_vm2, %v1241_v13, %v368_v12  ;;  %v386_v24 = vsel %vm9_vm1, %v1244_v15, %v382_v14 }
  0x21   :  { %v1251_v19 = vld [vmem:[%s2515_s0 + $0x68] sm:$0x2]   ;;  %v1255_v22 = vld [vmem:[%s2515_s0 + $0x67] sm:$0x2]   ;;  %v1245_v25 = vld [vmem:[%s2515_s0 + $0xe8] sm:$0x8]   ;;  %v404_v26 = vsel %vm9_vm1, %v1248_v17, %v400_v16 }
  0x22   :  { %283 = vrot.lane.b32.xlu0 %v282_v56, %s1491_s29  ;;  %301 = vrot.lane.b32.xlu1 %v300_v59, %s1492_s7  ;;  %v1249_v27 = vld [vmem:[%s2515_s0 + $0xe7] sm:$0x8]   ;;  %v418_v28 = vsel %vm5_vm0, %v1251_v19, %v1250_v18  ;;  %v1252_v29 = vld [vmem:[%s2515_s0 + $0xa7] sm:$0x4]   ;;  %s1495_s7 = smov 90   ;;  %v436_v30 = vsel %vm5_vm0, %v1255_v22, %v1254_v21  ;;  %s1496_s14 = smov 88   ;;  %v390_v34 = vsel %vm13_vm2, %v1245_v25, %v386_v24 }
  0x23   :  { %v1256_v31 = vld [vmem:[%s2515_s0 + $0xa6] sm:$0x4]   ;;  %v1258_v32 = vld [vmem:[%s2515_s0 + $0x27] sm:$0x1]   ;;  %v1262_v35 = vld [vmem:[%s2515_s0 + $0x26] sm:$0x1]   ;;  %v408_v37 = vsel %vm13_vm2, %v1249_v27, %v404_v26  ;;  %v422_v38 = vsel %vm9_vm1, %v1252_v29, %v418_v28 }
  0x24   :  { %v1259_v33 = vld [vmem:[%s2515_s0 + $0x66] sm:$0x2]   ;;  %v1263_v36 = vld [vmem:[%s2515_s0 + $0x65] sm:$0x2]   ;;  %v1253_v39 = vld [vmem:[%s2515_s0 + $0xe6] sm:$0x8]   ;;  %v440_v40 = vsel %vm9_vm1, %v1256_v31, %v436_v30 }
  0x25   :  { %v1257_v41 = vld [vmem:[%s2515_s0 + $0xe5] sm:$0x8]   ;;  %v454_v42 = vsel %vm5_vm0, %v1259_v33, %v1258_v32  ;;  %v1260_v43 = vld [vmem:[%s2515_s0 + $0xa5] sm:$0x4]   ;;  %v472_v44 = vsel %vm5_vm0, %v1263_v36, %v1262_v35  ;;  %v1264_v45 = vld [vmem:[%s2515_s0 + $0xa4] sm:$0x4]   ;;  %v426_v48 = vsel %vm13_vm2, %v1253_v39, %v422_v38 }
  0x26   :  { %319 = vrot.lane.b32.xlu0 %v318_v6, %s1493_s18  ;;  %337 = vrot.lane.b32.xlu1 %v336_v9, %s1494_s25  ;;  %s1497_s25 = smov 86   ;;  %v1266_v46 = vld [vmem:[%s2515_s0 + $0x25] sm:$0x1]   ;;  %s1498_s3 = smov 84   ;;  %v1270_v49 = vld [vmem:[%s2515_s0 + $0x24] sm:$0x1]   ;;  %v444_v51 = vsel %vm13_vm2, %v1257_v41, %v440_v40  ;;  %v458_v52 = vsel %vm9_vm1, %v1260_v43, %v454_v42  ;;  %v476_v54 = vsel %vm9_vm1, %v1264_v45, %v472_v44 }
  0x27   :  { %v1267_v47 = vld [vmem:[%s2515_s0 + $0x64] sm:$0x2]   ;;  %v1271_v50 = vld [vmem:[%s2515_s0 + $0x63] sm:$0x2]   ;;  %v1261_v53 = vld [vmem:[%s2515_s0 + $0xe4] sm:$0x8]  }
  0x28   :  { %v1265_v55 = vld [vmem:[%s2515_s0 + $0xe3] sm:$0x8]   ;;  %v490_v56 = vsel %vm5_vm0, %v1267_v47, %v1266_v46  ;;  %v1268_v57 = vld [vmem:[%s2515_s0 + $0xa3] sm:$0x4]   ;;  %v508_v58 = vsel %vm5_vm0, %v1271_v50, %v1270_v49  ;;  %v1272_v59 = vld [vmem:[%s2515_s0 + $0xa2] sm:$0x4]   ;;  %v462_v62 = vsel %vm13_vm2, %v1261_v53, %v458_v52 }
  0x29   :  { %v1274_v60 = vld [vmem:[%s2515_s0 + $0x23] sm:$0x1]   ;;  %s1500_s21 = smov 80   ;;  %v1278_v63 = vld [vmem:[%s2515_s0 + $0x22] sm:$0x1]   ;;  %v480_v1 = vsel %vm13_vm2, %v1265_v55, %v476_v54  ;;  %v494_v2 = vsel %vm9_vm1, %v1268_v57, %v490_v56  ;;  %v512_v4 = vsel %vm9_vm1, %v1272_v59, %v508_v58  ;;  %s1502_s10 = smov 76  }
  0x2a   :  { %355 = vrot.lane.b32.xlu0 %v354_v20, %s1495_s7  ;;  %373 = vrot.lane.b32.xlu1 %v372_v23, %s1496_s14  ;;  %s1499_s14 = smov 82   ;;  %v1275_v61 = vld [vmem:[%s2515_s0 + $0x62] sm:$0x2]   ;;  %v1279_v0 = vld [vmem:[%s2515_s0 + $0x61] sm:$0x2]   ;;  %s1504_s28 = smov 72  }
  0x2b   :  { %v1269_v3 = vld [vmem:[%s2515_s0 + $0xe2] sm:$0x8]   ;;  %v1273_v5 = vld [vmem:[%s2515_s0 + $0xe1] sm:$0x8]   ;;  %v526_v6 = vsel %vm5_vm0, %v1275_v61, %v1274_v60  ;;  %v1276_v7 = vld [vmem:[%s2515_s0 + $0xa1] sm:$0x4]   ;;  %v544_v8 = vsel %vm5_vm0, %v1279_v0, %v1278_v63 }
  0x2c   :  { %v1280_v9 = vld [vmem:[%s2515_s0 + $0xa0] sm:$0x4]   ;;  %v1282_v10 = vld [vmem:[%s2515_s0 + $0x21] sm:$0x1]   ;;  %v498_v12 = vsel %vm13_vm2, %v1269_v3, %v494_v2  ;;  %v1286_v13 = vld [vmem:[%s2515_s0 + $0x20] sm:$0x1]   ;;  %v516_v15 = vsel %vm13_vm2, %v1273_v5, %v512_v4  ;;  %v530_v16 = vsel %vm9_vm1, %v1276_v7, %v526_v6 }
  0x2d   :  { %v1283_v11 = vld [vmem:[%s2515_s0 + $0x60] sm:$0x2]   ;;  %v1287_v14 = vld [vmem:[%s2515_s0 + $0x5f] sm:$0x2]   ;;  %v1277_v17 = vld [vmem:[%s2515_s0 + $0xe0] sm:$0x8]   ;;  %v548_v18 = vsel %vm9_vm1, %v1280_v9, %v544_v8 }
  0x2e   :  { %391 = vrot.lane.b32.xlu0 %v390_v34, %s1497_s25  ;;  %409 = vrot.lane.b32.xlu1 %v408_v37, %s1498_s3  ;;  %s1501_s3 = smov 78   ;;  %v1281_v19 = vld [vmem:[%s2515_s0 + $0xdf] sm:$0x8]   ;;  %v562_v20 = vsel %vm5_vm0, %v1283_v11, %v1282_v10  ;;  %v1284_v21 = vld [vmem:[%s2515_s0 + $0x9f] sm:$0x4]   ;;  %v580_v22 = vsel %vm5_vm0, %v1287_v14, %v1286_v13  ;;  %v534_v26 = vsel %vm13_vm2, %v1277_v17, %v530_v16  ;;  %s1506_s17 = smov 68  }
  0x2f   :  { %v1288_v23 = vld [vmem:[%s2515_s0 + $0x9e] sm:$0x4]   ;;  %v1290_v24 = vld [vmem:[%s2515_s0 + $0x1f] sm:$0x1]   ;;  %v1294_v27 = vld [vmem:[%s2515_s0 + $0x1e] sm:$0x1]   ;;  %v552_v29 = vsel %vm13_vm2, %v1281_v19, %v548_v18  ;;  %v566_v30 = vsel %vm9_vm1, %v1284_v21, %v562_v20 }
  0x30   :  { %v1291_v25 = vld [vmem:[%s2515_s0 + $0x5e] sm:$0x2]   ;;  %v1295_v28 = vld [vmem:[%s2515_s0 + $0x5d] sm:$0x2]   ;;  %v1285_v31 = vld [vmem:[%s2515_s0 + $0xde] sm:$0x8]   ;;  %v584_v32 = vsel %vm9_vm1, %v1288_v23, %v580_v22 }
  0x31   :  { %v1289_v33 = vld [vmem:[%s2515_s0 + $0xdd] sm:$0x8]   ;;  %v598_v34 = vsel %vm5_vm0, %v1291_v25, %v1290_v24  ;;  %v1292_v35 = vld [vmem:[%s2515_s0 + $0x9d] sm:$0x4]   ;;  %v616_v36 = vsel %vm5_vm0, %v1295_v28, %v1294_v27  ;;  %v1296_v37 = vld [vmem:[%s2515_s0 + $0x9c] sm:$0x4]   ;;  %v570_v40 = vsel %vm13_vm2, %v1285_v31, %v566_v30 }
  0x32   :  { %427 = vrot.lane.b32.xlu0 %v426_v48, %s1499_s14  ;;  %445 = vrot.lane.b32.xlu1 %v444_v51, %s1500_s21  ;;  %s1503_s21 = smov 74   ;;  %v1298_v38 = vld [vmem:[%s2515_s0 + $0x1d] sm:$0x1]   ;;  %v1302_v41 = vld [vmem:[%s2515_s0 + $0x1c] sm:$0x1]   ;;  %v588_v43 = vsel %vm13_vm2, %v1289_v33, %v584_v32  ;;  %v602_v44 = vsel %vm9_vm1, %v1292_v35, %v598_v34  ;;  %v620_v46 = vsel %vm9_vm1, %v1296_v37, %v616_v36  ;;  %s1508_s6 = smov 64  }
  0x33   :  { %v1299_v39 = vld [vmem:[%s2515_s0 + $0x5c] sm:$0x2]   ;;  %v1303_v42 = vld [vmem:[%s2515_s0 + $0x5b] sm:$0x2]   ;;  %v1293_v45 = vld [vmem:[%s2515_s0 + $0xdc] sm:$0x8]  }
  0x34   :  { %v1297_v47 = vld [vmem:[%s2515_s0 + $0xdb] sm:$0x8]   ;;  %v634_v48 = vsel %vm5_vm0, %v1299_v39, %v1298_v38  ;;  %v1300_v49 = vld [vmem:[%s2515_s0 + $0x9b] sm:$0x4]   ;;  %v652_v50 = vsel %vm5_vm0, %v1303_v42, %v1302_v41  ;;  %v1304_v51 = vld [vmem:[%s2515_s0 + $0x9a] sm:$0x4]   ;;  %v606_v54 = vsel %vm13_vm2, %v1293_v45, %v602_v44 }
  0x35   :  { %v1306_v52 = vld [vmem:[%s2515_s0 + $0x1b] sm:$0x1]   ;;  %v1310_v55 = vld [vmem:[%s2515_s0 + $0x1a] sm:$0x1]   ;;  %v624_v57 = vsel %vm13_vm2, %v1297_v47, %v620_v46  ;;  %v638_v58 = vsel %vm9_vm1, %v1300_v49, %v634_v48  ;;  %v1301_v59 = vld [vmem:[%s2515_s0 + $0xda] sm:$0x8]   ;;  %v656_v60 = vsel %vm9_vm1, %v1304_v51, %v652_v50 }
  0x36   :  { %463 = vrot.lane.b32.xlu0 %v462_v62, %s1501_s3  ;;  %481 = vrot.lane.b32.xlu1 %v480_v1, %s1502_s10  ;;  %s1505_s10 = smov 70   ;;  %v1307_v53 = vld [vmem:[%s2515_s0 + $0x5a] sm:$0x2]   ;;  %v1311_v56 = vld [vmem:[%s2515_s0 + $0x59] sm:$0x2]   ;;  %s1510_s24 = smov 60   ;;  %v642_v4 = vsel %vm13_vm2, %v1301_v59, %v638_v58 }
  0x37   :  { %v1305_v61 = vld [vmem:[%s2515_s0 + $0xd9] sm:$0x8]   ;;  %v670_v62 = vsel %vm5_vm0, %v1307_v53, %v1306_v52  ;;  %v1308_v63 = vld [vmem:[%s2515_s0 + $0x99] sm:$0x4]   ;;  %v688_v0 = vsel %vm5_vm0, %v1311_v56, %v1310_v55  ;;  %v1312_v1 = vld [vmem:[%s2515_s0 + $0x98] sm:$0x4]  }
  0x38   :  { %v1314_v2 = vld [vmem:[%s2515_s0 + $0x19] sm:$0x1]   ;;  %v1318_v5 = vld [vmem:[%s2515_s0 + $0x18] sm:$0x1]   ;;  %v660_v7 = vsel %vm13_vm2, %v1305_v61, %v656_v60  ;;  %v674_v8 = vsel %vm9_vm1, %v1308_v63, %v670_v62  ;;  %v1309_v9 = vld [vmem:[%s2515_s0 + $0xd8] sm:$0x8]   ;;  %v692_v10 = vsel %vm9_vm1, %v1312_v1, %v688_v0 }
  0x39   :  { %v1315_v3 = vld [vmem:[%s2515_s0 + $0x58] sm:$0x2]   ;;  %v1319_v6 = vld [vmem:[%s2515_s0 + $0x57] sm:$0x2]   ;;  %v1313_v11 = vld [vmem:[%s2515_s0 + $0xd7] sm:$0x8]   ;;  %v678_v18 = vsel %vm13_vm2, %v1309_v9, %v674_v8 }
  0x3a   :  { %499 = vrot.lane.b32.xlu0 %v498_v12, %s1503_s21  ;;  %517 = vrot.lane.b32.xlu1 %v516_v15, %s1504_s28  ;;  %s1507_s28 = smov 66   ;;  %v706_v12 = vsel %vm5_vm0, %v1315_v3, %v1314_v2  ;;  %v1316_v13 = vld [vmem:[%s2515_s0 + $0x97] sm:$0x4]   ;;  %v724_v14 = vsel %vm5_vm0, %v1319_v6, %v1318_v5  ;;  %v1320_v15 = vld [vmem:[%s2515_s0 + $0x96] sm:$0x4]   ;;  %s1512_s13 = smov 56   ;;  %v696_v21 = vsel %vm13_vm2, %v1313_v11, %v692_v10 }
  0x3b   :  { %v1322_v16 = vld [vmem:[%s2515_s0 + $0x17] sm:$0x1]   ;;  %v1326_v19 = vld [vmem:[%s2515_s0 + $0x16] sm:$0x1]   ;;  %v710_v22 = vsel %vm9_vm1, %v1316_v13, %v706_v12  ;;  %v1317_v23 = vld [vmem:[%s2515_s0 + $0xd6] sm:$0x8]   ;;  %v728_v24 = vsel %vm9_vm1, %v1320_v15, %v724_v14 }
  0x3c   :  { %v1323_v17 = vld [vmem:[%s2515_s0 + $0x56] sm:$0x2]   ;;  %v1327_v20 = vld [vmem:[%s2515_s0 + $0x55] sm:$0x2]   ;;  %v1321_v25 = vld [vmem:[%s2515_s0 + $0xd5] sm:$0x8]   ;;  %v714_v32 = vsel %vm13_vm2, %v1317_v23, %v710_v22 }
  0x3d   :  { %v1324_v27 = vld [vmem:[%s2515_s0 + $0x95] sm:$0x4]   ;;  %v760_v28 = vsel %vm5_vm0, %v1327_v20, %v1326_v19  ;;  %v1330_v30 = vld [vmem:[%s2515_s0 + $0x15] sm:$0x1]   ;;  %s1514_s2 = smov 52   ;;  %v732_v35 = vsel %vm13_vm2, %v1321_v25, %v728_v24  ;;  %s1516_s20 = smov 48  }
  0x3e   :  { %535 = vrot.lane.b32.xlu0 %v534_v26, %s1505_s10  ;;  %553 = vrot.lane.b32.xlu1 %v552_v29, %s1506_s17  ;;  %s1509_s17 = smov 62   ;;  %v742_v26 = vsel %vm5_vm0, %v1323_v17, %v1322_v16  ;;  %v1328_v29 = vld [vmem:[%s2515_s0 + $0x94] sm:$0x4]   ;;  %v1331_v31 = vld [vmem:[%s2515_s0 + $0x54] sm:$0x2]   ;;  %s1518_s11 = smov 44  }
  0x3f   :  { %v1334_v33 = vld [vmem:[%s2515_s0 + $0x14] sm:$0x1]   ;;  %v746_v36 = vsel %vm9_vm1, %v1324_v27, %v742_v26  ;;  %v1325_v37 = vld [vmem:[%s2515_s0 + $0xd4] sm:$0x8]   ;;  %v764_v38 = vsel %vm9_vm1, %v1328_v29, %v760_v28  ;;  %v1329_v39 = vld [vmem:[%s2515_s0 + $0xd3] sm:$0x8]  }
  0x40   :  { %v1335_v34 = vld [vmem:[%s2515_s0 + $0x53] sm:$0x2]   ;;  %v1332_v41 = vld [vmem:[%s2515_s0 + $0x93] sm:$0x4]   ;;  %v1338_v44 = vld [vmem:[%s2515_s0 + $0x13] sm:$0x1]   ;;  %v750_v46 = vsel %vm13_vm2, %v1325_v37, %v746_v36  ;;  %v768_v49 = vsel %vm13_vm2, %v1329_v39, %v764_v38 }
  0x41   :  { %v796_v42 = vsel %vm5_vm0, %v1335_v34, %v1334_v33  ;;  %v1339_v45 = vld [vmem:[%s2515_s0 + $0x52] sm:$0x2]   ;;  %v1342_v47 = vld [vmem:[%s2515_s0 + $0x12] sm:$0x1]   ;;  %v1333_v51 = vld [vmem:[%s2515_s0 + $0xd2] sm:$0x8]  }
  0x42   :  { %571 = vrot.lane.b32.xlu0 %v570_v40, %s1507_s28  ;;  %589 = vrot.lane.b32.xlu1 %v588_v43, %s1508_s6  ;;  %s1511_s6 = smov 58   ;;  %v778_v40 = vsel %vm5_vm0, %v1331_v31, %v1330_v30  ;;  %v1336_v43 = vld [vmem:[%s2515_s0 + $0x92] sm:$0x4]   ;;  %v1343_v48 = vld [vmem:[%s2515_s0 + $0x51] sm:$0x2]   ;;  %s1519_s28 = smov 42  }
  0x43   :  { %v782_v50 = vsel %vm9_vm1, %v1332_v41, %v778_v40  ;;  %v800_v52 = vsel %vm9_vm1, %v1336_v43, %v796_v42  ;;  %v1337_v53 = vld [vmem:[%s2515_s0 + $0xd1] sm:$0x8]   ;;  %v1340_v55 = vld [vmem:[%s2515_s0 + $0x91] sm:$0x4]   ;;  %v1344_v58 = vld [vmem:[%s2515_s0 + $0x90] sm:$0x4]  }
  0x44   :  { %v1341_v56 = vld [vmem:[%s2515_s0 + $0xd0] sm:$0x8]   ;;  %v1346_v59 = vld [vmem:[%s2515_s0 + $0x11] sm:$0x1]   ;;  %v786_v61 = vsel %vm13_vm2, %v1333_v51, %v782_v50  ;;  %v1350_v62 = vld [vmem:[%s2515_s0 + $0x10] sm:$0x1]   ;;  %v804_v1 = vsel %vm13_vm2, %v1337_v53, %v800_v52 }
  0x45   :  { %v1347_v60 = vld [vmem:[%s2515_s0 + $0x50] sm:$0x2]   ;;  %v1351_v63 = vld [vmem:[%s2515_s0 + $0x4f] sm:$0x2]   ;;  %v1160_v0 = vld [vmem:[%s2515_s0 + $0x7e] sm:$0x4]  }
  0x46   :  { %607 = vrot.lane.b32.xlu0 %v606_v54, %s1509_s17  ;;  %625 = vrot.lane.b32.xlu1 %v624_v57, %s1510_s24  ;;  %s1513_s24 = smov 54   ;;  %v814_v54 = vsel %vm5_vm0, %v1339_v45, %v1338_v44  ;;  %v832_v57 = vsel %vm5_vm0, %v1343_v48, %v1342_v47  ;;  %v1161_v3 = vld [vmem:[%s2515_s0 + $0xbd] sm:$0x8]   ;;  %v850_v8 = vsel %vm5_vm0, %v1347_v60, %v1346_v59  ;;  %v1348_v9 = vld [vmem:[%s2515_s0 + $0x8f] sm:$0x4]   ;;  %s1521_s17 = smov 38  }
  0x47   :  { %v818_v2 = vsel %vm9_vm1, %v1340_v55, %v814_v54  ;;  %v1159_v5 = vld [vmem:[%s2515_s0 + $0x3f] sm:$0x2]   ;;  %v836_v6 = vsel %vm9_vm1, %v1344_v58, %v832_v57  ;;  %v868_v11 = vsel %vm5_vm0, %v1351_v63, %v1350_v62  ;;  %v1352_v12 = vld [vmem:[%s2515_s0 + $0x8e] sm:$0x4]   ;;  %v1354_v13 = vld [vmem:[%s2515_s0 + $0xf] sm:$0x1]  }
  0x48   :  { %v1355_v14 = vld [vmem:[%s2515_s0 + $0x4e] sm:$0x2]   ;;  %v822_v16 = vsel %vm13_vm2, %v1341_v56, %v818_v2  ;;  %v1358_v17 = vld [vmem:[%s2515_s0 + $0xe] sm:$0x1]   ;;  %v1349_v22 = vld [vmem:[%s2515_s0 + $0xce] sm:$0x8]   ;;  %v872_v23 = vsel %vm9_vm1, %v1352_v12, %v868_v11 }
  0x49   :  { %v1353_v24 = vld [vmem:[%s2515_s0 + $0xcd] sm:$0x8]   ;;  %v886_v25 = vsel %vm5_vm0, %v1355_v14, %v1354_v13  ;;  %v1356_v26 = vld [vmem:[%s2515_s0 + $0x8d] sm:$0x4]   ;;  %v1360_v28 = vld [vmem:[%s2515_s0 + $0x8c] sm:$0x4]  }
  0x4a   :  { %643 = vrot.lane.b32.xlu0 %v642_v4, %s1511_s6  ;;  %661 = vrot.lane.b32.xlu1 %v660_v7, %s1512_s13  ;;  %s1515_s13 = smov 50   ;;  %v2_v4 = vld [vmem:[%s2515_s0] sm:$0x1]   ;;  %v1345_v7 = vld [vmem:[%s2515_s0 + $0xcf] sm:$0x8]   ;;  %s1520_s6 = smov 40   ;;  %v876_v34 = vsel %vm13_vm2, %v1353_v24, %v872_v23 }
  0x4b   :  { %v6_v10 = vsel %vm5_vm0, %v1159_v5, %v2_v4  ;;  %v840_v20 = vsel %vm13_vm2, %v1345_v7, %v836_v6  ;;  %v1362_v29 = vld [vmem:[%s2515_s0 + $0xd] sm:$0x1]   ;;  %v1367_v33 = vld [vmem:[%s2515_s0 + $0x4b] sm:$0x2]   ;;  %v1357_v36 = vld [vmem:[%s2515_s0 + $0xcc] sm:$0x8]  }
  0x4c   :  { %v10_v15 = vsel %vm9_vm1, %v1160_v0, %v6_v10  ;;  %v1363_v30 = vld [vmem:[%s2515_s0 + $0x4c] sm:$0x2]   ;;  %v1361_v38 = vld [vmem:[%s2515_s0 + $0xcb] sm:$0x8]   ;;  %v1368_v42 = vld [vmem:[%s2515_s0 + $0x8a] sm:$0x4]  }
  0x4d   :  { %v14_v19 = vsel %vm13_vm2, %v1161_v3, %v10_v15  ;;  %v922_v39 = vsel %vm5_vm0, %v1363_v30, %v1362_v29  ;;  %v1364_v40 = vld [vmem:[%s2515_s0 + $0x8b] sm:$0x4]   ;;  %v1370_v43 = vld [vmem:[%s2515_s0 + $0xb] sm:$0x1]   ;;  %v1375_v47 = vld [vmem:[%s2515_s0 + $0x49] sm:$0x2]  }
  0x4e   :  { %679 = vrot.lane.b32.xlu0 %v678_v18, %s1513_s24  ;;  %697 = vrot.lane.b32.xlu1 %v696_v21, %s1514_s2  ;;  %s1517_s2 = smov 46   ;;  %v1359_v18 = vld [vmem:[%s2515_s0 + $0x4d] sm:$0x2]   ;;  %v854_v21 = vsel %vm9_vm1, %v1348_v9, %v850_v8  ;;  %16 = vst.msk [vmem:[#allocation0] sm:$0xf] %vm15_vm3, %v14_v19   ;;  %s1522_s24 = smov 36  }
  0x4f   :  { %v904_v27 = vsel %vm5_vm0, %v1359_v18, %v1358_v17  ;;  %v858_v31 = vsel %vm13_vm2, %v1349_v22, %v854_v21  ;;  %v1371_v44 = vld [vmem:[%s2515_s0 + $0x4a] sm:$0x2]   ;;  %v1365_v50 = vld [vmem:[%s2515_s0 + $0xca] sm:$0x8]   ;;  %v1369_v52 = vld [vmem:[%s2515_s0 + $0xc9] sm:$0x8]  }
  0x50   :  { %v908_v37 = vsel %vm9_vm1, %v1360_v28, %v904_v27  ;;  %v958_v53 = vsel %vm5_vm0, %v1371_v44, %v1370_v43  ;;  %v1372_v54 = vld [vmem:[%s2515_s0 + $0x89] sm:$0x4]   ;;  %v1376_v56 = vld [vmem:[%s2515_s0 + $0x88] sm:$0x4]   ;;  %v1378_v57 = vld [vmem:[%s2515_s0 + $0x9] sm:$0x1]  }
  0x51   :  { %v912_v48 = vsel %vm13_vm2, %v1361_v38, %v908_v37  ;;  %v1379_v58 = vld [vmem:[%s2515_s0 + $0x48] sm:$0x2]   ;;  %v1382_v60 = vld [vmem:[%s2515_s0 + $0x8] sm:$0x1]   ;;  %v962_v63 = vsel %vm9_vm1, %v1372_v54, %v958_v53  ;;  %v1373_v0 = vld [vmem:[%s2515_s0 + $0xc8] sm:$0x8]  }
  0x52   :  { %715 = vrot.lane.b32.xlu0 %v714_v32, %s1515_s13  ;;  %733 = vrot.lane.b32.xlu1 %v732_v35, %s1516_s20  ;;  %v1366_v32 = vld [vmem:[%s2515_s0 + $0xc] sm:$0x1]   ;;  %v890_v35 = vsel %vm9_vm1, %v1356_v26, %v886_v25  ;;  %s1524_s13 = smov 32   ;;  %v1377_v2 = vld [vmem:[%s2515_s0 + $0xc7] sm:$0x8]   ;;  %v994_v3 = vsel %vm5_vm0, %v1379_v58, %v1378_v57  ;;  %s1528_s20 = smov 24   ;;  %v966_v9 = vsel %vm13_vm2, %v1373_v0, %v962_v63 }
  0x53   :  { %v940_v41 = vsel %vm5_vm0, %v1367_v33, %v1366_v32  ;;  %v894_v45 = vsel %vm13_vm2, %v1357_v36, %v890_v35  ;;  %v1380_v4 = vld [vmem:[%s2515_s0 + $0x87] sm:$0x4]   ;;  %v1384_v6 = vld [vmem:[%s2515_s0 + $0x86] sm:$0x4]   ;;  %v1386_v7 = vld [vmem:[%s2515_s0 + $0x7] sm:$0x1]  }
  0x54   :  { %v944_v51 = vsel %vm9_vm1, %v1368_v42, %v940_v41  ;;  %v1387_v8 = vld [vmem:[%s2515_s0 + $0x46] sm:$0x2]   ;;  %v1390_v10 = vld [vmem:[%s2515_s0 + $0x6] sm:$0x1]   ;;  %v998_v13 = vsel %vm9_vm1, %v1380_v4, %v994_v3  ;;  %v1381_v14 = vld [vmem:[%s2515_s0 + $0xc6] sm:$0x8]  }
  0x55   :  { %v948_v62 = vsel %vm13_vm2, %v1369_v52, %v944_v51  ;;  %v1391_v11 = vld [vmem:[%s2515_s0 + $0x45] sm:$0x2]   ;;  %v1030_v17 = vsel %vm5_vm0, %v1387_v8, %v1386_v7  ;;  %v1388_v18 = vld [vmem:[%s2515_s0 + $0x85] sm:$0x4]   ;;  %v1394_v21 = vld [vmem:[%s2515_s0 + $0x5] sm:$0x1]   ;;  %v1002_v23 = vsel %vm13_vm2, %v1381_v14, %v998_v13 }
  0x56   :  { %751 = vrot.lane.b32.xlu0 %v750_v46, %s1517_s2  ;;  %769 = vrot.lane.b32.xlu1 %v768_v49, %s1518_s11  ;;  %v1374_v46 = vld [vmem:[%s2515_s0 + $0xa] sm:$0x1]   ;;  %v926_v49 = vsel %vm9_vm1, %v1364_v40, %v922_v39  ;;  %s1526_s2 = smov 28   ;;  %v1048_v19 = vsel %vm5_vm0, %v1391_v11, %v1390_v10  ;;  %v1395_v22 = vld [vmem:[%s2515_s0 + $0x44] sm:$0x2]   ;;  %s1530_s9 = smov 20   ;;  %v1034_v27 = vsel %vm9_vm1, %v1388_v18, %v1030_v17 }
  0x57   :  { %v976_v55 = vsel %vm5_vm0, %v1375_v47, %v1374_v46  ;;  %v930_v59 = vsel %vm13_vm2, %v1365_v50, %v926_v49  ;;  %v1398_v24 = vld [vmem:[%s2515_s0 + $0x4] sm:$0x1]   ;;  %v1389_v28 = vld [vmem:[%s2515_s0 + $0xc4] sm:$0x8]   ;;  %v1393_v30 = vld [vmem:[%s2515_s0 + $0xc3] sm:$0x8]  }
  0x58   :  { %v1399_v25 = vld [vmem:[%s2515_s0 + $0x43] sm:$0x2]   ;;  %v1396_v32 = vld [vmem:[%s2515_s0 + $0x83] sm:$0x4]   ;;  %v1402_v35 = vld [vmem:[%s2515_s0 + $0x3] sm:$0x1]   ;;  %v1038_v37 = vsel %vm13_vm2, %v1389_v28, %v1034_v27 }
  0x59   :  { %v1084_v33 = vsel %vm5_vm0, %v1399_v25, %v1398_v24  ;;  %v1403_v36 = vld [vmem:[%s2515_s0 + $0x42] sm:$0x2]   ;;  %s1532_s27 = smov 16   ;;  %v1406_v38 = vld [vmem:[%s2515_s0 + $0x2] sm:$0x1]   ;;  %vm33_vm4 = vcmask 1048560  }
  0x5a   :  { %787 = vrot.lane.b32.xlu0 %v786_v61, %s1519_s28  ;;  %805 = vrot.lane.b32.xlu1 %v804_v1, %s1520_s6  ;;  %s1523_s6 = smov 34   ;;  %v1383_v61 = vld [vmem:[%s2515_s0 + $0x47] sm:$0x2]   ;;  %v980_v1 = vsel %vm9_vm1, %v1376_v56, %v976_v55  ;;  %v1407_v39 = vld [vmem:[%s2515_s0 + $0x41] sm:$0x2]   ;;  %s1534_s16 = smov 12  }
  0x5b   :  { %v1012_v5 = vsel %vm5_vm0, %v1383_v61, %v1382_v60  ;;  %v984_v12 = vsel %vm13_vm2, %v1377_v2, %v980_v1  ;;  %v1397_v42 = vld [vmem:[%s2515_s0 + $0xc2] sm:$0x8]   ;;  %v1401_v44 = vld [vmem:[%s2515_s0 + $0xc1] sm:$0x8]   ;;  %v1404_v46 = vld [vmem:[%s2515_s0 + $0x81] sm:$0x4]   ;;  %v1120_v47 = vsel %vm5_vm0, %v1407_v39, %v1406_v38 }
  0x5c   :  { %v1016_v15 = vsel %vm9_vm1, %v1384_v6, %v1012_v5  ;;  %v1410_v49 = vld [vmem:[%s2515_s0 + $0x1] sm:$0x1]   ;;  %v1405_v55 = vld [vmem:[%s2515_s0 + $0xc0] sm:$0x8]   ;;  %v1409_v58 = vld [vmem:[%s2515_s0 + $0xbf] sm:$0x8]  }
  0x5d   :  { %v1411_v50 = vld [vmem:[%s2515_s0 + $0x40] sm:$0x2]   ;;  %s1535_s23 = smov 10   ;;  %vm51_vm5 = vcmask 1032160   ;;  %vm69_vm6 = vcmask 1015760   ;;  %vm87_vm7 = vcmask 999360  }
  0x5e   :  { %823 = vrot.lane.b32.xlu0 %v822_v16, %s1521_s17  ;;  %841 = vrot.lane.b32.xlu1 %v840_v20, %s1522_s24  ;;  %s1525_s24 = smov 30   ;;  %v1385_v16 = vld [vmem:[%s2515_s0 + $0xc5] sm:$0x8]   ;;  %v1392_v20 = vld [vmem:[%s2515_s0 + $0x84] sm:$0x4]   ;;  %vm105_vm8 = vcmask 982960  }
  0x5f   :  { %v1020_v26 = vsel %vm13_vm2, %v1385_v16, %v1016_v15  ;;  %v1052_v29 = vsel %vm9_vm1, %v1392_v20, %v1048_v19  ;;  %v1412_v60 = vld [vmem:[%s2515_s0 + $0x7f] sm:$0x4]   ;;  %vm123_vm9 = vcmask 966560   ;;  %s1539_s28 = smov 2   ;;  %vm141_vm10 = vcmask 950160  }
  0x60   :  { %v1056_v40 = vsel %vm13_vm2, %v1393_v30, %v1052_v29  ;;  %v1413_v1 = vld [vmem:[%s2515_s0 + $0xbe] sm:$0x8]   ;;  %vm159_vm11 = vcmask 933760   ;;  %vm177_vm12 = vcmask 917360   ;;  %vm195_vm13 = vcmask 900960  }
  0x61   :  { %vm213_vm14 = vcmask 884560   ;;  %vm231_vm15 = vcmask 868160   ;;  %vm303_vm3 = vcmask 802560  }
  0x62   :  { %859 = vrot.lane.b32.xlu0 %v858_v31, %s1523_s6  ;;  %877 = vrot.lane.b32.xlu1 %v876_v34, %s1524_s13  ;;  %s1527_s13 = smov 26   ;;  %v1066_v31 = vsel %vm5_vm0, %v1395_v22, %v1394_v21  ;;  %v1400_v34 = vld [vmem:[%s2515_s0 + $0x82] sm:$0x4]  }
  0x63   :  { %v1070_v41 = vsel %vm9_vm1, %v1396_v32, %v1066_v31  ;;  %v1088_v43 = vsel %vm9_vm1, %v1400_v34, %v1084_v33 }
  0x64   :  { %v1074_v51 = vsel %vm13_vm2, %v1397_v42, %v1070_v41  ;;  %v1092_v53 = vsel %vm13_vm2, %v1401_v44, %v1088_v43 }
  0x66   :  { %895 = vrot.lane.b32.xlu0 %v894_v45, %s1525_s24  ;;  %913 = vrot.lane.b32.xlu1 %v912_v48, %s1526_s2  ;;  %s1529_s2 = smov 22   ;;  %v1102_v45 = vsel %vm5_vm0, %v1403_v36, %v1402_v35  ;;  %v1408_v48 = vld [vmem:[%s2515_s0 + $0x80] sm:$0x4]   ;;  %s1536_s24 = smov 8  }
  0x67   :  { %v1106_v54 = vsel %vm9_vm1, %v1404_v46, %v1102_v45  ;;  %v1124_v57 = vsel %vm9_vm1, %v1408_v48, %v1120_v47  ;;  %s1537_s0 = smov 6  }
  0x68   :  { %v1110_v61 = vsel %vm13_vm2, %v1405_v55, %v1106_v54  ;;  %v1128_v63 = vsel %vm13_vm2, %v1409_v58, %v1124_v57 }
  0x6a   :  { %931 = vrot.lane.b32.xlu0 %v930_v59, %s1527_s13  ;;  %949 = vrot.lane.b32.xlu1 %v948_v62, %s1528_s20  ;;  %s1531_s20 = smov 18   ;;  %v1138_v59 = vsel %vm5_vm0, %v1411_v50, %v1410_v49  ;;  %vm249_vm0 = vcmask 851760  }
  0x6b   :  { %v1142_v0 = vsel %vm9_vm1, %v1412_v60, %v1138_v59  ;;  %vm267_vm1 = vcmask 835360  }
  0x6c   :  { %v1146_v3 = vsel %vm13_vm2, %v1413_v1, %v1142_v0  ;;  %vm285_vm2 = vcmask 818960  }
  0x6e   :  { %967 = vrot.lane.b32.xlu0 %v966_v9, %s1529_s2  ;;  %985 = vrot.lane.b32.xlu1 %v984_v12, %s1530_s9  ;;  %s1533_s9 = smov 14  }
  0x72   :  { %1003 = vrot.lane.b32.xlu0 %v1002_v23, %s1531_s20  ;;  %1021 = vrot.lane.b32.xlu1 %v1020_v26, %s1532_s27  ;;  %s1538_s27 = smov 4  }
  0x76   :  { %1039 = vrot.lane.b32.xlu0 %v1038_v37, %s1533_s9  ;;  %1057 = vrot.lane.b32.xlu1 %v1056_v40, %s1534_s16 }
  0x78   :  { %v32_v52 = vpop.permute.xlu0 %31   ;;  %v68_v56 = vpop.permute.xlu1 %67  }
  0x79   :  { %34 = vst.msk [vmem:[#allocation0] sm:$0xf] %vm33_vm4, %v32_v52   ;;  %vm321_vm4 = vcmask 786160  }
  0x7a   :  { %1075 = vrot.lane.b32.xlu0 %v1074_v51, %s1535_s23  ;;  %1093 = vrot.lane.b32.xlu1 %v1092_v53, %s1536_s24 }
  0x7c   :  { %v50_v62 = vpop.permute.xlu0 %49   ;;  %v86_v2 = vpop.permute.xlu1 %85  }
  0x7d   :  { %52 = vst.msk [vmem:[#allocation0] sm:$0xf] %vm51_vm5, %v50_v62   ;;  %vm339_vm5 = vcmask 769760  }
  0x7e   :  { %70 = vst.msk [vmem:[#allocation0] sm:$0xf] %vm69_vm6, %v68_v56   ;;  %1111 = vrot.lane.b32.xlu0 %v1110_v61, %s1537_s0  ;;  %1129 = vrot.lane.b32.xlu1 %v1128_v63, %s1538_s27  ;;  %vm357_vm6 = vcmask 753360  }
  0x7f   :  { %88 = vst.msk [vmem:[#allocation0] sm:$0xf] %vm87_vm7, %v86_v2   ;;  %vm375_vm7 = vcmask 736960  }
  0x80   :  { %v104_v4 = vpop.permute.xlu0 %103   ;;  %v122_v5 = vpop.permute.xlu1 %121  }
  0x81   :  { %106 = vst.msk [vmem:[#allocation0] sm:$0xf] %vm105_vm8, %v104_v4   ;;  %vm393_vm8 = vcmask 720560  }
  0x82   :  { %1147 = vrot.lane.b32.xlu0 %v1146_v3, %s1539_s28  ;;  %124 = vst.msk [vmem:[#allocation0] sm:$0xf] %vm123_vm9, %v122_v5   ;;  %vm411_vm9 = vcmask 704160  }
  0x84   :  { %v140_v6 = vpop.permute.xlu0 %139   ;;  %v158_v7 = vpop.permute.xlu1 %157  }
  0x85   :  { %142 = vst.msk [vmem:[#allocation0] sm:$0xf] %vm141_vm10, %v140_v6   ;;  %vm429_vm10 = vcmask 687760  }
  0x86   :  { %160 = vst.msk [vmem:[#allocation0] sm:$0xf] %vm159_vm11, %v158_v7   ;;  %vm447_vm11 = vcmask 671360  }
  0x88   :  { %v176_v8 = vpop.permute.xlu0 %175   ;;  %v194_v9 = vpop.permute.xlu1 %193  }
  0x89   :  { %178 = vst.msk [vmem:[#allocation0] sm:$0xf] %vm177_vm12, %v176_v8   ;;  %vm465_vm12 = vcmask 654960  }
  0x8a   :  { %196 = vst.msk [vmem:[#allocation0] sm:$0xf] %vm195_vm13, %v194_v9   ;;  %vm483_vm13 = vcmask 638560  }
  0x8c   :  { %v212_v10 = vpop.permute.xlu0 %211   ;;  %v230_v11 = vpop.permute.xlu1 %229  }
  0x8d   :  { %214 = vst.msk [vmem:[#allocation0] sm:$0xf] %vm213_vm14, %v212_v10   ;;  %vm501_vm14 = vcmask 622160  }
  0x8e   :  { %232 = vst.msk [vmem:[#allocation0] sm:$0xf] %vm231_vm15, %v230_v11   ;;  %vm519_vm15 = vcmask 605760  }
  0x90   :  { %v248_v12 = vpop.permute.xlu0 %247   ;;  %v266_v13 = vpop.permute.xlu1 %265  }
  0x91   :  { %250 = vst.msk [vmem:[#allocation0] sm:$0xf] %vm249_vm0, %v248_v12   ;;  %vm537_vm0 = vcmask 589360  }
  0x92   :  { %268 = vst.msk [vmem:[#allocation0] sm:$0xf] %vm267_vm1, %v266_v13   ;;  %vm555_vm1 = vcmask 572960  }
  0x94   :  { %v284_v14 = vpop.permute.xlu0 %283   ;;  %v302_v15 = vpop.permute.xlu1 %301  }
  0x95   :  { %286 = vst.msk [vmem:[#allocation0] sm:$0xf] %vm285_vm2, %v284_v14   ;;  %vm573_vm2 = vcmask 556560  }
  0x96   :  { %304 = vst.msk [vmem:[#allocation0] sm:$0xf] %vm303_vm3, %v302_v15   ;;  %vm591_vm3 = vcmask 540160  }
  0x98   :  { %v320_v16 = vpop.permute.xlu0 %319   ;;  %v338_v17 = vpop.permute.xlu1 %337  }
  0x99   :  { %322 = vst.msk [vmem:[#allocation0] sm:$0xf] %vm321_vm4, %v320_v16   ;;  %vm609_vm4 = vcmask 523760  }
  0x9a   :  { %340 = vst.msk [vmem:[#allocation0] sm:$0xf] %vm339_vm5, %v338_v17   ;;  %vm627_vm5 = vcmask 507360  }
  0x9c   :  { %v356_v18 = vpop.permute.xlu0 %355   ;;  %v374_v19 = vpop.permute.xlu1 %373  }
  0x9d   :  { %358 = vst.msk [vmem:[#allocation0] sm:$0xf] %vm357_vm6, %v356_v18   ;;  %vm645_vm6 = vcmask 490960  }
  0x9e   :  { %376 = vst.msk [vmem:[#allocation0] sm:$0xf] %vm375_vm7, %v374_v19   ;;  %vm663_vm7 = vcmask 474560  }
  0xa0   :  { %v392_v20 = vpop.permute.xlu0 %391   ;;  %v410_v21 = vpop.permute.xlu1 %409  }
  0xa1   :  { %394 = vst.msk [vmem:[#allocation0] sm:$0xf] %vm393_vm8, %v392_v20   ;;  %vm681_vm8 = vcmask 458160  }
  0xa2   :  { %412 = vst.msk [vmem:[#allocation0] sm:$0xf] %vm411_vm9, %v410_v21   ;;  %vm699_vm9 = vcmask 441760  }
  0xa4   :  { %v428_v22 = vpop.permute.xlu0 %427   ;;  %v446_v23 = vpop.permute.xlu1 %445  }
  0xa5   :  { %430 = vst.msk [vmem:[#allocation0] sm:$0xf] %vm429_vm10, %v428_v22   ;;  %vm717_vm10 = vcmask 425360  }
  0xa6   :  { %448 = vst.msk [vmem:[#allocation0] sm:$0xf] %vm447_vm11, %v446_v23   ;;  %vm735_vm11 = vcmask 408960  }
  0xa8   :  { %v464_v24 = vpop.permute.xlu0 %463   ;;  %v482_v25 = vpop.permute.xlu1 %481  }
  0xa9   :  { %466 = vst.msk [vmem:[#allocation0] sm:$0xf] %vm465_vm12, %v464_v24   ;;  %vm753_vm12 = vcmask 392560  }
  0xaa   :  { %484 = vst.msk [vmem:[#allocation0] sm:$0xf] %vm483_vm13, %v482_v25   ;;  %vm771_vm13 = vcmask 376160  }
  0xac   :  { %v500_v26 = vpop.permute.xlu0 %499   ;;  %v518_v27 = vpop.permute.xlu1 %517  }
  0xad   :  { %502 = vst.msk [vmem:[#allocation0] sm:$0xf] %vm501_vm14, %v500_v26   ;;  %vm789_vm14 = vcmask 359760  }
  0xae   :  { %520 = vst.msk [vmem:[#allocation0] sm:$0xf] %vm519_vm15, %v518_v27   ;;  %vm807_vm15 = vcmask 343360  }
  0xb0   :  { %v536_v28 = vpop.permute.xlu0 %535   ;;  %v554_v29 = vpop.permute.xlu1 %553  }
  0xb1   :  { %538 = vst.msk [vmem:[#allocation0] sm:$0xf] %vm537_vm0, %v536_v28   ;;  %vm825_vm0 = vcmask 326960  }
  0xb2   :  { %556 = vst.msk [vmem:[#allocation0] sm:$0xf] %vm555_vm1, %v554_v29   ;;  %vm843_vm1 = vcmask 310560  }
  0xb4   :  { %v572_v30 = vpop.permute.xlu0 %571   ;;  %v590_v31 = vpop.permute.xlu1 %589  }
  0xb5   :  { %574 = vst.msk [vmem:[#allocation0] sm:$0xf] %vm573_vm2, %v572_v30   ;;  %vm861_vm2 = vcmask 294160  }
  0xb6   :  { %592 = vst.msk [vmem:[#allocation0] sm:$0xf] %vm591_vm3, %v590_v31   ;;  %vm879_vm3 = vcmask 277760  }
  0xb8   :  { %v608_v32 = vpop.permute.xlu0 %607   ;;  %v626_v33 = vpop.permute.xlu1 %625  }
  0xb9   :  { %610 = vst.msk [vmem:[#allocation0] sm:$0xf] %vm609_vm4, %v608_v32   ;;  %vm897_vm4 = vcmask 261360  }
  0xba   :  { %628 = vst.msk [vmem:[#allocation0] sm:$0xf] %vm627_vm5, %v626_v33   ;;  %vm915_vm5 = vcmask 244960  }
  0xbc   :  { %v644_v34 = vpop.permute.xlu0 %643   ;;  %v662_v35 = vpop.permute.xlu1 %661  }
  0xbd   :  { %646 = vst.msk [vmem:[#allocation0] sm:$0xf] %vm645_vm6, %v644_v34   ;;  %vm933_vm6 = vcmask 228560  }
  0xbe   :  { %664 = vst.msk [vmem:[#allocation0] sm:$0xf] %vm663_vm7, %v662_v35   ;;  %vm951_vm7 = vcmask 212160  }
  0xc0   :  { %v680_v36 = vpop.permute.xlu0 %679   ;;  %v698_v37 = vpop.permute.xlu1 %697  }
  0xc1   :  { %682 = vst.msk [vmem:[#allocation0] sm:$0xf] %vm681_vm8, %v680_v36   ;;  %vm969_vm8 = vcmask 195760  }
  0xc2   :  { %700 = vst.msk [vmem:[#allocation0] sm:$0xf] %vm699_vm9, %v698_v37   ;;  %vm987_vm9 = vcmask 179360  }
  0xc4   :  { %v716_v38 = vpop.permute.xlu0 %715   ;;  %v734_v39 = vpop.permute.xlu1 %733  }
  0xc5   :  { %718 = vst.msk [vmem:[#allocation0] sm:$0xf] %vm717_vm10, %v716_v38   ;;  %vm1005_vm10 = vcmask 162960  }
  0xc6   :  { %736 = vst.msk [vmem:[#allocation0] sm:$0xf] %vm735_vm11, %v734_v39   ;;  %vm1023_vm11 = vcmask 146560  }
  0xc8   :  { %v752_v40 = vpop.permute.xlu0 %751   ;;  %v770_v41 = vpop.permute.xlu1 %769  }
  0xc9   :  { %754 = vst.msk [vmem:[#allocation0] sm:$0xf] %vm753_vm12, %v752_v40   ;;  %vm1041_vm12 = vcmask 130160  }
  0xca   :  { %772 = vst.msk [vmem:[#allocation0] sm:$0xf] %vm771_vm13, %v770_v41   ;;  %vm1059_vm13 = vcmask 113760  }
  0xcc   :  { %v788_v42 = vpop.permute.xlu0 %787   ;;  %v806_v43 = vpop.permute.xlu1 %805  }
  0xcd   :  { %790 = vst.msk [vmem:[#allocation0] sm:$0xf] %vm789_vm14, %v788_v42   ;;  %vm1077_vm14 = vcmask 97360  }
  0xce   :  { %808 = vst.msk [vmem:[#allocation0] sm:$0xf] %vm807_vm15, %v806_v43   ;;  %vm1095_vm15 = vcmask 80960  }
  0xd0   :  { %v824_v44 = vpop.permute.xlu0 %823   ;;  %v842_v45 = vpop.permute.xlu1 %841  }
  0xd1   :  { %826 = vst.msk [vmem:[#allocation0] sm:$0xf] %vm825_vm0, %v824_v44   ;;  %vm1113_vm0 = vcmask 64560  }
  0xd2   :  { %844 = vst.msk [vmem:[#allocation0] sm:$0xf] %vm843_vm1, %v842_v45   ;;  %vm1131_vm1 = vcmask 48160  }
  0xd4   :  { %v860_v46 = vpop.permute.xlu0 %859   ;;  %v878_v47 = vpop.permute.xlu1 %877  }
  0xd5   :  { %862 = vst.msk [vmem:[#allocation0] sm:$0xf] %vm861_vm2, %v860_v46   ;;  %vm1149_vm2 = vcmask 31760  }
  0xd6   :  { %880 = vst.msk [vmem:[#allocation0] sm:$0xf] %vm879_vm3, %v878_v47  }
  0xd8   :  { %v896_v48 = vpop.permute.xlu0 %895   ;;  %v914_v49 = vpop.permute.xlu1 %913  }
  0xd9   :  { %898 = vst.msk [vmem:[#allocation0] sm:$0xf] %vm897_vm4, %v896_v48  }
  0xda   :  { %916 = vst.msk [vmem:[#allocation0] sm:$0xf] %vm915_vm5, %v914_v49  }
  0xdc   :  { %v932_v50 = vpop.permute.xlu0 %931   ;;  %v950_v51 = vpop.permute.xlu1 %949  }
  0xdd   :  { %934 = vst.msk [vmem:[#allocation0] sm:$0xf] %vm933_vm6, %v932_v50  }
  0xde   :  { %952 = vst.msk [vmem:[#allocation0] sm:$0xf] %vm951_vm7, %v950_v51  }
  0xe0   :  { %v968_v52 = vpop.permute.xlu0 %967   ;;  %v986_v53 = vpop.permute.xlu1 %985  }
  0xe1   :  { %970 = vst.msk [vmem:[#allocation0] sm:$0xf] %vm969_vm8, %v968_v52  }
  0xe2   :  { %988 = vst.msk [vmem:[#allocation0] sm:$0xf] %vm987_vm9, %v986_v53  }
  0xe4   :  { %v1004_v54 = vpop.permute.xlu0 %1003   ;;  %v1022_v55 = vpop.permute.xlu1 %1021  }
  0xe5   :  { %1006 = vst.msk [vmem:[#allocation0] sm:$0xf] %vm1005_vm10, %v1004_v54  }
  0xe6   :  { %1024 = vst.msk [vmem:[#allocation0] sm:$0xf] %vm1023_vm11, %v1022_v55  }
  0xe8   :  { %v1040_v56 = vpop.permute.xlu0 %1039   ;;  %v1058_v57 = vpop.permute.xlu1 %1057  }
  0xe9   :  { %1042 = vst.msk [vmem:[#allocation0] sm:$0xf] %vm1041_vm12, %v1040_v56  }
  0xea   :  { %1060 = vst.msk [vmem:[#allocation0] sm:$0xf] %vm1059_vm13, %v1058_v57  }
  0xec   :  { %v1076_v58 = vpop.permute.xlu0 %1075   ;;  %v1094_v59 = vpop.permute.xlu1 %1093  }
  0xed   :  { %1078 = vst.msk [vmem:[#allocation0] sm:$0xf] %vm1077_vm14, %v1076_v58  }
  0xee   :  { %1096 = vst.msk [vmem:[#allocation0] sm:$0xf] %vm1095_vm15, %v1094_v59  }
  0xf0   :  { %v1112_v60 = vpop.permute.xlu0 %1111   ;;  %v1130_v61 = vpop.permute.xlu1 %1129  }
  0xf1   :  { %1114 = vst.msk [vmem:[#allocation0] sm:$0xf] %vm1113_vm0, %v1112_v60  }
  0xf2   :  { %1132 = vst.msk [vmem:[#allocation0] sm:$0xf] %vm1131_vm1, %v1130_v61  }
  0xf4   :  { %v1148_v62 = vpop.permute.xlu0 %1147  }
  0xf5   :  { %1150 = vst.msk [vmem:[#allocation0] sm:$0xf] %vm1149_vm2, %v1148_v62  }
  0xfc   :  { %v1155_v63 = vld [vmem:[#allocation0] sm:$0xf] }
  0xfd   :  { %1158 = vst [vmem:[%s2516_s1] sm:$0xf] %v1155_v63 }

// kernel: moe_forward.1
= control target key start
LH: loop header
LB: loop body
LE: loop exit
PB: predicated region body
PF: predicated region fallthrough
CT: control target
= control target key end

     0   :  { %11 = vsyncpa [#allocation3], 0  ;;  %s8796_s0 = inlined_call_operand.vmem [shape: bf16[256,128], index: 0, kind: input, shape index: {}]   ;;  %s8797_s1 = inlined_call_operand.vmem [shape: bf16[8,128,128], index: 1, kind: input, shape index: {}]   ;;  %s8798_s2 = inlined_call_operand.vmem [shape: f32[8,1,128], index: 2, kind: input, shape index: {}]   ;;  %s8799_s3 = inlined_call_operand.vmem [shape: bf16[8,128,128], index: 3, kind: input, shape index: {}]   ;;  %s8800_s4 = inlined_call_operand.vmem [shape: f32[8,1,128], index: 4, kind: input, shape index: {}]   ;;  %s8801_s5 = inlined_call_operand.vmem [shape: f32[256,8], index: 5, kind: input, shape index: {}]   ;;  %s8802_s6 = inlined_call_operand.hbm [shape: f32[256,128], index: 6, kind: output, shape index: {}]  }
   0x1   :  { %13 = vsyncpa [#allocation3 + $0x1], 0  ;;  %s6439_s21 = smov 0   ;;  %s6441_s22 = smov 0  }
   0x2   :  { %s6443_s23 = smov 0   ;;  %s6445_s24 = smov 0  }
   0x3 LB: > { %s6460_s25 = sadd.s32 4294967295, %s6391_s24   ;;  %s4664_s26 = sadd.s32 4294967294, %s6391_s24   ;;  %s6391_s24 = sphi %s6445_s24, %s8930_s24   ;;  %s6387_s23 = sphi %s6443_s23, %s8929_s23   ;;  %s6383_s22 = sphi %s6441_s22, %s8928_s22   ;;  %s6379_s21 = sphi %s6439_s21, %s8927_s21  }
   0x4   : > { %s6464_s27 = sadd.s32 1, %s6391_s24   ;;  %s162_s28 = sadd.s32 1, %s6387_s23 }
   0x5   : > { %s159_s29 = ssub.s32 %s6391_s24, %s6464_s27  ;;  %p172_p0 = scmp.ne.s32.totalorder %s6387_s23, %s6383_s22 }
   0x6   : > { %p160_p1 = scmp.eq.s32.totalorder %s159_s29, 0  ;;  %p173_p2 = scmp.eq.s32.totalorder %s6460_s25, 1 }
   0x7   : > { %p178_p3 = scmp.ne.s32.totalorder %s6383_s22, %s6379_s21  ;;  %p179_p4 = scmp.eq.s32.totalorder %s4664_s26, 1 }
   0x8   : > { %s6475_s30 = scalar_select %p160_p1, %s6387_s23, %s162_s28  }
   0x9   : > { %p6477_p5 = por %p173_p2, %p172_p0  ;;  %p6481_p6 = por %p179_p4, %p178_p3 }
   0xa   : > { %p4667_p7 = scmp.ge.s32.totalorder %s6391_s24, 1  ;;  %p227_p8 = scmp.lt.s32.totalorder %s6391_s24, 3 }
   0xc   : > { %p228_p9 = pnand %p4667_p7, %p227_p8 }
   0xe   : > { %231 = sbr.rel (%p228_p9) target bundleno = 747 (0x2eb), region = 44 }
  0x13   : > { %v5902_v0 = vld [vmem:[%s8797_s1 + $0x38] sm:$0xff]   ;;  %s4669_s11 = sshll.u32 %s6460_s25, 4  ;;  %v5903_v1 = vld [vmem:[%s8797_s1 + $0x30] sm:$0xff]   ;;  %v5904_v2 = vld [vmem:[%s8797_s1 + $0x28] sm:$0xff]   ;;  %v6393_v57 = vmov 0   ;;  %s259_s17 = sand.u32 1, %s6383_s22  }
  0x14   : > { %p263_p10 = scmp.lt.s32.totalorder %s4669_s11, 31  ;;  %5325 = vmatprep.subr.bf16.mxu0 %v5902_v0  ;;  %v5905_v3 = vld [vmem:[%s8797_s1 + $0x20] sm:$0xff]   ;;  %v5906_v5 = vld [vmem:[%s8797_s1 + $0x18] sm:$0xff]   ;;  %v5907_v6 = vld [vmem:[%s8797_s1 + $0x10] sm:$0xff]   ;;  %5887 = vset.pattern.permute.xlu1 %v6393_v57  ;;  %s4668_s26 = sshll.u32 %s259_s17, 7 }
  0x15   : > { %5326 = vmatpush3.bf16.msra.mxu0 %v5902_v0  ;;  %v5908_v7 = vld [vmem:[%s8797_s1 + $0x8] sm:$0xff]   ;;  %v5909_v8 = vld [vmem:[%s8797_s1] sm:$0xff]   ;;  %v5912_v9 = vld [vmem:[%s8797_s1 + $0x78] sm:$0xff]   ;;  %5886 = vset.pattern.permute.xlu0 %v6393_v57  ;;  %s8646_s29 = scalar_lea.vmem [#allocation2], %s4668_s26  ;;  %s5068_s9 = sshll.u32 %s6460_s25, 11 }
  0x16   : > { %s8932_s11 = smov (!%p263_p10, %s4669_s11), 31  ;;  %5327 = vmatprep.subr.bf16.mxu0 %v5903_v1  ;;  %v5913_v12 = vld [vmem:[%s8797_s1 + $0x70] sm:$0xff]   ;;  %v5916_v13 = vld [vmem:[%s8797_s1 + $0x68] sm:$0xff]   ;;  %v5917_v16 = vld [vmem:[%s8797_s1 + $0x60] sm:$0xff]   ;;  %s8756_s25 = scalar_lea.sflag [#allocation3], %s259_s17 }
  0x17   : > { %s4670_s16 = sshll.u32 %s8932_s11, 2  ;;  %v5920_v17 = vld [vmem:[%s8797_s1 + $0x58] sm:$0xff]   ;;  %v5921_v20 = vld [vmem:[%s8797_s1 + $0x50] sm:$0xff]   ;;  %v5924_v21 = vld [vmem:[%s8797_s1 + $0x48] sm:$0xff]   ;;  %s4672_s18 = sshll.u32 %s8932_s11, 3 }
  0x18   : > { %s6503_s19 = scalar_lea.vmem %s8796_s0, %s4670_s16  ;;  %v5925_v23 = vld [vmem:[%s8797_s1 + $0x40] sm:$0xff]   ;;  %v5926_v24 = vld [vmem:[%s8797_s1 + $0xb8] sm:$0xff]   ;;  %v5927_v25 = vld [vmem:[%s8797_s1 + $0xb0] sm:$0xff]   ;;  %s6702_s28 = scalar_lea.vmem %s8801_s5, %s4672_s18 }
  0x19   : > { %5328 = vmatpush3.bf16.msra.mxu0 %v5903_v1  ;;  %v6509_v4 = vld [vmem:[%s6503_s19] sm:$0xff]   ;;  %v6528_v10 = vld [vmem:[%s6503_s19 + $0x8] sm:$0xff]   ;;  %v6531_v11 = vld [vmem:[%s6503_s19 + $0x10] sm:$0xff]   ;;  %s4590_s11 = sshll.u32 %s8646_s29, 4  ;;  %s6401_s13 = smov [#allocation2]   ;;  %s8750_s11 = int_to_ptr.vmem [resolvable:$true] %s4590_s11 }
  0x1a   : > { %5329 = vmatprep.subr.bf16.mxu0 %v5904_v2  ;;  %5341 = vmatprep.mubr.bf16.mxu0 %v6509_v4  ;;  %v6542_v14 = vld [vmem:[%s6503_s19 + $0x18] sm:$0xff]   ;;  %v6545_v15 = vld [vmem:[%s6503_s19 + $0x20] sm:$0xff]   ;;  %v6556_v18 = vld [vmem:[%s6503_s19 + $0x28] sm:$0xff]   ;;  %s6331_s12 = scalar_lea.vmem %s8750_s11, 2048  ;;  %s6335_s14 = sshll.u32 %s6401_s13, 4  ;;  %s6336_s14 = int_to_ptr.vmem [resolvable:$false] %s6335_s14 }
  0x1b   : > { %v6559_v19 = vld [vmem:[%s6503_s19 + $0x30] sm:$0xff]   ;;  %v6570_v22 = vld [vmem:[%s6503_s19 + $0x38] sm:$0xff]   ;;  %v5928_v26 = vld [vmem:[%s8797_s1 + $0xa8] sm:$0xff]   ;;  %p6332_p11 = scmp.ne.s32.totalorder %s8750_s11, %s6331_s12  ;;  %s6337_s15 = scalar_lea.vmem %s6336_s14, 4096 }
  0x1c   : > { %v5929_v27 = vld [vmem:[%s8797_s1 + $0xa0] sm:$0xff]   ;;  %v5930_v28 = vld [vmem:[%s8797_s1 + $0x98] sm:$0xff]   ;;  %v5931_v29 = vld [vmem:[%s8797_s1 + $0x90] sm:$0xff]   ;;  %p6338_p0 = scmp.lt.s32.totalorder %s8750_s11, %s6336_s14  ;;  %p6339_p1 = scmp.lt.s32.totalorder %s6337_s15, %s6331_s12 }
  0x1d   : > { %5330 = vmatpush3.bf16.msra.mxu0 %v5904_v2  ;;  %v5932_v30 = vld [vmem:[%s8797_s1 + $0x88] sm:$0xff]   ;;  %v5933_v31 = vld [vmem:[%s8797_s1 + $0x80] sm:$0xff]   ;;  %v5934_v32 = vld [vmem:[%s8797_s1 + $0xf8] sm:$0xff]   ;;  %p6333_p12 = pnand %p6332_p11, %p6477_p5 }
  0x1e   : > { %5331 = vmatprep.subr.bf16.mxu0 %v5905_v3  ;;  %v5935_v33 = vld [vmem:[%s8797_s1 + $0xf0] sm:$0xff]   ;;  %v5966_v34 = vld [vmem:[%s8799_s3 + $0x38] sm:$0xff]   ;;  %v5936_v35 = vld [vmem:[%s8797_s1 + $0xe8] sm:$0xff]   ;;  %p6340_p2 = por %p6339_p1, %p6338_p0 }
  0x1f   : > { %5357 = vmatprep.subr.bf16.mxu1 %v5966_v34  ;;  %v5968_v36 = vld [vmem:[%s8799_s3 + $0x30] sm:$0xff]   ;;  %v5937_v37 = vld [vmem:[%s8797_s1 + $0xe0] sm:$0xff]   ;;  %v5970_v38 = vld [vmem:[%s8799_s3 + $0x28] sm:$0xff]   ;;  %p6334_p13 = pneg %p6333_p12 }
  0x20   : > { %5358 = vmatpush3.bf16.msra.mxu1 %v5966_v34  ;;  %v5938_v39 = vld [vmem:[%s8797_s1 + $0xd8] sm:$0xff]   ;;  %v5972_v40 = vld [vmem:[%s8799_s3 + $0x20] sm:$0xff]   ;;  %v5939_v41 = vld [vmem:[%s8797_s1 + $0xd0] sm:$0xff]   ;;  %v6395_v34 = vmov 2  }
  0x21   : > { %5332 = vmatpush3.bf16.msra.mxu0 %v5905_v3  ;;  %5359 = vmatprep.subr.bf16.mxu1 %v5968_v36  ;;  %v5974_v42 = vld [vmem:[%s8799_s3 + $0x18] sm:$0xff]   ;;  %v5940_v43 = vld [vmem:[%s8797_s1 + $0xc8] sm:$0xff]   ;;  %v5976_v44 = vld [vmem:[%s8799_s3 + $0x10] sm:$0xff]   ;;  %p6341_p3 = pnand %p6340_p2, %p6334_p13 }
  0x22   : > { %5333 = vmatprep.subr.bf16.mxu0 %v5906_v5  ;;  %v5941_v45 = vld [vmem:[%s8797_s1 + $0xc0] sm:$0xff]   ;;  %v5978_v46 = vld [vmem:[%s8799_s3 + $0x8] sm:$0xff]   ;;  %v5942_v47 = vld [vmem:[%s8797_s1 + $0x138] sm:$0xff]  }
  0x23   : > { %v5980_v48 = vld [vmem:[%s8799_s3] sm:$0xff]   ;;  %v5943_v49 = vld [vmem:[%s8797_s1 + $0x130] sm:$0xff]   ;;  %v6674_v50 = vld [vmem:[%s8799_s3 + $0x78] sm:$0xff]  }
  0x24   : > { %5360 = vmatpush3.bf16.msra.mxu1 %v5968_v36  ;;  %v5944_v51 = vld [vmem:[%s8797_s1 + $0x128] sm:$0xff]   ;;  %v5945_v52 = vld [vmem:[%s8797_s1 + $0x120] sm:$0xff]   ;;  %v5946_v53 = vld [vmem:[%s8797_s1 + $0x118] sm:$0xff]  }
  0x25   : > { %5334 = vmatpush3.bf16.msra.mxu0 %v5906_v5  ;;  %5361 = vmatprep.subr.bf16.mxu1 %v5970_v38  ;;  %v5947_v54 = vld [vmem:[%s8797_s1 + $0x110] sm:$0xff]   ;;  %v5948_v55 = vld [vmem:[%s8797_s1 + $0x108] sm:$0xff]   ;;  %v5949_v56 = vld [vmem:[%s8797_s1 + $0x100] sm:$0xff]  }
  0x26   : > { %5335 = vmatprep.subr.bf16.mxu0 %v5907_v6  ;;  %v6708_v58 = vld [vmem:[%s6702_s28 + $0x10] sm:$0xff]  ;;  %v5950_v59 = vld [vmem:[%s8797_s1 + $0x178] sm:$0xff]   ;;  %v6724_v62 = vld [vmem:[%s6702_s28 + $0x28] sm:$0xff] }
  0x27   : > { %792 = vperm.xlu1 %5887, %v6708_v58   ;;  %v6717_v60 = vld [vmem:[%s6702_s28 + $0x18] sm:$0xff]  ;;  %v5951_v61 = vld [vmem:[%s8797_s1 + $0x170] sm:$0xff]   ;;  %v5952_v63 = vld [vmem:[%s8797_s1 + $0x168] sm:$0xff]  }
  0x28   : > { %5362 = vmatpush3.bf16.msra.mxu1 %v5970_v38  ;;  %v6733_v0 = vld [vmem:[%s6702_s28 + $0x38] sm:$0xff]  ;;  %v5953_v1 = vld [vmem:[%s8797_s1 + $0x160] sm:$0xff]   ;;  %v6740_v2 = vld [vmem:[%s6702_s28 + $0x48] sm:$0xff] }
  0x29   : > { %5336 = vmatpush3.bf16.msra.mxu0 %v5907_v6  ;;  %5363 = vmatprep.subr.bf16.mxu1 %v5972_v40  ;;  %v5954_v3 = vld [vmem:[%s8797_s1 + $0x158] sm:$0xff]   ;;  %v5955_v6 = vld [vmem:[%s8797_s1 + $0x150] sm:$0xff]  }
  0x2a   : > { %5337 = vmatprep.subr.bf16.mxu0 %v5908_v7  ;;  %v6749_v5 = vld [vmem:[%s6702_s28 + $0x58] sm:$0xff]  ;;  %v5969_v38 = vld [vmem:[%s8797_s1 + $0x1f0] sm:$0xff]  }
  0x2b   : > { %797 = vperm.xlu1 %5887, %v6717_v60   ;;  %v5967_v36 = vld [vmem:[%s8797_s1 + $0x1f8] sm:$0xff]  }
  0x2c   : > { %5364 = vmatpush3.bf16.msra.mxu1 %v5972_v40 }
  0x2d   : > { %5338 = vmatpush3.bf16.msra.mxu0 %v5908_v7  ;;  %5365 = vmatprep.subr.bf16.mxu1 %v5974_v42  ;;  %v6756_v7 = vld [vmem:[%s6702_s28 + $0x68] sm:$0xff] }
  0x2e   : > { %5339 = vmatprep.subr.bf16.mxu0 %v5909_v8 }
  0x2f   : > { %807 = vperm.xlu1 %5887, %v6724_v62  }
  0x30   : > { %5366 = vmatpush3.bf16.msra.mxu1 %v5974_v42  ;;  %v5971_v42 = vld [vmem:[%s8797_s1 + $0x1e8] sm:$0xff]  }
  0x31   : > { %5340 = vmatpush3.bf16.msra.mxu0 %v5909_v8  ;;  %5367 = vmatprep.subr.bf16.mxu1 %v5976_v44  ;;  %v5956_v8 = vld [vmem:[%s8797_s1 + $0x148] sm:$0xff]  }
  0x32   : > { %5389 = vmatprep.subr.bf16.mxu0 %v5912_v9 }
  0x33   : > { %817 = vperm.xlu1 %5887, %v6733_v0  }
  0x34   : > { %5342 = vmatmul.mubr.bf16.vlgmr.msra.gmra.mxu0 %v6528_v10  ;;  %5368 = vmatpush3.bf16.msra.mxu1 %v5976_v44 }
  0x35   : > { %5390 = vmatpush3.bf16.msra.mxu0 %v5912_v9  ;;  %5345 = vmatprep.mubr.bf16.mxu0 %v6531_v11  ;;  %v6765_v9 = vld [vmem:[%s6702_s28 + $0x78] sm:$0xff] }
  0x36   : > { %5391 = vmatprep.subr.bf16.mxu0 %v5913_v12  ;;  %5369 = vmatprep.subr.bf16.mxu1 %v5978_v46 }
  0x37   : > { %827 = vperm.xlu1 %5887, %v6740_v2  }
  0x38   : > { %5370 = vmatpush3.bf16.msra.mxu1 %v5978_v46 }
  0x39   : > { %5392 = vmatpush3.bf16.msra.mxu0 %v5913_v12  ;;  %5371 = vmatprep.subr.bf16.mxu1 %v5980_v48  ;;  %v6768_v12 = vld [vmem:[%s6702_s28] sm:$0xff] }
  0x3a   : > { %5393 = vmatprep.subr.bf16.mxu0 %v5916_v13  ;;  %782 = vperm.xlu0 %5886, %v6768_v12  }
  0x3b   : > { %837 = vperm.xlu1 %5887, %v6749_v5  }
  0x3c   : > { %5346 = vmatmul.mubr.bf16.gmra.mxu0 %v6542_v14  ;;  %5372 = vmatpush3.bf16.msra.mxu1 %v5980_v48 }
  0x3d   : > { %5394 = vmatpush3.bf16.msra.mxu0 %v5916_v13  ;;  %5349 = vmatprep.mubr.bf16.mxu0 %v6545_v15  ;;  %v5957_v13 = vld [vmem:[%s8797_s1 + $0x140] sm:$0xff]  }
  0x3e   : > { %5395 = vmatprep.subr.bf16.mxu0 %v5917_v16  ;;  %5421 = vmatprep.subr.bf16.mxu1 %v6674_v50 }
  0x3f   : > { %847 = vperm.xlu1 %5887, %v6756_v7  }
  0x41   : > { %5396 = vmatpush3.bf16.msra.mxu0 %v5917_v16  ;;  %v6776_v16 = vld [vmem:[%s6702_s28 + $0x8] sm:$0xff] }
  0x42   : > { %5397 = vmatprep.subr.bf16.mxu0 %v5920_v17  ;;  %787 = vperm.xlu0 %5886, %v6776_v16  }
  0x43   : > { %857 = vperm.xlu1 %5887, %v6765_v9  }
  0x44   : > { %5350 = vmatmul.mubr.bf16.gmra.mxu0 %v6556_v18 }
  0x45   : > { %5398 = vmatpush3.bf16.msra.mxu0 %v5920_v17  ;;  %5353 = vmatprep.mubr.bf16.mxu0 %v6559_v19  ;;  %v6394_v17 = vmov 1  }
  0x46   : > { %5399 = vmatprep.subr.bf16.mxu0 %v5921_v20 }
  0x47   : > { %5889 = vset.pattern.permute.xlu1 %v6394_v17 }
  0x48   : > { %1325 = vperm.xlu1 %5889, %v6776_v16  }
  0x49   : > { %5400 = vmatpush3.bf16.msra.mxu0 %v5921_v20  ;;  %v5958_v20 = vld [vmem:[%s8797_s1 + $0x1b8] sm:$0xff]  }
  0x4a   : > { %5401 = vmatprep.subr.bf16.mxu0 %v5924_v21 }
  0x4c   : > { %5354 = vmatmul.mubr.bf16.gmra.mxu0 %v6570_v22  ;;  %1329 = vperm.xlu1 %5889, %v6708_v58  }
  0x4d   : > { %5402 = vmatpush3.bf16.msra.mxu0 %v5924_v21  ;;  %5405 = vmatprep.mubr.bf16.mxu0 %v6509_v4  ;;  %v6786_v21 = vld [vmem:[%s6702_s28 + $0x20] sm:$0xff] }
  0x4e   : > { %5403 = vmatprep.subr.bf16.mxu0 %v5925_v23  ;;  %802 = vperm.xlu0 %5886, %v6786_v21  }
  0x50   : > { %1337 = vperm.xlu1 %5889, %v6786_v21  }
  0x51   : > { %5404 = vmatpush3.bf16.msra.mxu0 %v5925_v23  ;;  %v5959_v23 = vld [vmem:[%s8797_s1 + $0x1b0] sm:$0xff]  }
  0x52   : > { %5453 = vmatprep.subr.bf16.mxu0 %v5926_v24 }
  0x54   : > { %5406 = vmatmul.mubr.bf16.vlgmr.msra.gmra.mxu0 %v6528_v10 }
  0x55   : > { %5454 = vmatpush3.bf16.msra.mxu0 %v5926_v24  ;;  %5409 = vmatprep.mubr.bf16.mxu0 %v6531_v11  ;;  %v5960_v24 = vld [vmem:[%s8797_s1 + $0x1a8] sm:$0xff]  }
  0x56   : > { %5455 = vmatprep.subr.bf16.mxu0 %v5927_v25 }
  0x59   : > { %5456 = vmatpush3.bf16.msra.mxu0 %v5927_v25  ;;  %v6804_v25 = vld [vmem:[%s6702_s28 + $0x40] sm:$0xff] }
  0x5a   : > { %5457 = vmatprep.subr.bf16.mxu0 %v5928_v26 }
  0x5c   : > { %5410 = vmatmul.mubr.bf16.gmra.mxu0 %v6542_v14 }
  0x5d   : > { %5458 = vmatpush3.bf16.msra.mxu0 %v5928_v26  ;;  %5413 = vmatprep.mubr.bf16.mxu0 %v6545_v15  ;;  %v5961_v26 = vld [vmem:[%s8797_s1 + $0x1a0] sm:$0xff]  }
  0x5e   : > { %5459 = vmatprep.subr.bf16.mxu0 %v5929_v27 }
  0x61   : > { %5460 = vmatpush3.bf16.msra.mxu0 %v5929_v27  ;;  %v6812_v27 = vld [vmem:[%s6702_s28 + $0x50] sm:$0xff] }
  0x62   : > { %5461 = vmatprep.subr.bf16.mxu0 %v5930_v28 }
  0x64   : > { %5414 = vmatmul.mubr.bf16.gmra.mxu0 %v6556_v18 }
  0x65   : > { %5462 = vmatpush3.bf16.msra.mxu0 %v5930_v28  ;;  %5417 = vmatprep.mubr.bf16.mxu0 %v6559_v19  ;;  %v5962_v28 = vld [vmem:[%s8797_s1 + $0x198] sm:$0xff]  }
  0x66   : > { %5463 = vmatprep.subr.bf16.mxu0 %v5931_v29 }
  0x69   : > { %5464 = vmatpush3.bf16.msra.mxu0 %v5931_v29  ;;  %v6822_v29 = vld [vmem:[%s6702_s28 + $0x60] sm:$0xff] }
  0x6a   : > { %5465 = vmatprep.subr.bf16.mxu0 %v5932_v30 }
  0x6c   : > { %5418 = vmatmul.mubr.bf16.gmra.mxu0 %v6570_v22 }
  0x6d   : > { %5466 = vmatpush3.bf16.msra.mxu0 %v5932_v30  ;;  %5469 = vmatprep.mubr.bf16.mxu0 %v6509_v4  ;;  %v5963_v30 = vld [vmem:[%s8797_s1 + $0x190] sm:$0xff]  }
  0x6e   : > { %5467 = vmatprep.subr.bf16.mxu0 %v5933_v31 }
  0x71   : > { %5468 = vmatpush3.bf16.msra.mxu0 %v5933_v31  ;;  %v6830_v31 = vld [vmem:[%s6702_s28 + $0x70] sm:$0xff] }
  0x72   : > { %5517 = vmatprep.subr.bf16.mxu0 %v5934_v32 }
  0x74   : > { %5470 = vmatmul.mubr.bf16.vlgmr.msra.gmra.mxu0 %v6528_v10 }
  0x75   : > { %5518 = vmatpush3.bf16.msra.mxu0 %v5934_v32  ;;  %5473 = vmatprep.mubr.bf16.mxu0 %v6531_v11  ;;  %v5964_v32 = vld [vmem:[%s8797_s1 + $0x188] sm:$0xff]  }
  0x76   : > { %5519 = vmatprep.subr.bf16.mxu0 %v5935_v33 }
  0x79   : > { %5520 = vmatpush3.bf16.msra.mxu0 %v5935_v33  ;;  %v5965_v33 = vld [vmem:[%s8797_s1 + $0x180] sm:$0xff]  }
  0x7a   : > { %5521 = vmatprep.subr.bf16.mxu0 %v5936_v35 }
  0x7c   : > { %5474 = vmatmul.mubr.bf16.gmra.mxu0 %v6542_v14 }
  0x7d   : > { %5522 = vmatpush3.bf16.msra.mxu0 %v5936_v35  ;;  %5477 = vmatprep.mubr.bf16.mxu0 %v6545_v15  ;;  %v6847_v35 = vld [vmem:[%s6503_s19] sm:$0xff]  }
  0x7e   : > { %5523 = vmatprep.subr.bf16.mxu0 %v5937_v37 }
  0x81   : > { %5524 = vmatpush3.bf16.msra.mxu0 %v5937_v37  ;;  %v6858_v37 = vld [vmem:[%s8798_s2] ss:$0 sm:$0xff] }
  0x82   : > { %5525 = vmatprep.subr.bf16.mxu0 %v5938_v39 }
  0x84   : > { %5478 = vmatmul.mubr.bf16.gmra.mxu0 %v6556_v18 }
  0x85   : > { %5526 = vmatpush3.bf16.msra.mxu0 %v5938_v39  ;;  %5481 = vmatprep.mubr.bf16.mxu0 %v6559_v19 }
  0x86   : > { %5527 = vmatprep.subr.bf16.mxu0 %v5939_v41 }
  0x89   : > { %5528 = vmatpush3.bf16.msra.mxu0 %v5939_v41 }
  0x8a   : > { %5529 = vmatprep.subr.bf16.mxu0 %v5940_v43 }
  0x8c   : > { %5482 = vmatmul.mubr.bf16.gmra.mxu0 %v6570_v22 }
  0x8d   : > { %5530 = vmatpush3.bf16.msra.mxu0 %v5940_v43  ;;  %5533 = vmatprep.mubr.bf16.mxu0 %v6509_v4 }
  0x8e   : > { %5531 = vmatprep.subr.bf16.mxu0 %v5941_v45 }
  0x91   : > { %5532 = vmatpush3.bf16.msra.mxu0 %v5941_v45 }
  0x92   : > { %5581 = vmatprep.subr.bf16.mxu0 %v5942_v47 }
  0x94   : > { %5534 = vmatmul.mubr.bf16.vlgmr.msra.gmra.mxu0 %v6528_v10 }
  0x95   : > { %5582 = vmatpush3.bf16.msra.mxu0 %v5942_v47  ;;  %5537 = vmatprep.mubr.bf16.mxu0 %v6531_v11  ;;  %v5973_v47 = vld [vmem:[%s8797_s1 + $0x1e0] sm:$0xff]  }
  0x96   : > { %5583 = vmatprep.subr.bf16.mxu0 %v5943_v49 }
  0x99   : > { %5584 = vmatpush3.bf16.msra.mxu0 %v5943_v49 }
  0x9a   : > { %5585 = vmatprep.subr.bf16.mxu0 %v5944_v51 }
  0x9c   : > { %5538 = vmatmul.mubr.bf16.gmra.mxu0 %v6542_v14 }
  0x9d   : > { %5586 = vmatpush3.bf16.msra.mxu0 %v5944_v51  ;;  %5541 = vmatprep.mubr.bf16.mxu0 %v6545_v15 }
  0x9e   : > { %5587 = vmatprep.subr.bf16.mxu0 %v5945_v52 }
  0xa1   : > { %5588 = vmatpush3.bf16.msra.mxu0 %v5945_v52 }
  0xa2   : > { %5589 = vmatprep.subr.bf16.mxu0 %v5946_v53 }
  0xa4   : > { %5542 = vmatmul.mubr.bf16.gmra.mxu0 %v6556_v18 }
  0xa5   : > { %5590 = vmatpush3.bf16.msra.mxu0 %v5946_v53  ;;  %5545 = vmatprep.mubr.bf16.mxu0 %v6559_v19 }
  0xa6   : > { %5591 = vmatprep.subr.bf16.mxu0 %v5947_v54 }
  0xa9   : > { %5592 = vmatpush3.bf16.msra.mxu0 %v5947_v54 }
  0xaa   : > { %5593 = vmatprep.subr.bf16.mxu0 %v5948_v55 }
  0xac   : > { %5546 = vmatmul.mubr.bf16.gmra.mxu0 %v6570_v22 }
  0xad   : > { %5594 = vmatpush3.bf16.msra.mxu0 %v5948_v55  ;;  %5597 = vmatprep.mubr.bf16.mxu0 %v6509_v4  ;;  %v5975_v55 = vld [vmem:[%s8797_s1 + $0x1d8] sm:$0xff]  }
  0xae   : > { %5595 = vmatprep.subr.bf16.mxu0 %v5949_v56 }
  0xb1   : > { %5596 = vmatpush3.bf16.msra.mxu0 %v5949_v56 }
  0xb2   : > { %5645 = vmatprep.subr.bf16.mxu0 %v5950_v59 }
  0xb4   : > { %5598 = vmatmul.mubr.bf16.vlgmr.msra.gmra.mxu0 %v6528_v10 }
  0xb5   : > { %5646 = vmatpush3.bf16.msra.mxu0 %v5950_v59  ;;  %5601 = vmatprep.mubr.bf16.mxu0 %v6531_v11 }
  0xb6   : > { %5647 = vmatprep.subr.bf16.mxu0 %v5951_v61 }
  0xb9   : > { %5648 = vmatpush3.bf16.msra.mxu0 %v5951_v61 }
  0xba   : > { %5649 = vmatprep.subr.bf16.mxu0 %v5952_v63 }
  0xbc   : > { %5602 = vmatmul.mubr.bf16.gmra.mxu0 %v6542_v14 }
  0xbd   : > { %5650 = vmatpush3.bf16.msra.mxu0 %v5952_v63  ;;  %5605 = vmatprep.mubr.bf16.mxu0 %v6545_v15  ;;  %v5977_v63 = vld [vmem:[%s8797_s1 + $0x1d0] sm:$0xff]  }
  0xbe   : > { %5651 = vmatprep.subr.bf16.mxu0 %v5953_v1 }
  0xc1   : > { %5652 = vmatpush3.bf16.msra.mxu0 %v5953_v1 }
  0xc2   : > { %5653 = vmatprep.subr.bf16.mxu0 %v5954_v3 }
  0xc4   : > { %5606 = vmatmul.mubr.bf16.gmra.mxu0 %v6556_v18 }
  0xc5   : > { %5654 = vmatpush3.bf16.msra.mxu0 %v5954_v3  ;;  %5609 = vmatprep.mubr.bf16.mxu0 %v6559_v19 }
  0xc6   : > { %5655 = vmatprep.subr.bf16.mxu0 %v5955_v6 }
  0xc9   : > { %5656 = vmatpush3.bf16.msra.mxu0 %v5955_v6 }
  0xca   : > { %5657 = vmatprep.subr.bf16.mxu0 %v5956_v8 }
  0xcc   : > { %5610 = vmatmul.mubr.bf16.gmra.mxu0 %v6570_v22 }
  0xcd   : > { %5658 = vmatpush3.bf16.msra.mxu0 %v5956_v8  ;;  %5661 = vmatprep.mubr.bf16.mxu0 %v6509_v4  ;;  %v6794_v4 = vld [vmem:[%s6702_s28 + $0x30] sm:$0xff] }
  0xce   : > { %5659 = vmatprep.subr.bf16.mxu0 %v5957_v13  ;;  %812 = vperm.xlu0 %5886, %v6794_v4  }
  0xcf   : > { %1345 = vperm.xlu1 %5889, %v6794_v4  }
  0xd1   : > { %5660 = vmatpush3.bf16.msra.mxu0 %v5957_v13 }
  0xd2   : > { %5709 = vmatprep.subr.bf16.mxu0 %v5958_v20  ;;  %822 = vperm.xlu0 %5886, %v6804_v25  }
  0xd3   : > { %1353 = vperm.xlu1 %5889, %v6804_v25  }
  0xd4   : > { %5662 = vmatmul.mubr.bf16.vlgmr.msra.gmra.mxu0 %v6528_v10 }
  0xd5   : > { %5710 = vmatpush3.bf16.msra.mxu0 %v5958_v20  ;;  %5665 = vmatprep.mubr.bf16.mxu0 %v6531_v11  ;;  %v5979_v20 = vld [vmem:[%s8797_s1 + $0x1c8] sm:$0xff]  }
  0xd6   : > { %5711 = vmatprep.subr.bf16.mxu0 %v5959_v23  ;;  %832 = vperm.xlu0 %5886, %v6812_v27  }
  0xd7   : > { %1361 = vperm.xlu1 %5889, %v6812_v27  }
  0xd9   : > { %5712 = vmatpush3.bf16.msra.mxu0 %v5959_v23 }
  0xda   : > { %5713 = vmatprep.subr.bf16.mxu0 %v5960_v24  ;;  %842 = vperm.xlu0 %5886, %v6822_v29  }
  0xdb   : > { %1369 = vperm.xlu1 %5889, %v6822_v29  }
  0xdc   : > { %5666 = vmatmul.mubr.bf16.gmra.mxu0 %v6542_v14 }
  0xdd   : > { %5714 = vmatpush3.bf16.msra.mxu0 %v5960_v24  ;;  %5669 = vmatprep.mubr.bf16.mxu0 %v6545_v15 }
  0xde   : > { %5715 = vmatprep.subr.bf16.mxu0 %v5961_v26  ;;  %852 = vperm.xlu0 %5886, %v6830_v31  }
  0xdf   : > { %1377 = vperm.xlu1 %5889, %v6830_v31  }
  0xe1   : > { %5716 = vmatpush3.bf16.msra.mxu0 %v5961_v26 }
  0xe2   : > { %5717 = vmatprep.subr.bf16.mxu0 %v5962_v28  ;;  %5888 = vset.pattern.permute.xlu0 %v6394_v17 }
  0xe3   : > { %1321 = vperm.xlu0 %5888, %v6768_v12   ;;  %5890 = vset.pattern.permute.xlu1 %v6395_v34 }
  0xe4   : > { %5670 = vmatmul.mubr.bf16.gmra.mxu0 %v6556_v18  ;;  %1845 = vperm.xlu1 %5890, %v6768_v12  }
  0xe5   : > { %5718 = vmatpush3.bf16.msra.mxu0 %v5962_v28  ;;  %5673 = vmatprep.mubr.bf16.mxu0 %v6559_v19 }
  0xe6   : > { %5719 = vmatprep.subr.bf16.mxu0 %v5963_v30 }
  0xe7   : > { %1333 = vperm.xlu0 %5888, %v6717_v60  }
  0xe8   : > { %1853 = vperm.xlu1 %5890, %v6708_v58  }
  0xe9   : > { %5720 = vmatpush3.bf16.msra.mxu0 %v5963_v30 }
  0xea   : > { %5721 = vmatprep.subr.bf16.mxu0 %v5964_v32 }
  0xeb   : > { %1341 = vperm.xlu0 %5888, %v6724_v62  }
  0xec   : > { %5674 = vmatmul.mubr.bf16.gmra.mxu0 %v6570_v22  ;;  %1857 = vperm.xlu1 %5890, %v6717_v60  }
  0xed   : > { %5722 = vmatpush3.bf16.msra.mxu0 %v5964_v32  ;;  %5725 = vmatprep.mubr.bf16.mxu0 %v6847_v35 }
  0xee   : > { %5723 = vmatprep.subr.bf16.mxu0 %v5965_v33 }
  0xef   : > { %1349 = vperm.xlu0 %5888, %v6733_v0  }
  0xf0   : > { %1865 = vperm.xlu1 %5890, %v6724_v62  }
  0xf1   : > { %5724 = vmatpush3.bf16.msra.mxu0 %v5965_v33 }
  0xf2   : > { %5773 = vmatprep.subr.bf16.mxu0 %v5967_v36 }
  0xf3   : > { %1357 = vperm.xlu0 %5888, %v6740_v2  }
  0xf4   : > { %v5343_v39 = vpop.f32.mrf.mxu0  ;;  %5726 = vmatmul.mubr.bf16.vlgmr.msra.gmra.mxu0 %v6528_v10  ;;  %1873 = vperm.xlu1 %5890, %v6733_v0  }
  0xf5   : > { %v6867_v40 = vadd.f32 %v5343_v39, %v6858_v37  ;;  %5774 = vmatpush3.bf16.msra.mxu0 %v5967_v36  ;;  %5729 = vmatprep.mubr.bf16.mxu0 %v6531_v11  ;;  %v5981_v36 = vld [vmem:[%s8797_s1 + $0x1c0] sm:$0xff]  }
  0xf6   : > { %v461_v41 = vpop.f32.mrf.mxu0  ;;  %5775 = vmatprep.subr.bf16.mxu0 %v5969_v38 }
  0xf7   : > { %v542_v43 = vmul.f32 0.70710677, %v6867_v40  ;;  %v6876_v44 = vadd.f32 %v6858_v37, %v461_v41  ;;  %1365 = vperm.xlu0 %5888, %v6749_v5  }
  0xf8   : > { %v5344_v10 = vpop.f32.mrf.mxu0  ;;  %1881 = vperm.xlu1 %5890, %v6740_v2  }
  0xf9   : > { %v540_v45 = vmul.f32 0.70710677, %v6876_v44  ;;  %v6881_v11 = vadd.f32 %v5344_v10, %v6858_v37  ;;  %5776 = vmatpush3.bf16.msra.mxu0 %v5969_v38  ;;  %6038 = verf.f32 %v542_v43 }
  0xfa   : > { %v464_v46 = vpop.f32.mrf.mxu0  ;;  %5777 = vmatprep.subr.bf16.mxu0 %v5971_v42 }
  0xfb   : > { %v543_v48 = vmul.f32 0.70710677, %v6881_v11  ;;  %v6889_v49 = vadd.f32 %v6858_v37, %v464_v46  ;;  %6040 = verf.f32 %v540_v45  ;;  %1373 = vperm.xlu0 %5888, %v6756_v7  }
  0xfc   : > { %v5347_v51 = vpop.f32.mrf.mxu0  ;;  %5730 = vmatmul.mubr.bf16.gmra.mxu0 %v6542_v14  ;;  %1889 = vperm.xlu1 %5890, %v6749_v5  }
  0xfd   : > { %6042 = verf.f32 %v543_v48  ;;  %v541_v52 = vmul.f32 0.70710677, %v6889_v49  ;;  %v6895_v53 = vadd.f32 %v5347_v51, %v6858_v37  ;;  %5778 = vmatpush3.bf16.msra.mxu0 %v5971_v42  ;;  %5733 = vmatprep.mubr.bf16.mxu0 %v6545_v15  ;;  %v525_v48 = vmul.f32 0.5, %v6889_v49 }
  0xfe   : > { %v477_v54 = vpop.f32.mrf.mxu0  ;;  %5779 = vmatprep.subr.bf16.mxu0 %v5973_v47 }
  0xff   : > { %6044 = verf.f32 %v541_v52  ;;  %v546_v14 = vmul.f32 0.70710677, %v6895_v53  ;;  %v6904_v56 = vadd.f32 %v6858_v37, %v477_v54  ;;  %1381 = vperm.xlu0 %5888, %v6765_v9   ;;  %v526_v54 = vmul.f32 0.5, %v6867_v40 }
 0x100   : > { %v5348_v57 = vpop.f32.mrf.mxu0  ;;  %1897 = vperm.xlu1 %5890, %v6756_v7  }
 0x101   : > { %v544_v59 = vmul.f32 0.70710677, %v6904_v56  ;;  %v6909_v15 = vadd.f32 %v5348_v57, %v6858_v37  ;;  %5780 = vmatpush3.bf16.msra.mxu0 %v5973_v47  ;;  %6046 = verf.f32 %v546_v14  ;;  %v524_v47 = vmul.f32 0.5, %v6876_v44 }
 0x102   : > { %v480_v61 = vpop.f32.mrf.mxu0  ;;  %5781 = vmatprep.subr.bf16.mxu0 %v5975_v55 }
 0x103   : > { %v547_v1 = vmul.f32 0.70710677, %v6909_v15  ;;  %v6917_v3 = vadd.f32 %v6858_v37, %v480_v61  ;;  %6048 = verf.f32 %v544_v59  ;;  %5891 = vset.pattern.permute.xlu0 %v6395_v34  ;;  %v527_v34 = vmul.f32 0.5, %v6881_v11 }
 0x104   : > { %v5351_v6 = vpop.f32.mrf.mxu0  ;;  %5734 = vmatmul.mubr.bf16.gmra.mxu0 %v6556_v18  ;;  %1849 = vperm.xlu0 %5891, %v6776_v16  }
 0x105   : > { %6050 = verf.f32 %v547_v1  ;;  %v545_v8 = vmul.f32 0.70710677, %v6917_v3  ;;  %v6923_v13 = vadd.f32 %v5351_v6, %v6858_v37  ;;  %5782 = vmatpush3.bf16.msra.mxu0 %v5975_v55  ;;  %5737 = vmatprep.mubr.bf16.mxu0 %v6559_v19 }
 0x106   : > { %v493_v17 = vpop.f32.mrf.mxu0  ;;  %5783 = vmatprep.subr.bf16.mxu0 %v5977_v63  ;;  %v6039_v23 = vpop.eup %6038  ;;  %1905 = vperm.xlu1 %5890, %v6765_v9  }
 0x107   : > { %6052 = verf.f32 %v545_v8  ;;  %v550_v18 = vmul.f32 0.70710677, %v6923_v13  ;;  %v6933_v24 = vadd.f32 %v6858_v37, %v493_v17  ;;  %v574_v45 = vadd.f32 1.0, %v6039_v23  ;;  %v6975_v23 = vld [vmem:[%s8798_s2 + $0x1] ss:$0 sm:$0xff] }
 0x108   : > { %v5352_v26 = vpop.f32.mrf.mxu0  ;;  %v6041_v28 = vpop.eup %6040  ;;  %1861 = vperm.xlu0 %5891, %v6786_v21  }
 0x109   : > { %v6936_v19 = vadd.f32 %v5352_v26, %v6858_v37  ;;  %5784 = vmatpush3.bf16.msra.mxu0 %v5977_v63  ;;  %v548_v32 = vmul.f32 0.70710677, %v6933_v24  ;;  %6054 = verf.f32 %v550_v18  ;;  %v572_v10 = vadd.f32 1.0, %v6041_v28  ;;  %v5983_v26 = vld [vmem:[%s8799_s3 + $0x70] sm:$0xff]  }
 0x10a   : > { %v6043_v30 = vpop.eup %6042  ;;  %v496_v33 = vpop.f32.mrf.mxu0  ;;  %5785 = vmatprep.subr.bf16.mxu0 %v5979_v20  ;;  %v590_v61 = vmul.f32 %v574_v45, %v526_v54  ;;  %v6396_v28 = vmov 3   ;;  %v6296_v45 = vld [vmem:[%s6503_s19 + $0x10] sm:$0xff]  }
 0x10b   : > { %v575_v38 = vadd.f32 1.0, %v6043_v30  ;;  %v551_v39 = vmul.f32 0.70710677, %v6936_v19  ;;  %v6945_v41 = vadd.f32 %v6858_v37, %v496_v33  ;;  %6056 = verf.f32 %v548_v32  ;;  %5893 = vset.pattern.permute.xlu1 %v6396_v28 }
 0x10c   : > { %v6045_v42 = vpop.eup %6044  ;;  %v5355_v43 = vpop.f32.mrf.mxu0  ;;  %5738 = vmatmul.mubr.bf16.gmra.mxu0 %v6570_v22  ;;  %v588_v14 = vmul.f32 %v572_v10, %v524_v47  ;;  %1869 = vperm.xlu0 %5891, %v6794_v4  }
 0x10d   : > { %6058 = verf.f32 %v551_v39  ;;  %v549_v46 = vmul.f32 0.70710677, %v6945_v41  ;;  %5786 = vmatpush3.bf16.msra.mxu0 %v5979_v20  ;;  %5789 = vmatprep.mubr.bf16.mxu0 %v6847_v35  ;;  %v6956_v51 = vadd.f32 %v5355_v43, %v6858_v37  ;;  %v573_v22 = vadd.f32 1.0, %v6045_v42 }
 0x10e   : > { %v509_v52 = vpop.f32.mrf.mxu0  ;;  %5787 = vmatprep.subr.bf16.mxu0 %v5981_v36  ;;  %v591_v55 = vmul.f32 %v575_v38, %v527_v34  ;;  %v6047_v35 = vpop.eup %6046  ;;  %v6295_v38 = vld [vmem:[%s6503_s19 + $0x8] sm:$0xff]   ;;  %v529_v42 = vmul.f32 0.5, %v6917_v3  ;;  %v530_v34 = vmul.f32 0.5, %v6895_v53  ;;  %2373 = vperm.xlu1 %5893, %v6776_v16  }
 0x10f   : > { %6060 = verf.f32 %v549_v46  ;;  %v6960_v11 = vadd.f32 %v6858_v37, %v509_v52  ;;  %v554_v44 = vmul.f32 0.70710677, %v6956_v51  ;;  %v589_v57 = vmul.f32 %v573_v22, %v525_v48  ;;  %v5984_v53 = vld [vmem:[%s8799_s3 + $0x68] sm:$0xff]  }
 0x110   : > { %v5356_v49 = vpop.f32.mrf.mxu0  ;;  %v6049_v59 = vpop.eup %6048  ;;  %v605_v18 = vpack.c.bf16 %v591_v55, %v590_v61  ;;  %v578_v39 = vadd.f32 1.0, %v6047_v35  ;;  %1877 = vperm.xlu0 %5891, %v6804_v25  }
 0x111   : > { %v552_v63 = vmul.f32 0.70710677, %v6960_v11  ;;  %5788 = vmatpush3.bf16.msra.mxu0 %v5981_v36  ;;  %v6967_v1 = vadd.f32 %v5356_v49, %v6858_v37  ;;  %v604_v8 = vpack.c.bf16 %v589_v57, %v588_v14  ;;  %v576_v32 = vadd.f32 1.0, %v6049_v59 }
 0x112   : > { %v6051_v40 = vpop.eup %6050  ;;  %v512_v6 = vpop.f32.mrf.mxu0  ;;  %v594_v16 = vmul.f32 %v578_v39, %v530_v34  ;;  %2377 = vperm.xlu1 %5893, %v6708_v58   ;;  %v535_v59 = vmul.f32 0.5, %v6936_v19  ;;  %v5986_v34 = vld [vmem:[%s8799_s3 + $0x58] sm:$0xff]  }
 0x113   : > { %v579_v17 = vadd.f32 1.0, %v6051_v40  ;;  %6062 = verf.f32 %v552_v63  ;;  %v6970_v20 = vadd.f32 %v6858_v37, %v512_v6  ;;  %v531_v37 = vmul.f32 0.5, %v6909_v15  ;;  %5373 = vmatprep.mubr.bf16.mxu1 %v604_v8  ;;  %v5985_v6 = vld [vmem:[%s8799_s3 + $0x60] sm:$0xff]  }
 0x114   : > { %v6053_v30 = vpop.eup %6052  ;;  %6064 = verf.f32 %v554_v44  ;;  %v555_v33 = vmul.f32 0.70710677, %v6967_v1  ;;  %v5407_v36 = vpop.f32.mrf.mxu0  ;;  %5790 = vmatmul.mubr.bf16.vlgmr.msra.gmra.mxu0 %v6295_v38  ;;  %5374 = vmatmul.mubr.bf16.vlgmr.msra.gmra.mxu1 %v605_v18  ;;  %v528_v15 = vmul.f32 0.5, %v6904_v56  ;;  %v533_v18 = vmul.f32 0.5, %v6945_v41 }
 0x115   : > { %v577_v43 = vadd.f32 1.0, %v6053_v30  ;;  %v553_v10 = vmul.f32 0.70710677, %v6970_v20  ;;  %5793 = vmatprep.mubr.bf16.mxu0 %v6296_v45  ;;  %v6991_v46 = vadd.f32 %v5407_v36, %v6975_v23  ;;  %5422 = vmatpush3.bf16.msra.mxu1 %v6674_v50  ;;  %v595_v3 = vmul.f32 %v579_v17, %v531_v37  ;;  %v6297_v30 = vld [vmem:[%s6503_s19 + $0x18] sm:$0xff]   ;;  %v6298_v36 = vld [vmem:[%s6503_s19 + $0x20] sm:$0xff]  }
 0x116   : > { %6066 = verf.f32 %v555_v33  ;;  %v999_v47 = vpop.f32.mrf.mxu0  ;;  %5423 = vmatprep.subr.bf16.mxu1 %v5983_v26  ;;  %v6055_v56 = vpop.eup %6054  ;;  %v592_v22 = vmul.f32 %v576_v32, %v528_v15  ;;  %1885 = vperm.xlu0 %5891, %v6812_v27   ;;  %v532_v38 = vmul.f32 0.5, %v6933_v24 }
 0x117   : > { %v593_v48 = vmul.f32 %v577_v43, %v529_v42  ;;  %6068 = verf.f32 %v553_v10  ;;  %v6996_v52 = vadd.f32 %v6975_v23, %v999_v47  ;;  %v1080_v50 = vmul.f32 0.70710677, %v6991_v46  ;;  %2385 = vperm.xlu1 %5893, %v6786_v21  }
 0x118   : > { %v5408_v54 = vpop.f32.mrf.mxu0  ;;  %v6057_v55 = vpop.eup %6056  ;;  %v607_v40 = vpack.c.bf16 %v595_v3, %v594_v16  ;;  %v582_v32 = vadd.f32 1.0, %v6055_v56  ;;  %v534_v42 = vmul.f32 0.5, %v6923_v13  ;;  %v539_v16 = vmul.f32 0.5, %v6967_v1 }
 0x119   : > { %v1078_v35 = vmul.f32 0.70710677, %v6996_v52  ;;  %v7005_v44 = vadd.f32 %v5408_v54, %v6975_v23  ;;  %6070 = verf.f32 %v1080_v50  ;;  %5424 = vmatpush3.bf16.msra.mxu1 %v5983_v26  ;;  %v606_v57 = vpack.c.bf16 %v593_v48, %v592_v22 }
 0x11a   : > { %v6059_v49 = vpop.eup %6058  ;;  %v1002_v14 = vpop.f32.mrf.mxu0  ;;  %5425 = vmatprep.subr.bf16.mxu1 %v5984_v53  ;;  %v580_v17 = vadd.f32 1.0, %v6057_v55  ;;  %1893 = vperm.xlu0 %5891, %v6822_v29   ;;  %v598_v21 = vmul.f32 %v582_v32, %v534_v42 }
 0x11b   : > { %v583_v61 = vadd.f32 1.0, %v6059_v49  ;;  %v1081_v63 = vmul.f32 0.70710677, %v7005_v44  ;;  %6072 = verf.f32 %v1078_v35  ;;  %v7016_v26 = vadd.f32 %v6975_v23, %v1002_v14  ;;  %5377 = vmatprep.mubr.bf16.mxu1 %v606_v57  ;;  %2393 = vperm.xlu1 %5893, %v6794_v4  }
 0x11c   : > { %v6061_v8 = vpop.eup %6060  ;;  %v5411_v19 = vpop.f32.mrf.mxu0  ;;  %5794 = vmatmul.mubr.bf16.gmra.mxu0 %v6297_v30  ;;  %5378 = vmatmul.mubr.bf16.gmra.mxu1 %v607_v40  ;;  %v596_v15 = vmul.f32 %v580_v17, %v532_v38  ;;  %v537_v35 = vmul.f32 0.5, %v6970_v20  ;;  %v538_v17 = vmul.f32 0.5, %v6956_v51  ;;  %v5988_v38 = vld [vmem:[%s8799_s3 + $0x48] sm:$0xff]  }
 0x11d   : > { %v581_v37 = vadd.f32 1.0, %v6061_v8  ;;  %6074 = verf.f32 %v1081_v63  ;;  %v7020_v33 = vadd.f32 %v5411_v19, %v6975_v23  ;;  %5797 = vmatprep.mubr.bf16.mxu0 %v6298_v36  ;;  %v1079_v41 = vmul.f32 0.70710677, %v7016_v26  ;;  %5426 = vmatpush3.bf16.msra.mxu1 %v5984_v53  ;;  %v6300_v8 = vld [vmem:[%s6503_s19 + $0x30] sm:$0xff]  }
 0x11e   : > { %v1015_v39 = vpop.f32.mrf.mxu0  ;;  %v599_v43 = vmul.f32 %v583_v61, %v535_v59  ;;  %5427 = vmatprep.subr.bf16.mxu1 %v5985_v6  ;;  %v536_v53 = vmul.f32 0.5, %v6960_v11  ;;  %v5987_v11 = vld [vmem:[%s8799_s3 + $0x50] sm:$0xff]   ;;  %1901 = vperm.xlu0 %5891, %v6830_v31   ;;  %v6299_v61 = vld [vmem:[%s6503_s19 + $0x28] sm:$0xff]  }
 0x11f   : > { %v597_v10 = vmul.f32 %v581_v37, %v533_v18  ;;  %v7028_v45 = vadd.f32 %v6975_v23, %v1015_v39  ;;  %6076 = verf.f32 %v1079_v41  ;;  %v1084_v13 = vmul.f32 0.70710677, %v7020_v33  ;;  %2401 = vperm.xlu1 %5893, %v6804_v25  }
 0x120   : > { %v6063_v24 = vpop.eup %6062  ;;  %v5412_v47 = vpop.f32.mrf.mxu0  ;;  %v609_v14 = vpack.c.bf16 %v599_v43, %v598_v21  ;;  %v5989_v21 = vld [vmem:[%s8799_s3 + $0x40] sm:$0xff]  }
 0x121   : > { %v6065_v3 = vpop.eup %6064  ;;  %v1082_v48 = vmul.f32 0.70710677, %v7028_v45  ;;  %v584_v56 = vadd.f32 1.0, %v6063_v24  ;;  %v7038_v22 = vadd.f32 %v5412_v47, %v6975_v23  ;;  %5428 = vmatpush3.bf16.msra.mxu1 %v5985_v6  ;;  %v608_v54 = vpack.c.bf16 %v597_v10, %v596_v15 }
 0x122   : > { %v1018_v50 = vpop.f32.mrf.mxu0  ;;  %5429 = vmatprep.subr.bf16.mxu1 %v5986_v34  ;;  %v586_v4 = vadd.f32 1.0, %v6065_v3  ;;  %5892 = vset.pattern.permute.xlu0 %v6396_v28 }
 0x123   : > { %v6067_v55 = vpop.eup %6066  ;;  %v7044_v49 = vadd.f32 %v6975_v23, %v1018_v50  ;;  %6078 = verf.f32 %v1082_v48  ;;  %v1085_v1 = vmul.f32 0.70710677, %v7038_v22  ;;  %5381 = vmatprep.mubr.bf16.mxu1 %v608_v54  ;;  %v600_v18 = vmul.f32 %v584_v56, %v536_v53  ;;  %2369 = vperm.xlu0 %5892, %v6768_v12  }
 0x124   : > { %v6069_v57 = vpop.eup %6068  ;;  %v587_v59 = vadd.f32 1.0, %v6067_v55  ;;  %v5415_v20 = vpop.f32.mrf.mxu0  ;;  %5798 = vmatmul.mubr.bf16.gmra.mxu0 %v6299_v61  ;;  %6080 = verf.f32 %v1084_v13  ;;  %5382 = vmatmul.mubr.bf16.gmra.mxu1 %v609_v14  ;;  %v602_v39 = vmul.f32 %v586_v4, %v538_v17  ;;  %v1065_v48 = vmul.f32 0.5, %v7005_v44 }
 0x125   : > { %v585_v63 = vadd.f32 1.0, %v6069_v57  ;;  %v1083_v40 = vmul.f32 0.70710677, %v7044_v49  ;;  %v7054_v6 = vadd.f32 %v5415_v20, %v6975_v23  ;;  %5801 = vmatprep.mubr.bf16.mxu0 %v6300_v8  ;;  %6082 = verf.f32 %v1085_v1  ;;  %5430 = vmatpush3.bf16.msra.mxu1 %v5986_v34 }
 0x126   : > { %v1031_v19 = vpop.f32.mrf.mxu0  ;;  %v6071_v30 = vpop.eup %6070  ;;  %v603_v32 = vmul.f32 %v587_v59, %v539_v16  ;;  %5431 = vmatprep.subr.bf16.mxu1 %v5987_v11  ;;  %2409 = vperm.xlu1 %5893, %v6812_v27   ;;  %v6301_v27 = vld [vmem:[%s6503_s19 + $0x38] sm:$0xff]   ;;  %v1064_v54 = vmul.f32 0.5, %v6991_v46  ;;  %v1062_v55 = vmul.f32 0.5, %v6996_v52  ;;  %v1069_v8 = vmul.f32 0.5, %v7038_v22  ;;  %v5991_v22 = vld [vmem:[%s8799_s3 + $0xb0] sm:$0xff]  }
 0x127   : > { %v601_v37 = vmul.f32 %v585_v63, %v537_v35  ;;  %6084 = verf.f32 %v1083_v40  ;;  %v1088_v36 = vmul.f32 0.70710677, %v7054_v6  ;;  %v7065_v51 = vadd.f32 %v6975_v23, %v1031_v19  ;;  %2381 = vperm.xlu0 %5892, %v6717_v60   ;;  %v5990_v52 = vld [vmem:[%s8799_s3 + $0xb8] sm:$0xff]  }
 0x128   : > { %v5416_v41 = vpop.f32.mrf.mxu0  ;;  %v6073_v25 = vpop.eup %6072  ;;  %v1112_v34 = vadd.f32 1.0, %v6071_v30  ;;  %v611_v3 = vpack.c.bf16 %v603_v32, %v602_v39  ;;  %v1063_v35 = vmul.f32 0.5, %v7016_v26 }
 0x129   : > { %v7069_v42 = vadd.f32 %v5416_v41, %v6975_v23  ;;  %v610_v43 = vpack.c.bf16 %v601_v37, %v600_v18  ;;  %v1086_v24 = vmul.f32 0.70710677, %v7065_v51  ;;  %5432 = vmatpush3.bf16.msra.mxu1 %v5987_v11  ;;  %6086 = verf.f32 %v1088_v36  ;;  %v7112_v37 = vld [vmem:[%s8798_s2 + $0x2] ss:$0 sm:$0xff] }
 0x12a   : > { %v6075_v10 = vpop.eup %6074  ;;  %v1034_v15 = vpop.f32.mrf.mxu0  ;;  %5433 = vmatprep.subr.bf16.mxu1 %v5988_v38  ;;  %v1110_v13 = vadd.f32 1.0, %v6073_v25  ;;  %2417 = vperm.xlu1 %5893, %v6822_v29   ;;  %v1128_v4 = vmul.f32 %v1112_v34, %v1064_v54  ;;  %v1067_v41 = vmul.f32 0.5, %v7044_v49  ;;  %v1066_v34 = vmul.f32 0.5, %v7028_v45 }
 0x12b   : > { %v1113_v28 = vadd.f32 1.0, %v6075_v10  ;;  %v1089_v47 = vmul.f32 0.70710677, %v7069_v42  ;;  %5385 = vmatprep.mubr.bf16.mxu1 %v610_v43  ;;  %6088 = verf.f32 %v1086_v24  ;;  %v7079_v53 = vadd.f32 %v6975_v23, %v1034_v15  ;;  %2389 = vperm.xlu0 %5892, %v6724_v62  }
 0x12c   : > { %v5419_v56 = vpop.f32.mrf.mxu0  ;;  %5802 = vmatmul.mubr.bf16.gmra.mxu0 %v6301_v27  ;;  %v6077_v50 = vpop.eup %6076  ;;  %5386 = vmatmul.mubr.bf16.gmra.mxu1 %v611_v3  ;;  %v1126_v59 = vmul.f32 %v1110_v13, %v1062_v55  ;;  %v1068_v10 = vmul.f32 0.5, %v7020_v33  ;;  %v6397_v15 = vmov 4   ;;  %v5992_v33 = vld [vmem:[%s8799_s3 + $0xa8] sm:$0xff]  }
 0x12d   : > { %6090 = verf.f32 %v1089_v47  ;;  %v7086_v16 = vadd.f32 %v5419_v56, %v6975_v23  ;;  %v1129_v44 = vmul.f32 %v1113_v28, %v1065_v48  ;;  %v1111_v14 = vadd.f32 1.0, %v6077_v50  ;;  %5434 = vmatpush3.bf16.msra.mxu1 %v5988_v38 }
 0x12e   : > { %v1087_v11 = vmul.f32 0.70710677, %v7079_v53  ;;  %v1047_v57 = vpop.f32.mrf.mxu0  ;;  %5435 = vmatprep.subr.bf16.mxu1 %v5989_v21  ;;  %2425 = vperm.xlu1 %5893, %v6830_v31  }
 0x12f   : > { %v1092_v46 = vmul.f32 0.70710677, %v7086_v16  ;;  %v1127_v1 = vmul.f32 %v1111_v14, %v1063_v35  ;;  %v7096_v26 = vadd.f32 %v6975_v23, %v1047_v57  ;;  %v1143_v40 = vpack.c.bf16 %v1129_v44, %v1128_v4  ;;  %2397 = vperm.xlu0 %5892, %v6733_v0  }
 0x130   : > { %6092 = verf.f32 %v1087_v11  ;;  %v5420_v20 = vpop.f32.mrf.mxu0  ;;  %v6079_v61 = vpop.eup %6078 }
 0x131   : > { %v7100_v29 = vadd.f32 %v5420_v20, %v6975_v23  ;;  %v6081_v63 = vpop.eup %6080  ;;  %v1090_v17 = vmul.f32 0.70710677, %v7096_v26  ;;  %5436 = vmatpush3.bf16.msra.mxu1 %v5989_v21  ;;  %v1142_v19 = vpack.c.bf16 %v1127_v1, %v1126_v59  ;;  %6094 = verf.f32 %v1092_v46 }
 0x132   : > { %v1050_v18 = vpop.f32.mrf.mxu0  ;;  %v6083_v30 = vpop.eup %6082  ;;  %5485 = vmatprep.subr.bf16.mxu1 %v5990_v52  ;;  %v1114_v38 = vadd.f32 1.0, %v6079_v61  ;;  %5894 = vset.pattern.permute.xlu1 %v6397_v15  ;;  %v1073_v59 = vmul.f32 0.5, %v7069_v42  ;;  %v1071_v20 = vmul.f32 0.5, %v7079_v53  ;;  %v5994_v42 = vld [vmem:[%s8799_s3 + $0x98] sm:$0xff]  }
 0x133   : > { %v1093_v32 = vmul.f32 0.70710677, %v7100_v29  ;;  %v7107_v62 = vadd.f32 %v6975_v23, %v1050_v18  ;;  %v1117_v31 = vadd.f32 1.0, %v6083_v30  ;;  %6096 = verf.f32 %v1090_v17  ;;  %5437 = vmatprep.mubr.bf16.mxu1 %v1142_v19  ;;  %2893 = vperm.xlu1 %5894, %v6768_v12  }
 0x134   : > { %v6085_v36 = vpop.eup %6084  ;;  %v5471_v25 = vpop.f32.mrf.mxu0  ;;  %v1116_v23 = vadd.f32 1.0, %v6081_v63  ;;  %5438 = vmatmul.mubr.bf16.vlgmr.msra.gmra.mxu1 %v1143_v40  ;;  %v1130_v3 = vmul.f32 %v1114_v38, %v1066_v34  ;;  %2405 = vperm.xlu0 %5892, %v6740_v2   ;;  %v5993_v2 = vld [vmem:[%s8799_s3 + $0xa0] sm:$0xff]  }
 0x135   : > { %v1115_v39 = vadd.f32 1.0, %v6085_v36  ;;  %6098 = verf.f32 %v1093_v32  ;;  %v1091_v43 = vmul.f32 0.70710677, %v7107_v62  ;;  %v7123_v24 = vadd.f32 %v5471_v25, %v7112_v37  ;;  %5486 = vmatpush3.bf16.msra.mxu1 %v5990_v52 }
 0x136   : > { %v1523_v49 = vpop.f32.mrf.mxu0  ;;  %v1133_v28 = vmul.f32 %v1117_v31, %v1069_v8  ;;  %5487 = vmatprep.subr.bf16.mxu1 %v5991_v22  ;;  %v6087_v45 = vpop.eup %6086  ;;  %v1132_v56 = vmul.f32 %v1116_v23, %v1068_v10 }
 0x137   : > { %v1131_v0 = vmul.f32 %v1115_v39, %v1067_v41  ;;  %6100 = verf.f32 %v1091_v43  ;;  %v7127_v47 = vadd.f32 %v7112_v37, %v1523_v49  ;;  %v1604_v21 = vmul.f32 0.70710677, %v7123_v24  ;;  %2901 = vperm.xlu1 %5894, %v6708_v58   ;;  %v5995_v39 = vld [vmem:[%s8799_s3 + $0x90] sm:$0xff]   ;;  %v7177_v43 = vld [vmem:[%s6702_s28 + $0x28] sm:$0xff] }
 0x138   : > { %v5472_v13 = vpop.f32.mrf.mxu0  ;;  %v6089_v48 = vpop.eup %6088  ;;  %v1145_v14 = vpack.c.bf16 %v1133_v28, %v1132_v56  ;;  %2413 = vperm.xlu0 %5892, %v6749_v5   ;;  %v1120_v52 = vadd.f32 1.0, %v6087_v45  ;;  %v1070_v58 = vmul.f32 0.5, %v7065_v51  ;;  %v1072_v5 = vmul.f32 0.5, %v7054_v6 }
 0x139   : > { %v1602_v27 = vmul.f32 0.70710677, %v7127_v47  ;;  %v7137_v50 = vadd.f32 %v5472_v13, %v7112_v37  ;;  %5488 = vmatpush3.bf16.msra.mxu1 %v5991_v22  ;;  %v1144_v44 = vpack.c.bf16 %v1131_v0, %v1130_v3  ;;  %6102 = verf.f32 %v1604_v21 }
 0x13a   : > { %v6091_v54 = vpop.eup %6090  ;;  %v1526_v55 = vpop.f32.mrf.mxu0  ;;  %5489 = vmatprep.subr.bf16.mxu1 %v5992_v33  ;;  %v1118_v11 = vadd.f32 1.0, %v6089_v48  ;;  %v1136_v30 = vmul.f32 %v1120_v52, %v1072_v5  ;;  %v1077_v41 = vmul.f32 0.5, %v7100_v29  ;;  %v1075_v49 = vmul.f32 0.5, %v7107_v62 }
 0x13b   : > { %v1121_v35 = vadd.f32 1.0, %v6091_v54  ;;  %v1605_v12 = vmul.f32 0.70710677, %v7137_v50  ;;  %6104 = verf.f32 %v1602_v27  ;;  %v7145_v57 = vadd.f32 %v7112_v37, %v1526_v55  ;;  %5441 = vmatprep.mubr.bf16.mxu1 %v1144_v44  ;;  %2905 = vperm.xlu1 %5894, %v6717_v60   ;;  %v7196_v27 = vld [vmem:[%s6702_s28 + $0x38] sm:$0xff] }
 0x13c   : > { %v5475_v4 = vpop.f32.mrf.mxu0  ;;  %5442 = vmatmul.mubr.bf16.gmra.mxu1 %v1145_v14  ;;  %v1134_v53 = vmul.f32 %v1118_v11, %v1070_v58  ;;  %2421 = vperm.xlu0 %5892, %v6756_v7   ;;  %v1076_v3 = vmul.f32 0.5, %v7086_v16  ;;  %v1074_v21 = vmul.f32 0.5, %v7096_v26  ;;  %v5996_v16 = vld [vmem:[%s8799_s3 + $0x88] sm:$0xff]  }
 0x13d   : > { %v6093_v46 = vpop.eup %6092  ;;  %6106 = verf.f32 %v1605_v12  ;;  %v7150_v1 = vadd.f32 %v5475_v4, %v7112_v37  ;;  %v1603_v63 = vmul.f32 0.70710677, %v7145_v57  ;;  %5490 = vmatpush3.bf16.msra.mxu1 %v5992_v33  ;;  %v1137_v8 = vmul.f32 %v1121_v35, %v1073_v59  ;;  %v7206_v11 = vld [vmem:[%s6702_s28 + $0x8] sm:$0xff] }
 0x13e   : > { %v1119_v61 = vadd.f32 1.0, %v6093_v46  ;;  %v1539_v40 = vpop.f32.mrf.mxu0  ;;  %5491 = vmatprep.subr.bf16.mxu1 %v5993_v2  ;;  %v6095_v51 = vpop.eup %6094 }
 0x13f   : > { %v7157_v17 = vadd.f32 %v7112_v37, %v1539_v40  ;;  %6108 = verf.f32 %v1603_v63  ;;  %v1608_v32 = vmul.f32 0.70710677, %v7150_v1  ;;  %v1147_v7 = vpack.c.bf16 %v1137_v8, %v1136_v30  ;;  %2913 = vperm.xlu1 %5894, %v7177_v43  }
 0x140   : > { %v1135_v18 = vmul.f32 %v1119_v61, %v1071_v20  ;;  %v5476_v19 = vpop.f32.mrf.mxu0  ;;  %v6097_v6 = vpop.eup %6096  ;;  %2429 = vperm.xlu0 %5892, %v6765_v9   ;;  %v1124_v0 = vadd.f32 1.0, %v6095_v51  ;;  %v5997_v20 = vld [vmem:[%s8799_s3 + $0x80] sm:$0xff]   ;;  %v7214_v61 = vld [vmem:[%s6702_s28 + $0x48] sm:$0xff]  ;;  %v1589_v51 = vmul.f32 0.5, %v7137_v50  ;;  %v1588_v50 = vmul.f32 0.5, %v7123_v24 }
 0x141   : > { %v1606_v22 = vmul.f32 0.70710677, %v7157_v17  ;;  %v7167_v38 = vadd.f32 %v5476_v19, %v7112_v37  ;;  %5492 = vmatpush3.bf16.msra.mxu1 %v5993_v2  ;;  %v1122_v34 = vadd.f32 1.0, %v6097_v6  ;;  %v1587_v19 = vmul.f32 0.5, %v7145_v57  ;;  %v7239_v57 = vld [vmem:[%s6702_s28 + $0x58] sm:$0xff] }
 0x142   : > { %v6099_v36 = vpop.eup %6098  ;;  %v1542_v60 = vpop.f32.mrf.mxu0  ;;  %v1146_v31 = vpack.c.bf16 %v1135_v18, %v1134_v53  ;;  %5493 = vmatprep.subr.bf16.mxu1 %v5994_v42  ;;  %v1140_v35 = vmul.f32 %v1124_v0, %v1076_v3  ;;  %v7226_v18 = vld [vmem:[%s6702_s28 + $0x20] sm:$0xff] }
 0x143   : > { %v1125_v25 = vadd.f32 1.0, %v6099_v36  ;;  %v7171_v23 = vadd.f32 %v7112_v37, %v1542_v60  ;;  %6110 = verf.f32 %v1606_v22  ;;  %v1609_v29 = vmul.f32 0.70710677, %v7167_v38  ;;  %2921 = vperm.xlu1 %5894, %v7196_v27   ;;  %v7231_v22 = vpop.permute.xlu1 %792 }
 0x144   : > { %v6101_v10 = vpop.eup %6100  ;;  %5445 = vmatprep.mubr.bf16.mxu1 %v1146_v31  ;;  %v5479_v28 = vpop.f32.mrf.mxu0  ;;  %6112 = verf.f32 %v1608_v32  ;;  %v1138_v54 = vmul.f32 %v1122_v34, %v1074_v21  ;;  %5895 = vset.pattern.permute.xlu0 %v6397_v15  ;;  %v1586_v15 = vmul.f32 0.5, %v7127_v47  ;;  %v5998_v31 = vld [vmem:[%s8799_s3 + $0xf8] sm:$0xff]  }
 0x145   : > { %v1123_v33 = vadd.f32 1.0, %v6101_v10  ;;  %v1607_v45 = vmul.f32 0.70710677, %v7171_v23  ;;  %5446 = vmatmul.mubr.bf16.gmra.mxu1 %v1147_v7  ;;  %6114 = verf.f32 %v1609_v29  ;;  %v7187_v62 = vadd.f32 %v5479_v28, %v7112_v37  ;;  %2897 = vperm.xlu0 %5895, %v7206_v11  }
 0x146   : > { %5494 = vmatpush3.bf16.msra.mxu1 %v5994_v42  ;;  %v1555_v13 = vpop.f32.mrf.mxu0  ;;  %v1141_v48 = vmul.f32 %v1125_v25, %v1077_v41  ;;  %v6103_v26 = vpop.eup %6102  ;;  %v1593_v28 = vmul.f32 0.5, %v7167_v38  ;;  %v5999_v38 = vld [vmem:[%s8799_s3 + $0xf0] sm:$0xff]  }
 0x147   : > { %v1139_v56 = vmul.f32 %v1123_v33, %v1075_v49  ;;  %6116 = verf.f32 %v1607_v45  ;;  %v7190_v9 = vadd.f32 %v7112_v37, %v1555_v13  ;;  %5495 = vmatprep.subr.bf16.mxu1 %v5995_v39  ;;  %v1612_v12 = vmul.f32 0.70710677, %v7187_v62  ;;  %2929 = vperm.xlu1 %5894, %v7214_v61   ;;  %v7249_v49 = vld [vmem:[%s6702_s28 + $0x30] sm:$0xff] }
 0x148   : > { %v5480_v55 = vpop.f32.mrf.mxu0  ;;  %v6105_v44 = vpop.eup %6104  ;;  %v1149_v58 = vpack.c.bf16 %v1141_v48, %v1140_v35  ;;  %v1636_v42 = vadd.f32 1.0, %v6103_v26 }
 0x149   : > { %v1610_v14 = vmul.f32 0.70710677, %v7190_v9  ;;  %v7203_v2 = vadd.f32 %v5480_v55, %v7112_v37  ;;  %v1148_v52 = vpack.c.bf16 %v1139_v56, %v1138_v54  ;;  %v1634_v63 = vadd.f32 1.0, %v6105_v44  ;;  %2909 = vperm.xlu0 %5895, %v7226_v18   ;;  %v7261_v56 = vld [vmem:[%s8798_s2 + $0x3] ss:$0 sm:$0xff]  ;;  %v7271_v35 = vpop.permute.xlu1 %797 }
 0x14a   : > { %v6107_v4 = vpop.eup %6106  ;;  %5496 = vmatpush3.bf16.msra.mxu1 %v5995_v39  ;;  %v1558_v46 = vpop.f32.mrf.mxu0  ;;  %v1652_v10 = vmul.f32 %v1636_v42, %v1588_v50 }
 0x14b   : > { %v1637_v59 = vadd.f32 1.0, %v6107_v4  ;;  %5497 = vmatprep.subr.bf16.mxu1 %v5996_v16  ;;  %6118 = verf.f32 %v1610_v14  ;;  %v1613_v40 = vmul.f32 0.70710677, %v7203_v2  ;;  %v7219_v5 = vadd.f32 %v7112_v37, %v1558_v46  ;;  %5449 = vmatprep.mubr.bf16.mxu1 %v1148_v52  ;;  %v7275_v46 = vld [vmem:[%s6702_s28 + $0x40] sm:$0xff] }
 0x14c   : > { %v5483_v47 = vpop.f32.mrf.mxu0  ;;  %v6109_v8 = vpop.eup %6108  ;;  %6120 = verf.f32 %v1612_v12  ;;  %2937 = vperm.xlu1 %5894, %v7239_v57   ;;  %v1650_v41 = vmul.f32 %v1634_v63, %v1586_v15  ;;  %v1592_v52 = vmul.f32 0.5, %v7150_v1  ;;  %v7290_v1 = vld [vmem:[%s6702_s28 + $0x78] sm:$0xff] }
 0x14d   : > { %5450 = vmatmul.mubr.bf16.gmra.mxu1 %v1149_v58  ;;  %v7223_v53 = vadd.f32 %v5483_v47, %v7112_v37  ;;  %v1635_v6 = vadd.f32 1.0, %v6109_v8  ;;  %6122 = verf.f32 %v1613_v40  ;;  %v1611_v30 = vmul.f32 0.70710677, %v7219_v5  ;;  %2917 = vperm.xlu0 %5895, %v7249_v49   ;;  %v6000_v40 = vld [vmem:[%s8799_s3 + $0xe8] sm:$0xff]  }
 0x14e   : > { %5498 = vmatpush3.bf16.msra.mxu1 %v5996_v16  ;;  %v1571_v32 = vpop.f32.mrf.mxu0  ;;  %v1653_v36 = vmul.f32 %v1637_v59, %v1589_v51  ;;  %v7267_v16 = vld [vmem:[%s6702_s28 + $0x68] sm:$0xff] }
 0x14f   : > { %v1616_v60 = vmul.f32 0.70710677, %v7223_v53  ;;  %5499 = vmatprep.subr.bf16.mxu1 %v5997_v20  ;;  %v1651_v25 = vmul.f32 %v1635_v6, %v1587_v19  ;;  %6124 = verf.f32 %v1611_v30  ;;  %v7243_v7 = vadd.f32 %v7112_v37, %v1571_v32  ;;  %v7299_v30 = vld [vmem:[%s6702_s28 + $0x50] sm:$0xff] }
 0x150   : > { %v5484_v39 = vpop.f32.mrf.mxu0  ;;  %v6111_v24 = vpop.eup %6110  ;;  %v1667_v21 = vpack.c.bf16 %v1653_v36, %v1652_v10  ;;  %2945 = vperm.xlu1 %5894, %v7267_v16  }
 0x151   : > { %v7246_v34 = vadd.f32 %v5484_v39, %v7112_v37  ;;  %v6113_v29 = vpop.eup %6112  ;;  %v1614_v0 = vmul.f32 0.70710677, %v7243_v7  ;;  %v1666_v45 = vpack.c.bf16 %v1651_v25, %v1650_v41  ;;  %6126 = verf.f32 %v1616_v60  ;;  %2925 = vperm.xlu0 %5895, %v7275_v46   ;;  %v7302_v60 = vpop.permute.xlu1 %807  ;;  %v6001_v39 = vld [vmem:[%s8799_s3 + $0xe0] sm:$0xff]  }
 0x152   : > { %5500 = vmatpush3.bf16.msra.mxu1 %v5997_v20  ;;  %v1574_v33 = vpop.f32.mrf.mxu0  ;;  %v6115_v3 = vpop.eup %6114  ;;  %v1638_v54 = vadd.f32 1.0, %v6111_v24  ;;  %v1640_v12 = vadd.f32 1.0, %v6113_v29  ;;  %v6398_v24 = vmov 5  }
 0x153   : > { %v1617_v13 = vmul.f32 0.70710677, %v7246_v34  ;;  %v7256_v48 = vadd.f32 %v7112_v37, %v1574_v33  ;;  %5549 = vmatprep.subr.bf16.mxu1 %v5998_v31  ;;  %v1641_v55 = vadd.f32 1.0, %v6115_v3  ;;  %v1591_v37 = vmul.f32 0.5, %v7171_v23  ;;  %5501 = vmatprep.mubr.bf16.mxu1 %v1666_v45 }
 0x154   : > { %v6117_v26 = vpop.eup %6116  ;;  %6128 = verf.f32 %v1614_v0  ;;  %v5535_v44 = vpop.f32.mrf.mxu0  ;;  %v1590_v23 = vmul.f32 0.5, %v7157_v17  ;;  %2953 = vperm.xlu1 %5894, %v7290_v1   ;;  %v1656_v51 = vmul.f32 %v1640_v12, %v1592_v52  ;;  %v1597_v3 = vmul.f32 0.5, %v7203_v2 }
 0x155   : > { %v1639_v14 = vadd.f32 1.0, %v6117_v26  ;;  %6130 = verf.f32 %v1617_v13  ;;  %v1615_v4 = vmul.f32 0.70710677, %v7256_v48  ;;  %5502 = vmatmul.mubr.bf16.vlgmr.msra.gmra.mxu1 %v1667_v21  ;;  %v7281_v15 = vadd.f32 %v5535_v44, %v7261_v56  ;;  %2933 = vperm.xlu0 %5895, %v7299_v30   ;;  %v7318_v13 = vld [vmem:[%s6702_s28 + $0x60] sm:$0xff] }
 0x156   : > { %5550 = vmatpush3.bf16.msra.mxu1 %v5998_v31  ;;  %v2047_v59 = vpop.f32.mrf.mxu0  ;;  %v1657_v58 = vmul.f32 %v1641_v55, %v1593_v28  ;;  %v1654_v17 = vmul.f32 %v1638_v54, %v1590_v23  ;;  %v1595_v26 = vmul.f32 0.5, %v7219_v5  ;;  %v1596_v2 = vmul.f32 0.5, %v7187_v62  ;;  %v7331_v23 = vpop.permute.xlu1 %817 }
 0x157   : > { %v1655_v20 = vmul.f32 %v1639_v14, %v1591_v37  ;;  %6132 = verf.f32 %v1615_v4  ;;  %v7284_v63 = vadd.f32 %v7261_v56, %v2047_v59  ;;  %5551 = vmatprep.subr.bf16.mxu1 %v5999_v38  ;;  %v2128_v47 = vmul.f32 0.70710677, %v7281_v15  ;;  %v7334_v59 = vld [vmem:[%s6702_s28 + $0x10] sm:$0xff] }
 0x158   : > { %v5536_v8 = vpop.f32.mrf.mxu0  ;;  %v6119_v42 = vpop.eup %6118  ;;  %v1669_v25 = vpack.c.bf16 %v1657_v58, %v1656_v51  ;;  %5897 = vset.pattern.permute.xlu1 %v6398_v24 }
 0x159   : > { %v2126_v19 = vmul.f32 0.70710677, %v7284_v63  ;;  %v7296_v6 = vadd.f32 %v5536_v8, %v7261_v56  ;;  %v6121_v32 = vpop.eup %6120  ;;  %v1668_v36 = vpack.c.bf16 %v1655_v20, %v1654_v17  ;;  %6134 = verf.f32 %v2128_v47  ;;  %3421 = vperm.xlu1 %5897, %v7206_v11   ;;  %2941 = vperm.xlu0 %5895, %v7318_v13   ;;  %v7340_v17 = vld [vmem:[%s6702_s28 + $0x70] sm:$0xff] }
 0x15a   : > { %5552 = vmatpush3.bf16.msra.mxu1 %v5999_v38  ;;  %v2050_v50 = vpop.f32.mrf.mxu0  ;;  %v6123_v31 = vpop.eup %6122  ;;  %v1642_v10 = vadd.f32 1.0, %v6119_v42  ;;  %v1644_v45 = vadd.f32 1.0, %v6121_v32  ;;  %v1594_v38 = vmul.f32 0.5, %v7190_v9  ;;  %v6002_v9 = vld [vmem:[%s8799_s3 + $0xd8] sm:$0xff]  }
 0x15b   : > { %v2129_v41 = vmul.f32 0.70710677, %v7296_v6  ;;  %5553 = vmatprep.subr.bf16.mxu1 %v6000_v40  ;;  %v1645_v29 = vadd.f32 1.0, %v6123_v31  ;;  %6136 = verf.f32 %v2126_v19  ;;  %v7310_v28 = vadd.f32 %v7261_v56, %v2050_v50  ;;  %5505 = vmatprep.mubr.bf16.mxu1 %v1668_v36  ;;  %v6003_v31 = vld [vmem:[%s8799_s3 + $0xd0] sm:$0xff]  }
 0x15c   : > { %v5539_v0 = vpop.f32.mrf.mxu0  ;;  %v6125_v33 = vpop.eup %6124  ;;  %v1658_v5 = vmul.f32 %v1642_v10, %v1594_v38  ;;  %v1660_v58 = vmul.f32 %v1644_v45, %v1596_v2  ;;  %v1601_v19 = vmul.f32 0.5, %v7246_v34  ;;  %v1599_v10 = vmul.f32 0.5, %v7256_v48 }
 0x15d   : > { %6138 = verf.f32 %v2129_v41  ;;  %5506 = vmatmul.mubr.bf16.gmra.mxu1 %v1669_v25  ;;  %v7315_v21 = vadd.f32 %v5539_v0, %v7261_v56  ;;  %v1643_v54 = vadd.f32 1.0, %v6125_v33  ;;  %v2127_v55 = vmul.f32 0.70710677, %v7310_v28  ;;  %3425 = vperm.xlu1 %5897, %v7334_v59  }
 0x15e   : > { %5554 = vmatpush3.bf16.msra.mxu1 %v6000_v40  ;;  %v2063_v37 = vpop.f32.mrf.mxu0  ;;  %v1661_v44 = vmul.f32 %v1645_v29, %v1597_v3  ;;  %v6127_v14 = vpop.eup %6126  ;;  %2949 = vperm.xlu0 %5895, %v7340_v17   ;;  %v1600_v45 = vmul.f32 0.5, %v7223_v53  ;;  %v1598_v48 = vmul.f32 0.5, %v7243_v7  ;;  %v6004_v53 = vld [vmem:[%s8799_s3 + $0xc8] sm:$0xff]  }
 0x15f   : > { %v7326_v12 = vadd.f32 %v7261_v56, %v2063_v37  ;;  %5555 = vmatprep.subr.bf16.mxu1 %v6001_v39  ;;  %v1659_v4 = vmul.f32 %v1643_v54, %v1595_v26  ;;  %6140 = verf.f32 %v2127_v55  ;;  %v2132_v20 = vmul.f32 0.70710677, %v7315_v21  ;;  %v7363_v26 = vpop.permute.xlu1 %827  ;;  %v7366_v54 = vld [vmem:[%s6702_s28] sm:$0xff] }
 0x160   : > { %v5540_v52 = vpop.f32.mrf.mxu0  ;;  %v1671_v36 = vpack.c.bf16 %v1661_v44, %v1660_v58  ;;  %v1648_v29 = vadd.f32 1.0, %v6127_v14  ;;  %8805 = vst [vmem:[#allocation5_spill] sm:$0xff] %v7363_v26 }
 0x161   : > { %v6129_v62 = vpop.eup %6128  ;;  %v2130_v40 = vmul.f32 0.70710677, %v7326_v12  ;;  %v7344_v8 = vadd.f32 %v5540_v52, %v7261_v56  ;;  %v1670_v51 = vpack.c.bf16 %v1659_v4, %v1658_v5  ;;  %3433 = vperm.xlu1 %5897, %v7226_v18  }
 0x162   : > { %v6131_v47 = vpop.eup %6130  ;;  %5556 = vmatpush3.bf16.msra.mxu1 %v6001_v39  ;;  %v2066_v42 = vpop.f32.mrf.mxu0  ;;  %v1646_v25 = vadd.f32 1.0, %v6129_v62  ;;  %5896 = vset.pattern.permute.xlu0 %v6398_v24  ;;  %v1664_v14 = vmul.f32 %v1648_v29, %v1600_v45  ;;  %v2111_v29 = vmul.f32 0.5, %v7310_v28 }
 0x163   : > { %v1649_v32 = vadd.f32 1.0, %v6131_v47  ;;  %v7348_v50 = vadd.f32 %v7261_v56, %v2066_v42  ;;  %5557 = vmatprep.subr.bf16.mxu1 %v6002_v9  ;;  %6142 = verf.f32 %v2130_v40  ;;  %v2133_v39 = vmul.f32 0.70710677, %v7344_v8  ;;  %5509 = vmatprep.mubr.bf16.mxu1 %v1670_v51  ;;  %v7382_v40 = vld [vmem:[%s6702_s28 + $0x18] sm:$0xff] }
 0x164   : > { %v6133_v41 = vpop.eup %6132  ;;  %v5543_v34 = vpop.f32.mrf.mxu0  ;;  %6144 = verf.f32 %v2132_v20  ;;  %3417 = vperm.xlu0 %5896, %v7366_v54   ;;  %v1662_v2 = vmul.f32 %v1646_v25, %v1598_v48  ;;  %v2110_v47 = vmul.f32 0.5, %v7284_v63  ;;  %v2112_v48 = vmul.f32 0.5, %v7281_v15 }
 0x165   : > { %v1647_v0 = vadd.f32 1.0, %v6133_v41  ;;  %v2131_v33 = vmul.f32 0.70710677, %v7348_v50  ;;  %5510 = vmatmul.mubr.bf16.gmra.mxu1 %v1671_v36  ;;  %6146 = verf.f32 %v2133_v39  ;;  %v7361_v3 = vadd.f32 %v5543_v34, %v7261_v56  ;;  %3441 = vperm.xlu1 %5897, %v7249_v49   ;;  %v7393_v25 = vpop.permute.xlu1 %837 }
 0x166   : > { %5558 = vmatpush3.bf16.msra.mxu1 %v6002_v9  ;;  %v2079_v38 = vpop.f32.mrf.mxu0  ;;  %v1665_v55 = vmul.f32 %v1649_v32, %v1601_v19  ;;  %v6135_v7 = vpop.eup %6134  ;;  %v6005_v19 = vld [vmem:[%s8799_s3 + $0xc0] sm:$0xff]   ;;  %8806 = vst [vmem:[#allocation6_spill] sm:$0xff] %v7393_v25  ;;  %v2113_v39 = vmul.f32 0.5, %v7296_v6 }
 0x167   : > { %v1663_v37 = vmul.f32 %v1647_v0, %v1599_v10  ;;  %6148 = verf.f32 %v2131_v33  ;;  %v7370_v24 = vadd.f32 %v7261_v56, %v2079_v38  ;;  %5559 = vmatprep.subr.bf16.mxu1 %v6003_v31  ;;  %v2136_v5 = vmul.f32 0.70710677, %v7361_v3 }
 0x168   : > { %v5544_v44 = vpop.f32.mrf.mxu0  ;;  %v6137_v9 = vpop.eup %6136  ;;  %3429 = vperm.xlu0 %5896, %v7382_v40   ;;  %v1673_v51 = vpack.c.bf16 %v1665_v55, %v1664_v14  ;;  %v2160_v10 = vadd.f32 1.0, %v6135_v7  ;;  %v6006_v55 = vld [vmem:[%s8799_s3 + $0x138] sm:$0xff]   ;;  %v2117_v14 = vmul.f32 0.5, %v7344_v8  ;;  %v7427_v8 = vld [vmem:[%s8798_s2 + $0x4] ss:$0 sm:$0xff] }
 0x169   : > { %v2134_v4 = vmul.f32 0.70710677, %v7370_v24  ;;  %v7379_v52 = vadd.f32 %v5544_v44, %v7261_v56  ;;  %v1672_v20 = vpack.c.bf16 %v1663_v37, %v1662_v2  ;;  %v2158_v32 = vadd.f32 1.0, %v6137_v9  ;;  %3449 = vperm.xlu1 %5897, %v7275_v46  }
 0x16a   : > { %v6139_v62 = vpop.eup %6138  ;;  %5560 = vmatpush3.bf16.msra.mxu1 %v6003_v31  ;;  %v2082_v58 = vpop.f32.mrf.mxu0  ;;  %v2176_v44 = vmul.f32 %v2160_v10, %v2112_v48 }
 0x16b   : > { %v2161_v42 = vadd.f32 1.0, %v6139_v62  ;;  %5561 = vmatprep.subr.bf16.mxu1 %v6004_v53  ;;  %6150 = verf.f32 %v2134_v4  ;;  %v2137_v36 = vmul.f32 0.70710677, %v7379_v52  ;;  %v7391_v31 = vadd.f32 %v7261_v56, %v2082_v58  ;;  %5513 = vmatprep.mubr.bf16.mxu1 %v1672_v20  ;;  %v7417_v58 = vpop.permute.xlu1 %847  ;;  %v7440_v48 = vpop.permute.xlu0 %782 }
 0x16c   : > { %v5547_v41 = vpop.f32.mrf.mxu0  ;;  %v6141_v63 = vpop.eup %6140  ;;  %6152 = verf.f32 %v2136_v5  ;;  %3437 = vperm.xlu0 %5896, %v7177_v43   ;;  %v2174_v37 = vmul.f32 %v2158_v32, %v2110_v47  ;;  %8807 = vst [vmem:[#allocation7_spill] sm:$0xff] %v7417_v58 }
 0x16d   : > { %5514 = vmatmul.mubr.bf16.gmra.mxu1 %v1673_v51  ;;  %v7398_v34 = vadd.f32 %v5547_v41, %v7261_v56  ;;  %v2159_v0 = vadd.f32 1.0, %v6141_v63  ;;  %6154 = verf.f32 %v2137_v36  ;;  %v2135_v33 = vmul.f32 0.70710677, %v7391_v31  ;;  %3457 = vperm.xlu1 %5897, %v7299_v30  }
 0x16e   : > { %5562 = vmatpush3.bf16.msra.mxu1 %v6004_v53  ;;  %v2095_v45 = vpop.f32.mrf.mxu0  ;;  %v2177_v38 = vmul.f32 %v2161_v42, %v2113_v39  ;;  %v2115_v63 = vmul.f32 0.5, %v7348_v50 }
 0x16f   : > { %v2140_v6 = vmul.f32 0.70710677, %v7398_v34  ;;  %5563 = vmatprep.subr.bf16.mxu1 %v6005_v19  ;;  %v2175_v28 = vmul.f32 %v2159_v0, %v2111_v29  ;;  %6156 = verf.f32 %v2135_v33  ;;  %v7409_v7 = vadd.f32 %v7261_v56, %v2095_v45 }
 0x170   : > { %v5548_v53 = vpop.f32.mrf.mxu0  ;;  %v6143_v2 = vpop.eup %6142  ;;  %3445 = vperm.xlu0 %5896, %v7196_v27   ;;  %v2191_v47 = vpack.c.bf16 %v2177_v38, %v2176_v44  ;;  %v2116_v0 = vmul.f32 0.5, %v7315_v21  ;;  %v2114_v33 = vmul.f32 0.5, %v7326_v12  ;;  %v6008_v21 = vld [vmem:[%s8799_s3 + $0x128] sm:$0xff]  }
 0x171   : > { %v7413_v15 = vadd.f32 %v5548_v53, %v7261_v56  ;;  %v6145_v9 = vpop.eup %6144  ;;  %v2138_v5 = vmul.f32 0.70710677, %v7409_v7  ;;  %v2190_v62 = vpack.c.bf16 %v2175_v28, %v2174_v37  ;;  %6158 = verf.f32 %v2140_v6  ;;  %3465 = vperm.xlu1 %5897, %v7318_v13   ;;  %v7450_v53 = vpop.permute.xlu1 %857 }
 0x172   : > { %5564 = vmatpush3.bf16.msra.mxu1 %v6005_v19  ;;  %v2098_v4 = vpop.f32.mrf.mxu0  ;;  %v6147_v20 = vpop.eup %6146  ;;  %v6007_v19 = vld [vmem:[%s8799_s3 + $0x130] sm:$0xff]   ;;  %v2162_v36 = vadd.f32 1.0, %v6143_v2  ;;  %8808 = vst [vmem:[#allocation8_spill] sm:$0xff] %v7450_v53 }
 0x173   : > { %v2141_v42 = vmul.f32 0.70710677, %v7413_v15  ;;  %v7422_v51 = vadd.f32 %v7261_v56, %v2098_v4  ;;  %5613 = vmatprep.subr.bf16.mxu1 %v6006_v55  ;;  %v2165_v41 = vadd.f32 1.0, %v6147_v20  ;;  %6160 = verf.f32 %v2138_v5  ;;  %5565 = vmatprep.mubr.bf16.mxu1 %v2190_v62 }
 0x174   : > { %v6149_v32 = vpop.eup %6148  ;;  %v5599_v10 = vpop.f32.mrf.mxu0  ;;  %v2164_v56 = vadd.f32 1.0, %v6145_v9  ;;  %3453 = vperm.xlu0 %5896, %v7214_v61   ;;  %v2178_v12 = vmul.f32 %v2162_v36, %v2114_v33  ;;  %v2118_v33 = vmul.f32 0.5, %v7370_v24  ;;  %v6010_v24 = vld [vmem:[%s8799_s3 + $0x118] sm:$0xff]  }
 0x175   : > { %v2163_v39 = vadd.f32 1.0, %v6149_v32  ;;  %6162 = verf.f32 %v2141_v42  ;;  %v2139_v29 = vmul.f32 0.70710677, %v7422_v51  ;;  %5566 = vmatmul.mubr.bf16.vlgmr.msra.gmra.mxu1 %v2191_v47  ;;  %v7438_v45 = vadd.f32 %v5599_v10, %v7427_v8  ;;  %3473 = vperm.xlu1 %5897, %v7340_v17   ;;  %v6009_v32 = vld [vmem:[%s8799_s3 + $0x120] sm:$0xff]   ;;  %v7465_v10 = vpop.permute.xlu0 %787 }
 0x176   : > { %5614 = vmatpush3.bf16.msra.mxu1 %v6006_v55  ;;  %v2571_v50 = vpop.f32.mrf.mxu0  ;;  %v2181_v38 = vmul.f32 %v2165_v41, %v2117_v14  ;;  %v2180_v44 = vmul.f32 %v2164_v56, %v2116_v0 }
 0x177   : > { %v2179_v6 = vmul.f32 %v2163_v39, %v2115_v63  ;;  %6164 = verf.f32 %v2139_v29  ;;  %v7444_v37 = vadd.f32 %v7427_v8, %v2571_v50  ;;  %5615 = vmatprep.subr.bf16.mxu1 %v6007_v19  ;;  %v2652_v28 = vmul.f32 0.70710677, %v7438_v45 }
 0x178   : > { %v5600_v55 = vpop.f32.mrf.mxu0  ;;  %v6151_v2 = vpop.eup %6150  ;;  %3461 = vperm.xlu0 %5896, %v7239_v57   ;;  %v2193_v42 = vpack.c.bf16 %v2181_v38, %v2180_v44  ;;  %v2121_v29 = vmul.f32 0.5, %v7379_v52  ;;  %v2119_v50 = vmul.f32 0.5, %v7391_v31  ;;  %v2120_v52 = vmul.f32 0.5, %v7361_v3 }
 0x179   : > { %v2650_v9 = vmul.f32 0.70710677, %v7444_v37  ;;  %v7455_v14 = vadd.f32 %v5600_v55, %v7427_v8  ;;  %v6153_v5 = vpop.eup %6152  ;;  %v2192_v62 = vpack.c.bf16 %v2179_v6, %v2178_v12  ;;  %6166 = verf.f32 %v2652_v28  ;;  %v7474_v28 = vpop.permute.xlu1 %1325 }
 0x17a   : > { %5616 = vmatpush3.bf16.msra.mxu1 %v6007_v19  ;;  %v2574_v4 = vpop.f32.mrf.mxu0  ;;  %v6155_v20 = vpop.eup %6154  ;;  %v2166_v36 = vadd.f32 1.0, %v6151_v2  ;;  %v2168_v39 = vadd.f32 1.0, %v6153_v5 }
 0x17b   : > { %v2653_v47 = vmul.f32 0.70710677, %v7455_v14  ;;  %5617 = vmatprep.subr.bf16.mxu1 %v6008_v21  ;;  %v2169_v41 = vadd.f32 1.0, %v6155_v20  ;;  %6168 = verf.f32 %v2650_v9  ;;  %v7463_v63 = vadd.f32 %v7427_v8, %v2574_v4  ;;  %5569 = vmatprep.mubr.bf16.mxu1 %v2192_v62 }
 0x17c   : > { %v5603_v19 = vpop.f32.mrf.mxu0  ;;  %v6157_v56 = vpop.eup %6156  ;;  %3469 = vperm.xlu0 %5896, %v7267_v16   ;;  %v2182_v44 = vmul.f32 %v2166_v36, %v2118_v33  ;;  %v2184_v4 = vmul.f32 %v2168_v39, %v2120_v52  ;;  %v6399_v20 = vmov 6   ;;  %v2125_v36 = vmul.f32 0.5, %v7413_v15 }
 0x17d   : > { %6170 = verf.f32 %v2653_v47  ;;  %5570 = vmatmul.mubr.bf16.gmra.mxu1 %v2193_v42  ;;  %v7469_v0 = vadd.f32 %v5603_v19, %v7427_v8  ;;  %v2167_v38 = vadd.f32 1.0, %v6157_v56  ;;  %v2651_v6 = vmul.f32 0.70710677, %v7463_v63  ;;  %5898 = vset.pattern.permute.xlu1 %v6399_v20  ;;  %v7489_v56 = vpop.permute.xlu0 %802  ;;  %v7502_v52 = vpop.permute.xlu1 %1329 }
 0x17e   : > { %5618 = vmatpush3.bf16.msra.mxu1 %v6008_v21  ;;  %v2587_v12 = vpop.f32.mrf.mxu0  ;;  %v2185_v55 = vmul.f32 %v2169_v41, %v2121_v29  ;;  %v6159_v31 = vpop.eup %6158  ;;  %3941 = vperm.xlu1 %5898, %v7366_v54  }
 0x17f   : > { %v7479_v2 = vadd.f32 %v7427_v8, %v2587_v12  ;;  %5619 = vmatprep.subr.bf16.mxu1 %v6009_v32  ;;  %v2183_v9 = vmul.f32 %v2167_v38, %v2119_v50  ;;  %6172 = verf.f32 %v2651_v6  ;;  %v2656_v62 = vmul.f32 0.70710677, %v7469_v0  ;;  %v6011_v50 = vld [vmem:[%s8799_s3 + $0x110] sm:$0xff]  }
 0x180   : > { %v5604_v21 = vpop.f32.mrf.mxu0  ;;  %v6161_v5 = vpop.eup %6160  ;;  %v2195_v33 = vpack.c.bf16 %v2185_v55, %v2184_v4  ;;  %3477 = vperm.xlu0 %5896, %v7290_v1   ;;  %v2123_v6 = vmul.f32 0.5, %v7422_v51  ;;  %v2122_v4 = vmul.f32 0.5, %v7409_v7 }
 0x181   : > { %v2654_v3 = vmul.f32 0.70710677, %v7479_v2  ;;  %v7487_v42 = vadd.f32 %v5604_v21, %v7427_v8  ;;  %v2194_v19 = vpack.c.bf16 %v2183_v9, %v2182_v44  ;;  %v2170_v38 = vadd.f32 1.0, %v6161_v5 }
 0x182   : > { %v6163_v47 = vpop.eup %6162  ;;  %5620 = vmatpush3.bf16.msra.mxu1 %v6009_v32  ;;  %v2590_v41 = vpop.f32.mrf.mxu0  ;;  %v2172_v44 = vadd.f32 1.0, %v6159_v31  ;;  %v2124_v21 = vmul.f32 0.5, %v7398_v34  ;;  %3949 = vperm.xlu1 %5898, %v7334_v59   ;;  %v6012_v34 = vld [vmem:[%s8799_s3 + $0x108] sm:$0xff]  }
 0x183   : > { %v2173_v39 = vadd.f32 1.0, %v6163_v47  ;;  %v7494_v29 = vadd.f32 %v7427_v8, %v2590_v41  ;;  %5621 = vmatprep.subr.bf16.mxu1 %v6010_v24  ;;  %6174 = verf.f32 %v2654_v3  ;;  %v2657_v12 = vmul.f32 0.70710677, %v7487_v42  ;;  %5573 = vmatprep.mubr.bf16.mxu1 %v2194_v19  ;;  %v7517_v19 = vpop.permute.xlu0 %812 }
 0x184   : > { %v6165_v32 = vpop.eup %6164  ;;  %v5607_v15 = vpop.f32.mrf.mxu0  ;;  %6176 = verf.f32 %v2656_v62  ;;  %5899 = vset.pattern.permute.xlu0 %v6399_v20  ;;  %v2186_v62 = vmul.f32 %v2170_v38, %v2122_v4  ;;  %v2634_v38 = vmul.f32 0.5, %v7444_v37 }
 0x185   : > { %v2171_v55 = vadd.f32 1.0, %v6165_v32  ;;  %v2655_v9 = vmul.f32 0.70710677, %v7494_v29  ;;  %5574 = vmatmul.mubr.bf16.gmra.mxu1 %v2195_v33  ;;  %6178 = verf.f32 %v2657_v12  ;;  %v7508_v51 = vadd.f32 %v5607_v15, %v7427_v8  ;;  %3945 = vperm.xlu0 %5899, %v7206_v11   ;;  %v7525_v15 = vpop.permute.xlu1 %1337 }
 0x186   : > { %5622 = vmatpush3.bf16.msra.mxu1 %v6010_v24  ;;  %v2603_v5 = vpop.f32.mrf.mxu0  ;;  %v2189_v3 = vmul.f32 %v2173_v39, %v2125_v36  ;;  %v6167_v7 = vpop.eup %6166  ;;  %v2188_v36 = vmul.f32 %v2172_v44, %v2124_v21  ;;  %3953 = vperm.xlu1 %5898, %v7382_v40   ;;  %v6013_v44 = vld [vmem:[%s8799_s3 + $0x100] sm:$0xff]  }
 0x187   : > { %v2187_v47 = vmul.f32 %v2171_v55, %v2123_v6  ;;  %6180 = verf.f32 %v2655_v9  ;;  %v7512_v31 = vadd.f32 %v7427_v8, %v2603_v5  ;;  %5623 = vmatprep.subr.bf16.mxu1 %v6011_v50  ;;  %v2660_v39 = vmul.f32 0.70710677, %v7508_v51 }
 0x188   : > { %v5608_v41 = vpop.f32.mrf.mxu0  ;;  %v6169_v24 = vpop.eup %6168  ;;  %v2197_v55 = vpack.c.bf16 %v2189_v3, %v2188_v36  ;;  %v2684_v37 = vadd.f32 1.0, %v6167_v7  ;;  %v2637_v3 = vmul.f32 0.5, %v7455_v14 }
 0x189   : > { %v2658_v33 = vmul.f32 0.70710677, %v7512_v31  ;;  %v7523_v32 = vadd.f32 %v5608_v41, %v7427_v8  ;;  %v2196_v20 = vpack.c.bf16 %v2187_v47, %v2186_v62  ;;  %v2682_v9 = vadd.f32 1.0, %v6169_v24  ;;  %3957 = vperm.xlu0 %5899, %v7226_v18  }
 0x18a   : > { %v6171_v6 = vpop.eup %6170  ;;  %5624 = vmatpush3.bf16.msra.mxu1 %v6011_v50  ;;  %v2606_v12 = vpop.f32.mrf.mxu0  ;;  %v2635_v62 = vmul.f32 0.5, %v7463_v63  ;;  %3961 = vperm.xlu1 %5898, %v7177_v43   ;;  %v2636_v18 = vmul.f32 0.5, %v7438_v45  ;;  %v6014_v63 = vld [vmem:[%s8799_s3 + $0x178] sm:$0xff]  }
 0x18b   : > { %v2685_v11 = vadd.f32 1.0, %v6171_v6  ;;  %5625 = vmatprep.subr.bf16.mxu1 %v6012_v34  ;;  %6182 = verf.f32 %v2658_v33  ;;  %v2661_v21 = vmul.f32 0.70710677, %v7523_v32  ;;  %v7534_v50 = vadd.f32 %v7427_v8, %v2606_v12  ;;  %5577 = vmatprep.mubr.bf16.mxu1 %v2196_v20  ;;  %v7543_v33 = vpop.permute.xlu0 %822  ;;  %v7554_v20 = vpop.permute.xlu1 %1345 }
 0x18c   : > { %v5611_v4 = vpop.f32.mrf.mxu0  ;;  %v6173_v5 = vpop.eup %6172  ;;  %6184 = verf.f32 %v2660_v39  ;;  %v2698_v39 = vmul.f32 %v2682_v9, %v2634_v38  ;;  %v2700_v45 = vmul.f32 %v2684_v37, %v2636_v18 }
 0x18d   : > { %5578 = vmatmul.mubr.bf16.gmra.mxu1 %v2197_v55  ;;  %v7539_v47 = vadd.f32 %v5611_v4, %v7427_v8  ;;  %v2683_v41 = vadd.f32 1.0, %v6173_v5  ;;  %6186 = verf.f32 %v2661_v21  ;;  %v2659_v24 = vmul.f32 0.70710677, %v7534_v50  ;;  %3965 = vperm.xlu0 %5899, %v7249_v49  }
 0x18e   : > { %5626 = vmatpush3.bf16.msra.mxu1 %v6012_v34  ;;  %v2619_v36 = vpop.f32.mrf.mxu0  ;;  %v2701_v14 = vmul.f32 %v2685_v11, %v2637_v3  ;;  %v2641_v21 = vmul.f32 0.5, %v7487_v42  ;;  %3969 = vperm.xlu1 %5898, %v7196_v27   ;;  %v6015_v42 = vld [vmem:[%s8799_s3 + $0x170] sm:$0xff]  }
 0x18f   : > { %v2664_v7 = vmul.f32 0.70710677, %v7539_v47  ;;  %5627 = vmatprep.subr.bf16.mxu1 %v6013_v44  ;;  %v2699_v6 = vmul.f32 %v2683_v41, %v2635_v62  ;;  %6188 = verf.f32 %v2659_v24  ;;  %v7552_v34 = vadd.f32 %v7427_v8, %v2619_v36  ;;  %v7570_v62 = vld [vmem:[%s8798_s2 + $0x5] ss:$0 sm:$0xff] }
 0x190   : > { %v5612_v12 = vpop.f32.mrf.mxu0  ;;  %v6175_v43 = vpop.eup %6174  ;;  %v2715_v3 = vpack.c.bf16 %v2701_v14, %v2700_v45  ;;  %v2639_v24 = vmul.f32 0.5, %v7494_v29 }
 0x191   : > { %v7558_v11 = vadd.f32 %v5612_v12, %v7427_v8  ;;  %v6177_v55 = vpop.eup %6176  ;;  %v2662_v38 = vmul.f32 0.70710677, %v7552_v34  ;;  %v2714_v4 = vpack.c.bf16 %v2699_v6, %v2698_v39  ;;  %6190 = verf.f32 %v2664_v7  ;;  %3973 = vperm.xlu0 %5899, %v7275_v46  }
 0x192   : > { %5628 = vmatpush3.bf16.msra.mxu1 %v6013_v44  ;;  %v2622_v9 = vpop.f32.mrf.mxu0  ;;  %v6179_v5 = vpop.eup %6178  ;;  %v2686_v27 = vadd.f32 1.0, %v6175_v43  ;;  %v2688_v18 = vadd.f32 1.0, %v6177_v55  ;;  %v2640_v39 = vmul.f32 0.5, %v7469_v0  ;;  %v2638_v6 = vmul.f32 0.5, %v7479_v2  ;;  %3977 = vperm.xlu1 %5898, %v7214_v61   ;;  %v6016_v0 = vld [vmem:[%s8799_s3 + $0x168] sm:$0xff]  }
 0x193   : > { %v2665_v49 = vmul.f32 0.70710677, %v7558_v11  ;;  %v7565_v37 = vadd.f32 %v7427_v8, %v2622_v9  ;;  %5677 = vmatprep.subr.bf16.mxu1 %v6014_v63  ;;  %v2689_v41 = vadd.f32 1.0, %v6179_v5  ;;  %6192 = verf.f32 %v2662_v38  ;;  %5629 = vmatprep.mubr.bf16.mxu1 %v2714_v4  ;;  %v7576_v8 = vpop.permute.xlu0 %832  ;;  %v7585_v43 = vpop.permute.xlu1 %1353 }
 0x194   : > { %v6181_v44 = vpop.eup %6180  ;;  %v5663_v36 = vpop.f32.mrf.mxu0  ;;  %8809 = vst [vmem:[#allocation9_spill] sm:$0xff] %v7585_v43  ;;  %v2702_v2 = vmul.f32 %v2686_v27, %v2638_v6  ;;  %v2704_v4 = vmul.f32 %v2688_v18, %v2640_v39  ;;  %v2645_v6 = vmul.f32 0.5, %v7523_v32 }
 0x195   : > { %v2687_v14 = vadd.f32 1.0, %v6181_v44  ;;  %6194 = verf.f32 %v2665_v49  ;;  %v2663_v7 = vmul.f32 0.70710677, %v7565_v37  ;;  %5630 = vmatmul.mubr.bf16.vlgmr.msra.gmra.mxu1 %v2715_v3  ;;  %v7583_v12 = vadd.f32 %v5663_v36, %v7570_v62  ;;  %3981 = vperm.xlu0 %5899, %v7299_v30  }
 0x196   : > { %5678 = vmatpush3.bf16.msra.mxu1 %v6014_v63  ;;  %v3095_v29 = vpop.f32.mrf.mxu0  ;;  %v2705_v46 = vmul.f32 %v2689_v41, %v2641_v21  ;;  %3985 = vperm.xlu1 %5898, %v7239_v57  }
 0x197   : > { %v2703_v45 = vmul.f32 %v2687_v14, %v2639_v24  ;;  %6196 = verf.f32 %v2663_v7  ;;  %v7589_v55 = vadd.f32 %v7570_v62, %v3095_v29  ;;  %5679 = vmatprep.subr.bf16.mxu1 %v6015_v42  ;;  %v3176_v38 = vmul.f32 0.70710677, %v7583_v12  ;;  %v7600_v44 = vpop.permute.xlu0 %842  ;;  %v6017_v24 = vld [vmem:[%s8799_s3 + $0x160] sm:$0xff]   ;;  %v7610_v7 = vpop.permute.xlu1 %1361 }
 0x198   : > { %v5664_v63 = vpop.f32.mrf.mxu0  ;;  %v6183_v9 = vpop.eup %6182  ;;  %8810 = vst [vmem:[#allocation10_spill] sm:$0xff] %v7600_v44  ;;  %v2717_v30 = vpack.c.bf16 %v2705_v46, %v2704_v4  ;;  %8811 = vst [vmem:[#allocation11_spill] sm:$0xff] %v7610_v7  ;;  %v2642_v46 = vmul.f32 0.5, %v7512_v31  ;;  %v6018_v31 = vld [vmem:[%s8799_s3 + $0x158] sm:$0xff]  }
 0x199   : > { %v3174_v61 = vmul.f32 0.70710677, %v7589_v55  ;;  %v7598_v21 = vadd.f32 %v5664_v63, %v7570_v62  ;;  %v6185_v5 = vpop.eup %6184  ;;  %v2716_v49 = vpack.c.bf16 %v2703_v45, %v2702_v2  ;;  %6198 = verf.f32 %v3176_v38  ;;  %3989 = vperm.xlu0 %5899, %v7318_v13  }
 0x19a   : > { %5680 = vmatpush3.bf16.msra.mxu1 %v6015_v42  ;;  %v3098_v3 = vpop.f32.mrf.mxu0  ;;  %v6187_v27 = vpop.eup %6186  ;;  %v2690_v36 = vadd.f32 1.0, %v6183_v9  ;;  %v2692_v39 = vadd.f32 1.0, %v6185_v5  ;;  %v2643_v45 = vmul.f32 0.5, %v7534_v50  ;;  %3993 = vperm.xlu1 %5898, %v7267_v16   ;;  %v2644_v13 = vmul.f32 0.5, %v7508_v51 }
 0x19b   : > { %v3177_v41 = vmul.f32 0.70710677, %v7598_v21  ;;  %5681 = vmatprep.subr.bf16.mxu1 %v6016_v0  ;;  %v2693_v18 = vadd.f32 1.0, %v6187_v27  ;;  %6200 = verf.f32 %v3174_v61  ;;  %v7608_v42 = vadd.f32 %v7570_v62, %v3098_v3  ;;  %5633 = vmatprep.mubr.bf16.mxu1 %v2716_v49 }
 0x19c   : > { %v5667_v14 = vpop.f32.mrf.mxu0  ;;  %v6189_v57 = vpop.eup %6188  ;;  %v2706_v50 = vmul.f32 %v2690_v36, %v2642_v46  ;;  %v2708_v51 = vmul.f32 %v2692_v39, %v2644_v13  ;;  %v2646_v13 = vmul.f32 0.5, %v7552_v34  ;;  %v6020_v34 = vld [vmem:[%s8799_s3 + $0x148] sm:$0xff]  }
 0x19d   : > { %6202 = verf.f32 %v3177_v41  ;;  %5634 = vmatmul.mubr.bf16.gmra.mxu1 %v2717_v30  ;;  %v7615_v29 = vadd.f32 %v5667_v14, %v7570_v62  ;;  %v2691_v2 = vadd.f32 1.0, %v6189_v57  ;;  %v3175_v38 = vmul.f32 0.70710677, %v7608_v42  ;;  %3997 = vperm.xlu0 %5899, %v7340_v17   ;;  %v7637_v14 = vpop.permute.xlu1 %1369 }
 0x19e   : > { %5682 = vmatpush3.bf16.msra.mxu1 %v6016_v0  ;;  %v3111_v63 = vpop.f32.mrf.mxu0  ;;  %v2709_v9 = vmul.f32 %v2693_v18, %v2645_v6  ;;  %v6191_v4 = vpop.eup %6190  ;;  %v2648_v41 = vmul.f32 0.5, %v7539_v47  ;;  %8813 = vst [vmem:[#allocation13_spill] sm:$0xff] %v7637_v14  ;;  %4001 = vperm.xlu1 %5898, %v7290_v1   ;;  %v2649_v17 = vmul.f32 0.5, %v7558_v11  ;;  %v6019_v47 = vld [vmem:[%s8799_s3 + $0x150] sm:$0xff]  }
 0x19f   : > { %v7623_v32 = vadd.f32 %v7570_v62, %v3111_v63  ;;  %5683 = vmatprep.subr.bf16.mxu1 %v6017_v24  ;;  %v2707_v61 = vmul.f32 %v2691_v2, %v2643_v45  ;;  %6204 = verf.f32 %v3175_v38  ;;  %v7628_v0 = vpop.permute.xlu0 %852  ;;  %v3180_v3 = vmul.f32 0.70710677, %v7615_v29 }
 0x1a0   : > { %v5668_v5 = vpop.f32.mrf.mxu0  ;;  %8812 = vst [vmem:[#allocation12_spill] sm:$0xff] %v7628_v0  ;;  %v6193_v16 = vpop.eup %6192  ;;  %v2719_v6 = vpack.c.bf16 %v2709_v9, %v2708_v51  ;;  %v2647_v45 = vmul.f32 0.5, %v7565_v37  ;;  %v2696_v11 = vadd.f32 1.0, %v6191_v4 }
 0x1a1   : > { %v3178_v49 = vmul.f32 0.70710677, %v7623_v32  ;;  %v7635_v30 = vadd.f32 %v5668_v5, %v7570_v62  ;;  %v2718_v18 = vpack.c.bf16 %v2707_v61, %v2706_v50 }
 0x1a2   : > { %v6195_v27 = vpop.eup %6194  ;;  %5684 = vmatpush3.bf16.msra.mxu1 %v6017_v24  ;;  %v3114_v36 = vpop.f32.mrf.mxu0  ;;  %v2694_v24 = vadd.f32 1.0, %v6193_v16  ;;  %v6400_v16 = vmov 7  }
 0x1a3   : > { %v2697_v57 = vadd.f32 1.0, %v6195_v27  ;;  %v7642_v39 = vadd.f32 %v7570_v62, %v3114_v36  ;;  %5685 = vmatprep.subr.bf16.mxu1 %v6018_v31  ;;  %6206 = verf.f32 %v3178_v49  ;;  %v3181_v2 = vmul.f32 0.70710677, %v7635_v30  ;;  %5637 = vmatprep.mubr.bf16.mxu1 %v2718_v18  ;;  %v7654_v50 = vpop.permute.xlu0 %1321  ;;  %v7662_v49 = vpop.permute.xlu1 %1377  ;;  %v6318_v27 = vld [vmem:[%s6702_s28 + $0x8] sm:$0xff] }
 0x1a4   : > { %v6197_v46 = vpop.eup %6196  ;;  %v5671_v1 = vpop.f32.mrf.mxu0  ;;  %6208 = verf.f32 %v3180_v3  ;;  %5901 = vset.pattern.permute.xlu1 %v6400_v16  ;;  %v2710_v3 = vmul.f32 %v2694_v24, %v2646_v13  ;;  %8814 = vst [vmem:[#allocation14_spill] sm:$0xff] %v7662_v49  ;;  %5900 = vset.pattern.permute.xlu0 %v6400_v16  ;;  %v2712_v18 = vmul.f32 %v2696_v11, %v2648_v41  ;;  %v6021_v41 = vld [vmem:[%s8799_s3 + $0x140] sm:$0xff]   ;;  %v3159_v16 = vmul.f32 0.5, %v7608_v42 }
 0x1a5   : > { %v2695_v38 = vadd.f32 1.0, %v6197_v46  ;;  %v3179_v63 = vmul.f32 0.70710677, %v7642_v39  ;;  %5638 = vmatmul.mubr.bf16.gmra.mxu1 %v2719_v6  ;;  %6210 = verf.f32 %v3181_v2  ;;  %v7652_v9 = vadd.f32 %v5671_v1, %v7570_v62  ;;  %4469 = vperm.xlu1 %5901, %v6318_v27  }
 0x1a6   : > { %5686 = vmatpush3.bf16.msra.mxu1 %v6018_v31  ;;  %v3127_v37 = vpop.f32.mrf.mxu0  ;;  %v2713_v61 = vmul.f32 %v2697_v57, %v2649_v17  ;;  %v6199_v51 = vpop.eup %6198  ;;  %4465 = vperm.xlu0 %5900, %v7366_v54   ;;  %v3158_v2 = vmul.f32 0.5, %v7589_v55 }
 0x1a7   : > { %v2711_v5 = vmul.f32 %v2695_v38, %v2647_v45  ;;  %6212 = verf.f32 %v3179_v63  ;;  %v7657_v4 = vadd.f32 %v7570_v62, %v3127_v37  ;;  %5687 = vmatprep.subr.bf16.mxu1 %v6019_v47  ;;  %v3184_v17 = vmul.f32 0.70710677, %v7652_v9  ;;  %v7689_v27 = vpop.permute.xlu1 %1845 }
 0x1a8   : > { %v5672_v31 = vpop.f32.mrf.mxu0  ;;  %v6201_v36 = vpop.eup %6200  ;;  %v2721_v38 = vpack.c.bf16 %v2713_v61, %v2712_v18  ;;  %v3208_v37 = vadd.f32 1.0, %v6199_v51  ;;  %v3161_v61 = vmul.f32 0.5, %v7598_v21  ;;  %8815 = vst [vmem:[#allocation15_spill] sm:$0xff] %v7689_v27  ;;  %v3160_v21 = vmul.f32 0.5, %v7583_v12 }
 0x1a9   : > { %v3182_v57 = vmul.f32 0.70710677, %v7657_v4  ;;  %v7668_v6 = vadd.f32 %v5672_v31, %v7570_v62  ;;  %v2720_v45 = vpack.c.bf16 %v2711_v5, %v2710_v3  ;;  %v3206_v11 = vadd.f32 1.0, %v6201_v36  ;;  %4473 = vperm.xlu1 %5901, %v7334_v59  }
 0x1aa   : > { %v6203_v46 = vpop.eup %6202  ;;  %5688 = vmatpush3.bf16.msra.mxu1 %v6019_v47  ;;  %v3130_v24 = vpop.f32.mrf.mxu0  ;;  %4477 = vperm.xlu0 %5900, %v7382_v40   ;;  %v6022_v40 = vld [vmem:[%s8799_s3 + $0x1b8] sm:$0xff]  }
 0x1ab   : > { %v3209_v1 = vadd.f32 1.0, %v6203_v46  ;;  %5689 = vmatprep.subr.bf16.mxu1 %v6020_v34  ;;  %6214 = verf.f32 %v3182_v57  ;;  %v3185_v63 = vmul.f32 0.70710677, %v7668_v6  ;;  %v7677_v13 = vadd.f32 %v7570_v62, %v3130_v24  ;;  %5641 = vmatprep.mubr.bf16.mxu1 %v2720_v45  ;;  %v7679_v47 = vpop.permute.xlu0 %1333  ;;  %v6319_v57 = vld [vmem:[%s6702_s28 + $0x20] sm:$0xff]  ;;  %v6320_v45 = vld [vmem:[%s6702_s28 + $0x28] sm:$0xff] }
 0x1ac   : > { %v5675_v54 = vpop.f32.mrf.mxu0  ;;  %v6205_v55 = vpop.eup %6204  ;;  %6216 = verf.f32 %v3184_v17  ;;  %v3222_v42 = vmul.f32 %v3206_v11, %v3158_v2  ;;  %v3224_v24 = vmul.f32 %v3208_v37, %v3160_v21  ;;  %v3163_v21 = vmul.f32 0.5, %v7642_v39 }
 0x1ad   : > { %5642 = vmatmul.mubr.bf16.gmra.mxu1 %v2721_v38  ;;  %v7684_v5 = vadd.f32 %v5675_v54, %v7570_v62  ;;  %v3207_v3 = vadd.f32 1.0, %v6205_v55  ;;  %6218 = verf.f32 %v3185_v63  ;;  %v3183_v31 = vmul.f32 0.70710677, %v7677_v13  ;;  %4481 = vperm.xlu1 %5901, %v6319_v57   ;;  %v6322_v57 = vld [vmem:[%s6702_s28 + $0x38] sm:$0xff] }
 0x1ae   : > { %5690 = vmatpush3.bf16.msra.mxu1 %v6020_v34  ;;  %v3143_v59 = vpop.f32.mrf.mxu0  ;;  %v3225_v51 = vmul.f32 %v3209_v1, %v3161_v61  ;;  %4485 = vperm.xlu0 %5900, %v6320_v45   ;;  %v3165_v38 = vmul.f32 0.5, %v7635_v30  ;;  %v7715_v30 = vld [vmem:[%s8798_s2 + $0x6] ss:$0 sm:$0xff]  ;;  %v3162_v39 = vmul.f32 0.5, %v7623_v32 }
 0x1af   : > { %v3188_v36 = vmul.f32 0.70710677, %v7684_v5  ;;  %5691 = vmatprep.subr.bf16.mxu1 %v6021_v41  ;;  %v3223_v18 = vmul.f32 %v3207_v3, %v3159_v16  ;;  %6220 = verf.f32 %v3183_v31  ;;  %v7697_v17 = vadd.f32 %v7570_v62, %v3143_v59  ;;  %v7706_v54 = vpop.permute.xlu0 %1341 }
 0x1b0   : > { %v5676_v34 = vpop.f32.mrf.mxu0  ;;  %v6207_v46 = vpop.eup %6206  ;;  %8816 = vst [vmem:[#allocation16_spill] sm:$0xff] %v7706_v54  ;;  %v3239_v61 = vpack.c.bf16 %v3225_v51, %v3224_v24 }
 0x1b1   : > { %v7701_v12 = vadd.f32 %v5676_v34, %v7570_v62  ;;  %v6209_v1 = vpop.eup %6208  ;;  %v3186_v2 = vmul.f32 0.70710677, %v7697_v17  ;;  %v3238_v63 = vpack.c.bf16 %v3223_v18, %v3222_v42  ;;  %6222 = verf.f32 %v3188_v36  ;;  %v7721_v51 = vpop.permute.xlu1 %1853  ;;  %v6321_v36 = vld [vmem:[%s6702_s28 + $0x30] sm:$0xff] }
 0x1b2   : > { %5692 = vmatpush3.bf16.msra.mxu1 %v6021_v41  ;;  %v3146_v11 = vpop.f32.mrf.mxu0  ;;  %v6211_v55 = vpop.eup %6210  ;;  %v6023_v41 = vld [vmem:[%s8799_s3 + $0x1b0] sm:$0xff]   ;;  %v3210_v31 = vadd.f32 1.0, %v6207_v46  ;;  %8817 = vst [vmem:[#allocation17_spill] sm:$0xff] %v7721_v51  ;;  %4489 = vperm.xlu1 %5901, %v6321_v36   ;;  %v3212_v42 = vadd.f32 1.0, %v6209_v1  ;;  %v3164_v46 = vmul.f32 0.5, %v7615_v29 }
 0x1b3   : > { %v3189_v37 = vmul.f32 0.70710677, %v7701_v12  ;;  %v7710_v16 = vadd.f32 %v7570_v62, %v3146_v11  ;;  %5741 = vmatprep.subr.bf16.mxu1 %v6022_v40  ;;  %v3213_v59 = vadd.f32 1.0, %v6211_v55  ;;  %6224 = verf.f32 %v3186_v2  ;;  %5693 = vmatprep.mubr.bf16.mxu1 %v3238_v63  ;;  %v6024_v63 = vld [vmem:[%s8799_s3 + $0x1a8] sm:$0xff]  }
 0x1b4   : > { %v6213_v3 = vpop.eup %6212  ;;  %v5727_v62 = vpop.f32.mrf.mxu0  ;;  %4493 = vperm.xlu0 %5900, %v6322_v57   ;;  %v3226_v29 = vmul.f32 %v3210_v31, %v3162_v39 }
 0x1b5   : > { %v3211_v18 = vadd.f32 1.0, %v6213_v3  ;;  %6226 = verf.f32 %v3189_v37  ;;  %v3187_v34 = vmul.f32 0.70710677, %v7710_v16  ;;  %5694 = vmatmul.mubr.bf16.vlgmr.msra.gmra.mxu1 %v3239_v61  ;;  %v7729_v24 = vadd.f32 %v5727_v62, %v7715_v30  ;;  %v7738_v61 = vpop.permute.xlu0 %1349 }
 0x1b6   : > { %5742 = vmatpush3.bf16.msra.mxu1 %v6022_v40  ;;  %v3619_v45 = vpop.f32.mrf.mxu0  ;;  %v3229_v2 = vmul.f32 %v3213_v59, %v3165_v38  ;;  %v6323_v40 = vld [vmem:[%s6702_s28 + $0x40] sm:$0xff]  ;;  %v3228_v37 = vmul.f32 %v3212_v42, %v3164_v46 }
 0x1b7   : > { %v3227_v1 = vmul.f32 %v3211_v18, %v3163_v21  ;;  %6228 = verf.f32 %v3187_v34  ;;  %v7732_v11 = vadd.f32 %v7715_v30, %v3619_v45  ;;  %5743 = vmatprep.subr.bf16.mxu1 %v6023_v41  ;;  %v3700_v32 = vmul.f32 0.70710677, %v7729_v24  ;;  %4497 = vperm.xlu1 %5901, %v6323_v40   ;;  %v6324_v21 = vld [vmem:[%s6702_s28 + $0x48] sm:$0xff]  ;;  %v7746_v18 = vpop.permute.xlu1 %1857  ;;  %v6025_v42 = vld [vmem:[%s8799_s3 + $0x1a0] sm:$0xff]   ;;  %v6326_v40 = vld [vmem:[%s6702_s28 + $0x58] sm:$0xff] }
 0x1b8   : > { %v5728_v55 = vpop.f32.mrf.mxu0  ;;  %v6215_v38 = vpop.eup %6214  ;;  %4501 = vperm.xlu0 %5900, %v6324_v21   ;;  %8818 = vst [vmem:[#allocation18_spill] sm:$0xff] %v7746_v18  ;;  %v3241_v39 = vpack.c.bf16 %v3229_v2, %v3228_v37  ;;  %v3169_v2 = vmul.f32 0.5, %v7668_v6  ;;  %v3166_v37 = vmul.f32 0.5, %v7657_v4  ;;  %v6026_v4 = vld [vmem:[%s8799_s3 + $0x198] sm:$0xff]  }
 0x1b9   : > { %v3698_v3 = vmul.f32 0.70710677, %v7732_v11  ;;  %v7743_v59 = vadd.f32 %v5728_v55, %v7715_v30  ;;  %v6217_v62 = vpop.eup %6216  ;;  %v3240_v36 = vpack.c.bf16 %v3227_v1, %v3226_v29  ;;  %6230 = verf.f32 %v3700_v32  ;;  %v6325_v29 = vld [vmem:[%s6702_s28 + $0x50] sm:$0xff] }
 0x1ba   : > { %5744 = vmatpush3.bf16.msra.mxu1 %v6023_v41  ;;  %v3622_v31 = vpop.f32.mrf.mxu0  ;;  %v6219_v34 = vpop.eup %6218  ;;  %v3214_v46 = vadd.f32 1.0, %v6215_v38  ;;  %v3216_v55 = vadd.f32 1.0, %v6217_v62  ;;  %v3167_v38 = vmul.f32 0.5, %v7677_v13  ;;  %v3168_v62 = vmul.f32 0.5, %v7652_v9 }
 0x1bb   : > { %v3701_v57 = vmul.f32 0.70710677, %v7743_v59  ;;  %5745 = vmatprep.subr.bf16.mxu1 %v6024_v63  ;;  %v3217_v45 = vadd.f32 1.0, %v6219_v34  ;;  %6232 = verf.f32 %v3698_v3  ;;  %v7753_v41 = vadd.f32 %v7715_v30, %v3622_v31  ;;  %5697 = vmatprep.mubr.bf16.mxu1 %v3240_v36  ;;  %v7761_v36 = vpop.permute.xlu0 %1357 }
 0x1bc   : > { %v5731_v1 = vpop.f32.mrf.mxu0  ;;  %4505 = vperm.xlu1 %5901, %v6325_v29   ;;  %v6221_v32 = vpop.eup %6220  ;;  %4509 = vperm.xlu0 %5900, %v6326_v40   ;;  %8819 = vst [vmem:[#allocation19_spill] sm:$0xff] %v7761_v36 }
 0x1bd   : > { %6234 = verf.f32 %v3701_v57  ;;  %5698 = vmatmul.mubr.bf16.gmra.mxu1 %v3241_v39  ;;  %v3215_v3 = vadd.f32 1.0, %v6221_v32  ;;  %v3699_v21 = vmul.f32 0.70710677, %v7753_v41  ;;  %v3233_v34 = vmul.f32 %v3217_v45, %v3169_v2  ;;  %v7770_v29 = vpop.permute.xlu1 %1865  ;;  %v6327_v32 = vld [vmem:[%s6702_s28 + $0x60] sm:$0xff] }
 0x1be   : > { %5746 = vmatpush3.bf16.msra.mxu1 %v6024_v63  ;;  %v3635_v31 = vpop.f32.mrf.mxu0  ;;  %v6223_v13 = vpop.eup %6222  ;;  %v3230_v57 = vmul.f32 %v3214_v46, %v3166_v37  ;;  %8820 = vst [vmem:[#allocation20_spill] sm:$0xff] %v7770_v29  ;;  %v3232_v45 = vmul.f32 %v3216_v55, %v3168_v62  ;;  %v7774_v2 = vadd.f32 %v5731_v1, %v7715_v30 }
 0x1bf   : > { %v7765_v6 = vadd.f32 %v7715_v30, %v3635_v31  ;;  %5747 = vmatprep.subr.bf16.mxu1 %v6025_v42  ;;  %v3231_v39 = vmul.f32 %v3215_v3, %v3167_v38  ;;  %6236 = verf.f32 %v3699_v21  ;;  %v6328_v31 = vld [vmem:[%s6702_s28 + $0x68] sm:$0xff]  ;;  %v3173_v38 = vmul.f32 0.5, %v7701_v12  ;;  %v6027_v21 = vld [vmem:[%s8799_s3 + $0x190] sm:$0xff]  }
 0x1c0   : > { %v5732_v63 = vpop.f32.mrf.mxu0  ;;  %4513 = vperm.xlu1 %5901, %v6327_v32   ;;  %v6225_v9 = vpop.eup %6224  ;;  %4517 = vperm.xlu0 %5900, %v6328_v31   ;;  %v3243_v1 = vpack.c.bf16 %v3233_v34, %v3232_v45  ;;  %v3704_v45 = vmul.f32 0.70710677, %v7774_v2 }
 0x1c1   : > { %v3702_v40 = vmul.f32 0.70710677, %v7765_v6  ;;  %v7779_v27 = vadd.f32 %v5732_v63, %v7715_v30  ;;  %v3242_v37 = vpack.c.bf16 %v3231_v39, %v3230_v57  ;;  %v3220_v63 = vadd.f32 1.0, %v6223_v13  ;;  %v6329_v39 = vld [vmem:[%s6702_s28 + $0x70] sm:$0xff] }
 0x1c2   : > { %v6227_v18 = vpop.eup %6226  ;;  %5748 = vmatpush3.bf16.msra.mxu1 %v6025_v42  ;;  %v3638_v46 = vpop.f32.mrf.mxu0  ;;  %v3218_v32 = vadd.f32 1.0, %v6225_v9  ;;  %v3171_v42 = vmul.f32 0.5, %v7710_v16  ;;  %v3172_v13 = vmul.f32 0.5, %v7684_v5  ;;  %v3170_v16 = vmul.f32 0.5, %v7697_v17  ;;  %v6028_v5 = vld [vmem:[%s8799_s3 + $0x188] sm:$0xff]  }
 0x1c3   : > { %v3221_v3 = vadd.f32 1.0, %v6227_v18  ;;  %v7783_v55 = vadd.f32 %v7715_v30, %v3638_v46  ;;  %5749 = vmatprep.subr.bf16.mxu1 %v6026_v4  ;;  %v3705_v57 = vmul.f32 0.70710677, %v7779_v27  ;;  %5701 = vmatprep.mubr.bf16.mxu1 %v3242_v37  ;;  %v7790_v18 = vpop.permute.xlu0 %1365  ;;  %6238 = verf.f32 %v3702_v40  ;;  %v6330_v46 = vld [vmem:[%s6702_s28 + $0x78] sm:$0xff]  ;;  %s8748_s28 = scalar_lea.hbm %s8802_s6, %s5068_s9 }
 0x1c4   : > { %v6229_v62 = vpop.eup %6228  ;;  %v5735_v12 = vpop.f32.mrf.mxu0  ;;  %8821 = vst [vmem:[#allocation21_spill] sm:$0xff] %v7790_v18  ;;  %4521 = vperm.xlu1 %5901, %v6329_v39   ;;  %4525 = vperm.xlu0 %5900, %v6330_v46   ;;  %v3236_v46 = vmul.f32 %v3220_v63, %v3172_v13  ;;  %v6029_v63 = vld [vmem:[%s8799_s3 + $0x180] sm:$0xff]  }
 0x1c5   : > { %v3219_v34 = vadd.f32 1.0, %v6229_v62  ;;  %v3703_v31 = vmul.f32 0.70710677, %v7783_v55  ;;  %5702 = vmatmul.mubr.bf16.gmra.mxu1 %v3243_v1  ;;  %6240 = verf.f32 %v3705_v57  ;;  %v7799_v9 = vadd.f32 %v5735_v12, %v7715_v30  ;;  %v7801_v39 = vpop.permute.xlu1 %1873 }
 0x1c6   : > { %5750 = vmatpush3.bf16.msra.mxu1 %v6026_v4  ;;  %v3651_v37 = vpop.f32.mrf.mxu0  ;;  %8822 = vst [vmem:[#allocation22_spill] sm:$0xff] %v7801_v39  ;;  %v3237_v62 = vmul.f32 %v3221_v3, %v3173_v38  ;;  %v6231_v17 = vpop.eup %6230  ;;  %v3234_v1 = vmul.f32 %v3218_v32, %v3170_v16 }
 0x1c7   : > { %v3235_v29 = vmul.f32 %v3219_v34, %v3171_v42  ;;  %6242 = verf.f32 %v3703_v31  ;;  %v7804_v40 = vadd.f32 %v7715_v30, %v3651_v37  ;;  %5751 = vmatprep.subr.bf16.mxu1 %v6027_v21  ;;  %v3708_v4 = vmul.f32 0.70710677, %v7799_v9  ;;  %v7814_v37 = vpop.permute.xlu0 %1373 }
 0x1c8   : > { %v5736_v57 = vpop.f32.mrf.mxu0  ;;  %v6233_v12 = vpop.eup %6232  ;;  %6244 = verf.f32 %v3704_v45  ;;  %8823 = vst [vmem:[#allocation23_spill] sm:$0xff] %v7814_v37  ;;  %v3245_v51 = vpack.c.bf16 %v3237_v62, %v3236_v46  ;;  %v3685_v62 = vmul.f32 0.5, %v7743_v59  ;;  %v3683_v46 = vmul.f32 0.5, %v7753_v41 }
 0x1c9   : > { %v7811_v38 = vadd.f32 %v5736_v57, %v7715_v30  ;;  %v3706_v42 = vmul.f32 0.70710677, %v7804_v40  ;;  %v3244_v31 = vpack.c.bf16 %v3235_v29, %v3234_v1  ;;  %v3730_v32 = vadd.f32 1.0, %v6233_v12 }
 0x1ca   : > { %v6235_v3 = vpop.eup %6234  ;;  %5752 = vmatpush3.bf16.msra.mxu1 %v6027_v21  ;;  %v3654_v34 = vpop.f32.mrf.mxu0  ;;  %v3732_v1 = vadd.f32 1.0, %v6231_v17  ;;  %v3682_v57 = vmul.f32 0.5, %v7732_v11  ;;  %6246 = verf.f32 %v3708_v4  ;;  %v6030_v11 = vld [vmem:[%s8799_s3 + $0x1f8] sm:$0xff]  }
 0x1cb   : > { %v3733_v39 = vadd.f32 1.0, %v6235_v3  ;;  %5753 = vmatprep.subr.bf16.mxu1 %v6028_v5  ;;  %v3709_v45 = vmul.f32 0.70710677, %v7811_v38  ;;  %v7821_v13 = vadd.f32 %v7715_v30, %v3654_v34  ;;  %5705 = vmatprep.mubr.bf16.mxu1 %v3244_v31  ;;  %v7823_v21 = vpop.permute.xlu1 %1881  ;;  %6248 = verf.f32 %v3706_v42  ;;  %v7833_v41 = vpop.permute.xlu0 %1381 }
 0x1cc   : > { %v5739_v16 = vpop.f32.mrf.mxu0  ;;  %8824 = vst [vmem:[#allocation24_spill] sm:$0xff] %v7823_v21  ;;  %v6237_v29 = vpop.eup %6236  ;;  %v3684_v31 = vmul.f32 0.5, %v7729_v24  ;;  %v3746_v59 = vmul.f32 %v3730_v32, %v3682_v57  ;;  %8825 = vst [vmem:[#allocation25_spill] sm:$0xff] %v7833_v41  ;;  %v3693_v0 = vmul.f32 0.5, %v7811_v38 }
 0x1cd   : > { %5706 = vmatmul.mubr.bf16.gmra.mxu1 %v3245_v51  ;;  %v3731_v12 = vadd.f32 1.0, %v6237_v29  ;;  %v3707_v3 = vmul.f32 0.70710677, %v7821_v13  ;;  %v3749_v37 = vmul.f32 %v3733_v39, %v3685_v62  ;;  %6250 = verf.f32 %v3709_v45 }
 0x1ce   : > { %5754 = vmatpush3.bf16.msra.mxu1 %v6028_v5  ;;  %v3667_v34 = vpop.f32.mrf.mxu0  ;;  %v3748_v4 = vmul.f32 %v3732_v1, %v3684_v31  ;;  %v7842_v39 = vadd.f32 %v5739_v16, %v7715_v30  ;;  %v6031_v1 = vld [vmem:[%s8799_s3 + $0x1f0] sm:$0xff]  }
 0x1cf   : > { %5755 = vmatprep.subr.bf16.mxu1 %v6029_v63  ;;  %v3747_v17 = vmul.f32 %v3731_v12, %v3683_v46  ;;  %6252 = verf.f32 %v3707_v3  ;;  %v7836_v42 = vadd.f32 %v7715_v30, %v3667_v34  ;;  %v7844_v32 = vpop.permute.xlu1 %1889 }
 0x1d0   : > { %v5740_v51 = vpop.f32.mrf.mxu0  ;;  %v6239_v24 = vpop.eup %6238  ;;  %8826 = vst [vmem:[#allocation26_spill] sm:$0xff] %v7844_v32  ;;  %v3763_v62 = vpack.c.bf16 %v3749_v37, %v3748_v4 }
 0x1d1   : > { %v7839_v5 = vadd.f32 %v5740_v51, %v7715_v30  ;;  %v3762_v29 = vpack.c.bf16 %v3747_v17, %v3746_v59  ;;  %v3710_v31 = vmul.f32 0.70710677, %v7836_v42  ;;  %v3712_v17 = vmul.f32 0.70710677, %v7842_v39 }
 0x1d2   : > { %5756 = vmatpush3.bf16.msra.mxu1 %v6029_v63  ;;  %v3670_v45 = vpop.f32.mrf.mxu0  ;;  %v6241_v57 = vpop.eup %6240  ;;  %v3734_v4 = vadd.f32 1.0, %v6239_v24  ;;  %v3689_v24 = vmul.f32 0.5, %v7779_v27 }
 0x1d3   : > { %v7847_v46 = vadd.f32 %v7715_v30, %v3670_v45  ;;  %5805 = vmatprep.subr.bf16.mxu1 %v6030_v11  ;;  %v3713_v3 = vmul.f32 0.70710677, %v7839_v5  ;;  %5757 = vmatprep.mubr.bf16.mxu1 %v3762_v29  ;;  %v7853_v63 = vpop.permute.xlu0 %1849  ;;  %v3737_v45 = vadd.f32 1.0, %v6241_v57  ;;  %v3687_v29 = vmul.f32 0.5, %v7783_v55  ;;  %v7873_v55 = vpop.permute.xlu1 %1897 }
 0x1d4   : > { %v6243_v12 = vpop.eup %6242  ;;  %v5791_v16 = vpop.f32.mrf.mxu0  ;;  %8827 = vst [vmem:[#allocation27_spill] sm:$0xff] %v7853_v63  ;;  %8828 = vst [vmem:[#allocation28_spill] sm:$0xff] %v7873_v55 }
 0x1d5   : > { %v3735_v34 = vadd.f32 1.0, %v6243_v12  ;;  %v3711_v37 = vmul.f32 0.70710677, %v7847_v46  ;;  %v7857_v59 = vpop.f32.mrf.mxu1  ;;  %5758 = vmatmul.mubr.bf16.vlgmr.msra.gmra.mxu1 %v3763_v62  ;;  %v6245_v30 = vpop.eup %6244  ;;  %v7864_v12 = vld [vmem:[%s8798_s2 + $0x7] ss:$0 sm:$0xff]  ;;  %v6032_v62 = vld [vmem:[%s8799_s3 + $0x1e8] sm:$0xff]  }
 0x1d6   : > { %5806 = vmatpush3.bf16.msra.mxu1 %v6030_v11  ;;  %v4143_v51 = vpop.f32.mrf.mxu0  ;;  %v3686_v11 = vmul.f32 0.5, %v7765_v6  ;;  %v7881_v53 = vadd.f32 %v5791_v16, %v7864_v12  ;;  %v6033_v16 = vld [vmem:[%s8799_s3 + $0x1e0] sm:$0xff]  }
 0x1d7   : > { %6254 = verf.f32 %v3711_v37  ;;  %v7866_v21 = vpop.f32.mrf.mxu1  ;;  %5807 = vmatprep.subr.bf16.mxu1 %v6031_v1  ;;  %v3736_v37 = vadd.f32 1.0, %v6245_v30  ;;  %v3751_v32 = vmul.f32 %v3735_v34, %v3687_v29  ;;  %v7876_v63 = vadd.f32 %v7864_v12, %v4143_v51  ;;  %v6247_v41 = vpop.eup %6246 }
 0x1d8   : > { %6256 = verf.f32 %v3713_v3  ;;  %v5792_v57 = vpop.f32.mrf.mxu0  ;;  %v7886_v3 = vpop.permute.xlu0 %1861  ;;  %v3688_v34 = vmul.f32 0.5, %v7774_v2  ;;  %v3753_v51 = vmul.f32 %v3737_v45, %v3689_v24 }
 0x1d9   : > { %6258 = verf.f32 %v3710_v31  ;;  %v7878_v58 = vpop.f32.mrf.mxu1  ;;  %v7884_v6 = vadd.f32 %v5792_v57, %v7864_v12  ;;  %8829 = vst [vmem:[#allocation29_spill] sm:$0xff] %v7886_v3  ;;  %v6249_v30 = vpop.eup %6248  ;;  %v3750_v31 = vmul.f32 %v3734_v4, %v3686_v11  ;;  %v4222_v2 = vmul.f32 0.70710677, %v7876_v63 }
 0x1da   : > { %6260 = verf.f32 %v3712_v17  ;;  %5808 = vmatpush3.bf16.msra.mxu1 %v6031_v1  ;;  %v4146_v27 = vpop.f32.mrf.mxu0  ;;  %v6251_v17 = vpop.eup %6250  ;;  %v3752_v14 = vmul.f32 %v3736_v37, %v3688_v34 }
 0x1db   : > { %v7889_v29 = vpop.f32.mrf.mxu1  ;;  %v7892_v55 = vadd.f32 %v7864_v12, %v4146_v27  ;;  %5809 = vmatprep.subr.bf16.mxu1 %v6032_v62  ;;  %v4225_v1 = vmul.f32 0.70710677, %v7884_v6  ;;  %v3764_v45 = vpack.c.bf16 %v3751_v32, %v3750_v31  ;;  %v4224_v27 = vmul.f32 0.70710677, %v7881_v53  ;;  %v7903_v49 = vpop.permute.xlu1 %1905  ;;  %v6034_v32 = vld [vmem:[%s8799_s3 + $0x1d8] sm:$0xff]  }
 0x1dc   : > { %v5795_v57 = vpop.f32.mrf.mxu0  ;;  %v6253_v3 = vpop.eup %6252  ;;  %8830 = vst [vmem:[#allocation30_spill] sm:$0xff] %v7903_v49  ;;  %v3741_v36 = vadd.f32 1.0, %v6251_v17  ;;  %v3765_v37 = vpack.c.bf16 %v3753_v51, %v3752_v14  ;;  %v3738_v31 = vadd.f32 1.0, %v6249_v30 }
 0x1dd   : > { %v4223_v4 = vmul.f32 0.70710677, %v7892_v55  ;;  %v7900_v11 = vpop.f32.mrf.mxu1  ;;  %v3739_v24 = vadd.f32 1.0, %v6253_v3  ;;  %5761 = vmatprep.mubr.bf16.mxu1 %v3764_v45  ;;  %v3740_v3 = vadd.f32 1.0, %v6247_v41  ;;  %v7912_v49 = vpop.permute.xlu0 %1869  ;;  %v7915_v38 = vadd.f32 %v5795_v57, %v7864_v12 }
 0x1de   : > { %5810 = vmatpush3.bf16.msra.mxu1 %v6032_v62  ;;  %v4159_v44 = vpop.f32.mrf.mxu0  ;;  %v3691_v62 = vmul.f32 0.5, %v7821_v13  ;;  %8831 = vst [vmem:[#allocation31_spill] sm:$0xff] %v7912_v49  ;;  %v3690_v41 = vmul.f32 0.5, %v7804_v40  ;;  %v3757_v57 = vmul.f32 %v3741_v36, %v3693_v0 }
 0x1df   : > { %6262 = verf.f32 %v4223_v4  ;;  %v7906_v34 = vpop.f32.mrf.mxu1  ;;  %5811 = vmatprep.subr.bf16.mxu1 %v6033_v16  ;;  %5762 = vmatmul.mubr.bf16.gmra.mxu1 %v3765_v37  ;;  %v7918_v14 = vadd.f32 %v7864_v12, %v4159_v44 }
 0x1e0   : > { %6264 = verf.f32 %v4225_v1  ;;  %v5796_v26 = vpop.f32.mrf.mxu0  ;;  %v3755_v13 = vmul.f32 %v3739_v24, %v3691_v62  ;;  %v7926_v1 = vpop.permute.xlu1 %2373  ;;  %v3754_v40 = vmul.f32 %v3738_v31, %v3690_v41 }
 0x1e1   : > { %6266 = verf.f32 %v4222_v2  ;;  %v7920_v51 = vpop.f32.mrf.mxu1  ;;  %v7923_v17 = vadd.f32 %v5796_v26, %v7864_v12  ;;  %8832 = vst [vmem:[#allocation32_spill] sm:$0xff] %v7926_v1  ;;  %v3692_v2 = vmul.f32 0.5, %v7799_v9  ;;  %v4226_v4 = vmul.f32 0.70710677, %v7918_v14  ;;  %v6035_v26 = vld [vmem:[%s8799_s3 + $0x1d0] sm:$0xff]   ;;  %v7948_v18 = vpop.permute.xlu0 %1877 }
 0x1e2   : > { %6268 = verf.f32 %v4224_v27  ;;  %5812 = vmatpush3.bf16.msra.mxu1 %v6033_v16  ;;  %v4162_v30 = vpop.f32.mrf.mxu0  ;;  %v7938_v16 = vld [vmem:[%s8800_s4] ss:$0 sm:$0xff]  ;;  %v4228_v27 = vmul.f32 0.70710677, %v7915_v38  ;;  %v3696_v1 = vmul.f32 0.5, %v7842_v39  ;;  %v3766_v41 = vpack.c.bf16 %v3755_v13, %v3754_v40  ;;  %8833 = vst [vmem:[#allocation33_spill] sm:$0xff] %v7948_v18 }
 0x1e3   : > { %v7930_v44 = vpop.f32.mrf.mxu1  ;;  %5813 = vmatprep.subr.bf16.mxu1 %v6034_v32  ;;  %v4229_v24 = vmul.f32 0.70710677, %v7923_v17  ;;  %v3756_v36 = vmul.f32 %v3740_v3, %v3692_v2  ;;  %6270 = verf.f32 %v4226_v4  ;;  %v7946_v31 = vadd.f32 %v7864_v12, %v4162_v30  ;;  %v6036_v39 = vld [vmem:[%s8799_s3 + $0x1c8] sm:$0xff]  }
 0x1e4   : > { %v6255_v45 = vpop.eup %6254  ;;  %v5799_v9 = vpop.f32.mrf.mxu0  ;;  %v726_v3 = vadd.f32 %v7857_v59, %v7938_v16  ;;  %v718_v30 = vadd.f32 %v7938_v16, %v7866_v21  ;;  %5765 = vmatprep.mubr.bf16.mxu1 %v3766_v41 }
 0x1e5   : > { %v6257_v0 = vpop.eup %6256  ;;  %v7942_v37 = vpop.f32.mrf.mxu1  ;;  %6272 = verf.f32 %v4229_v24  ;;  %v3743_v7 = vadd.f32 1.0, %v6255_v45  ;;  %v3767_v2 = vpack.c.bf16 %v3757_v57, %v3756_v36  ;;  %v4227_v45 = vmul.f32 0.70710677, %v7946_v31 }
 0x1e6   : > { %v6259_v62 = vpop.eup %6258  ;;  %5814 = vmatpush3.bf16.msra.mxu1 %v6034_v32  ;;  %v4175_v49 = vpop.f32.mrf.mxu0  ;;  %v3694_v32 = vmul.f32 0.5, %v7836_v42  ;;  %v3745_v13 = vadd.f32 1.0, %v6257_v0  ;;  %v729_v24 = vadd.f32 %v7878_v58, %v7938_v16  ;;  %6274 = verf.f32 %v4228_v27 }
 0x1e7   : > { %v6261_v43 = vpop.eup %6260  ;;  %v7952_v4 = vpop.f32.mrf.mxu1  ;;  %v7955_v25 = vadd.f32 %v7864_v12, %v4175_v49  ;;  %5815 = vmatprep.subr.bf16.mxu1 %v6035_v26  ;;  %v3742_v40 = vadd.f32 1.0, %v6259_v62  ;;  %v3695_v49 = vmul.f32 0.5, %v7847_v46  ;;  %5766 = vmatmul.mubr.bf16.gmra.mxu1 %v3767_v2  ;;  %v3697_v0 = vmul.f32 0.5, %v7839_v5 }
 0x1e8   : > { %v5800_v59 = vpop.f32.mrf.mxu0  ;;  %v7964_v57 = vpop.permute.xlu1 %2377  ;;  %v3744_v42 = vadd.f32 1.0, %v6261_v43  ;;  %6276 = verf.f32 %v4227_v45  ;;  %v7973_v21 = vadd.f32 %v5799_v9, %v7864_v12  ;;  %v7976_v62 = vmul.f32 %v7231_v22, %v726_v3  ;;  %v6037_v43 = vld [vmem:[%s8799_s3 + $0x1c0] sm:$0xff]  }
 0x1e9   : > { %8834 = vst [vmem:[#allocation34_spill] sm:$0xff] %v7964_v57  ;;  %v7969_v36 = vpop.f32.mrf.mxu1  ;;  %v3759_v57 = vmul.f32 %v3743_v7, %v3695_v49  ;;  %v7979_v46 = vmul.f32 0.5, %v7881_v53  ;;  %v4230_v58 = vmul.f32 0.70710677, %v7955_v25  ;;  %v3761_v9 = vmul.f32 %v3745_v13, %v3697_v0  ;;  %v7994_v3 = vpop.permute.xlu0 %1885 }
 0x1ea   : > { %5816 = vmatpush3.bf16.msra.mxu1 %v6035_v26  ;;  %v4178_v41 = vpop.f32.mrf.mxu0  ;;  %v7988_v26 = vmul.f32 %v7440_v48, %v718_v30  ;;  %v4206_v22 = vmul.f32 0.5, %v7876_v63  ;;  %v7992_v7 = vadd.f32 %v5800_v59, %v7864_v12  ;;  %8835 = vst [vmem:[#allocation35_spill] sm:$0xff] %v7994_v3  ;;  %v3758_v45 = vmul.f32 %v3742_v40, %v3694_v32 }
 0x1eb   : > { %v7982_v27 = vpop.f32.mrf.mxu1  ;;  %5817 = vmatprep.subr.bf16.mxu1 %v6036_v39  ;;  %v7997_v49 = vmul.f32 %v7271_v35, %v729_v24  ;;  %6278 = verf.f32 %v4230_v58  ;;  %v8000_v18 = vadd.f32 %v7864_v12, %v4178_v41  ;;  %v3760_v30 = vmul.f32 %v3744_v42, %v3696_v1 }
 0x1ec   : > { %v6263_v5 = vpop.eup %6262  ;;  %v5803_v53 = vpop.f32.mrf.mxu0  ;;  %v721_v63 = vadd.f32 %v7938_v16, %v7889_v29  ;;  %v4232_v59 = vmul.f32 0.70710677, %v7973_v21  ;;  %v4233_v0 = vmul.f32 0.70710677, %v7992_v7  ;;  %v742_v41 = vadd.f32 %v7900_v11, %v7938_v16 }
 0x1ed   : > { %v6265_v2 = vpop.eup %6264  ;;  %v8002_v13 = vpop.f32.mrf.mxu1  ;;  %v4255_v24 = vadd.f32 1.0, %v6263_v5  ;;  %v4231_v58 = vmul.f32 0.70710677, %v8000_v18  ;;  %v3768_v3 = vpack.c.bf16 %v3759_v57, %v3758_v45  ;;  %v4209_v29 = vmul.f32 0.5, %v7884_v6 }
 0x1ee   : > { %8836 = vst [vmem:[#allocation36_spill] sm:$0xff] %v8002_v13  ;;  %v6267_v48 = vpop.eup %6266  ;;  %5818 = vmatpush3.bf16.msra.mxu1 %v6036_v39  ;;  %v4191_v32 = vpop.f32.mrf.mxu0  ;;  %v4257_v42 = vadd.f32 1.0, %v6265_v2  ;;  %6280 = verf.f32 %v4233_v0  ;;  %v3769_v13 = vpack.c.bf16 %v3761_v9, %v3760_v30  ;;  %v8023_v6 = vadd.f32 %v5803_v53, %v7864_v12 }
 0x1ef   : > { %v8008_v40 = vpop.permute.xlu1 %2385  ;;  %v6269_v35 = vpop.eup %6268  ;;  %5819 = vmatprep.subr.bf16.mxu1 %v6037_v43  ;;  %v4254_v54 = vadd.f32 1.0, %v6267_v48  ;;  %6282 = verf.f32 %v4231_v58  ;;  %5769 = vmatprep.mubr.bf16.mxu1 %v3768_v3  ;;  %v8018_v5 = vadd.f32 %v7864_v12, %v4191_v32  ;;  %v8031_v3 = vmul.f32 %v7465_v10, %v721_v63  ;;  %v8046_v10 = vld [vmem:[%s8800_s4 + $0x1] ss:$0 sm:$0xff] }
 0x1f0   : > { %8837 = vst [vmem:[#allocation37_spill] sm:$0xff] %v8008_v40  ;;  %v8013_v1 = vpop.f32.mrf.mxu1  ;;  %v5804_v39 = vpop.f32.mrf.mxu0  ;;  %v4207_v40 = vmul.f32 0.5, %v7892_v55  ;;  %v4256_v45 = vadd.f32 1.0, %v6269_v35  ;;  %6284 = verf.f32 %v4232_v59  ;;  %5770 = vmatmul.mubr.bf16.gmra.mxu1 %v3769_v13  ;;  %v8034_v30 = vmul.f32 %v7517_v19, %v742_v41 }
 0x1f1   : > { %v6271_v57 = vpop.eup %6270  ;;  %v8026_v9 = vadd.f32 %v5804_v39, %v7864_v12  ;;  %v8028_v2 = vpop.permute.xlu0 %1893  ;;  %v734_v59 = vadd.f32 %v7938_v16, %v7906_v34  ;;  %v4273_v53 = vmul.f32 %v4257_v42, %v4209_v29  ;;  %v4212_v0 = vmul.f32 0.5, %v7915_v38 }
 0x1f2   : > { %v8020_v11 = vpop.f32.mrf.mxu1  ;;  %8838 = vst [vmem:[#allocation38_spill] sm:$0xff] %v8028_v2  ;;  %v6273_v55 = vpop.eup %6272  ;;  %v4271_v48 = vmul.f32 %v4255_v24, %v4207_v40  ;;  %5820 = vmatpush3.bf16.msra.mxu1 %v6037_v43  ;;  %v4210_v32 = vmul.f32 0.5, %v7918_v14  ;;  %v4234_v35 = vmul.f32 0.70710677, %v8018_v5  ;;  %v4270_v63 = vmul.f32 %v4254_v54, %v4206_v22 }
 0x1f3   : > { %v4194_v58 = vpop.f32.mrf.mxu0  ;;  %v8048_v19 = vpop.permute.xlu1 %2393  ;;  %v4258_v34 = vadd.f32 1.0, %v6271_v57  ;;  %v745_v43 = vadd.f32 %v7920_v51, %v7938_v16  ;;  %v4213_v40 = vmul.f32 0.5, %v7923_v17  ;;  %v4272_v14 = vmul.f32 %v4256_v45, %v7979_v46 }
 0x1f4   : > { %v8038_v13 = vpop.f32.mrf.mxu1  ;;  %8840 = vst [vmem:[#allocation40_spill] sm:$0xff] %v8048_v19  ;;  %v6275_v24 = vpop.eup %6274  ;;  %v4261_v41 = vadd.f32 1.0, %v6273_v55  ;;  %v4236_v29 = vmul.f32 0.70710677, %v8023_v6  ;;  %v4237_v42 = vmul.f32 0.70710677, %v8026_v9  ;;  %6286 = verf.f32 %v4234_v35 }
 0x1f5   : > { %8839 = vst [vmem:[#allocation39_spill] sm:$0xff] %v8038_v13  ;;  %v6277_v39 = vpop.eup %6276  ;;  %v8057_v19 = vadd.f32 %v7864_v12, %v4194_v58  ;;  %v4286_v54 = vpack.c.bf16 %v4271_v48, %v4270_v63  ;;  %v4287_v57 = vpack.c.bf16 %v4273_v53, %v4272_v14  ;;  %v4211_v17 = vmul.f32 0.5, %v7946_v31  ;;  %v8061_v46 = vpop.permute.xlu0 %1901 }
 0x1f6   : > { %v5439_v38 = vpop.f32.mrf.mxu1  ;;  %v4259_v2 = vadd.f32 1.0, %v6277_v39  ;;  %6288 = verf.f32 %v4237_v42  ;;  %v4260_v45 = vadd.f32 1.0, %v6275_v24  ;;  %v4274_v55 = vmul.f32 %v4258_v34, %v4210_v32 }
 0x1f7   : > { %v1266_v22 = vadd.f32 %v5439_v38, %v8046_v10  ;;  %v4235_v13 = vmul.f32 0.70710677, %v8057_v19  ;;  %5821 = vmatprep.mubr.bf16.mxu1 %v4286_v54  ;;  %6290 = verf.f32 %v4236_v29  ;;  %v8067_v63 = vpop.permute.xlu1 %2401  ;;  %v864_v38 = vmul.f32 %v7489_v56, %v734_v59 }
 0x1f8   : > { %v1257_v51 = vpop.f32.mrf.mxu1  ;;  %v6279_v58 = vpop.eup %6278  ;;  %v4275_v48 = vmul.f32 %v4259_v2, %v4211_v17  ;;  %5822 = vmatmul.mubr.bf16.vlgmr.msra.gmra.mxu1 %v4287_v57  ;;  %v4277_v24 = vmul.f32 %v4261_v41, %v4213_v40  ;;  %v867_v39 = vmul.f32 %v7331_v23, %v745_v43  ;;  %v737_v54 = vadd.f32 %v7938_v16, %v7930_v44 }
 0x1f9   : > { %v1386_v35 = vmul.f32 %v7502_v52, %v1266_v22  ;;  %v1258_v53 = vadd.f32 %v8046_v10, %v1257_v51  ;;  %6292 = verf.f32 %v4235_v13  ;;  %v758_v56 = vadd.f32 %v7942_v37, %v7938_v16  ;;  %v8088_v23 = vpop.permute.xlu0 %2369 }
 0x1fa   : > { %v5440_v12 = vpop.f32.mrf.mxu1  ;;  %v4288_v29 = vpack.c.bf16 %v4275_v48, %v4274_v55  ;;  %v4262_v59 = vadd.f32 1.0, %v6279_v58  ;;  %v4276_v40 = vmul.f32 %v4260_v45, %v4212_v0  ;;  %v4214_v44 = vmul.f32 0.5, %v7955_v25 }
 0x1fb   : > { %v1269_v31 = vadd.f32 %v5440_v12, %v8046_v10  ;;  %v8071_v32 = vadd.f32 %v1386_v35, %v7976_v62  ;;  %v1384_v52 = vmul.f32 %v7654_v50, %v1258_v53  ;;  %v6281_v42 = vpop.eup %6280  ;;  %v4215_v37 = vmul.f32 0.5, %v8000_v18 }
 0x1fc   : > { %v1260_v34 = vpop.f32.mrf.mxu1  ;;  %v6283_v13 = vpop.eup %6282  ;;  %5825 = vmatprep.mubr.bf16.mxu1 %v4288_v29  ;;  %v4289_v57 = vpack.c.bf16 %v4277_v24, %v4276_v40  ;;  %v750_v45 = vadd.f32 %v7938_v16, %v7952_v4  ;;  %v4278_v55 = vmul.f32 %v4262_v59, %v4214_v44  ;;  %v4217_v58 = vmul.f32 0.5, %v7992_v7 }
 0x1fd   : > { %v1387_v2 = vmul.f32 %v7679_v47, %v1269_v31  ;;  %v1261_v14 = vadd.f32 %v8046_v10, %v1260_v34  ;;  %v8082_v50 = vadd.f32 %v1384_v52, %v7988_v26  ;;  %v6285_v43 = vpop.eup %6284  ;;  %v4263_v22 = vadd.f32 1.0, %v6283_v13 }
 0x1fe   : > { %v5443_v62 = vpop.f32.mrf.mxu1  ;;  %v4265_v26 = vadd.f32 1.0, %v6281_v42  ;;  %v4264_v12 = vadd.f32 1.0, %v6285_v43  ;;  %v4216_v53 = vmul.f32 0.5, %v7973_v21  ;;  %v761_v31 = vadd.f32 %v7969_v36, %v7938_v16  ;;  %v8842_v43 = vld [vmem:[#allocation6_spill] sm:$0xff] }
 0x1ff   : > { %v8085_v47 = vadd.f32 %v1387_v2, %v7997_v49  ;;  %v1385_v41 = vmul.f32 %v7474_v28, %v1261_v14  ;;  %v1282_v51 = vadd.f32 %v5443_v62, %v8046_v10  ;;  %v8097_v28 = vpop.permute.xlu1 %2409  ;;  %v4279_v25 = vmul.f32 %v4263_v22, %v4215_v37  ;;  %v8115_v14 = vpop.permute.xlu0 %2381 }
 0x200   : > { %v1273_v0 = vpop.f32.mrf.mxu1  ;;  %5826 = vmatmul.mubr.bf16.gmra.mxu1 %v4289_v57  ;;  %v4281_v52 = vmul.f32 %v4265_v26, %v4217_v58  ;;  %v865_v21 = vmul.f32 %v7302_v60, %v737_v54  ;;  %v870_v36 = vmul.f32 %v7576_v8, %v758_v56  ;;  %v4280_v59 = vmul.f32 %v4264_v12, %v4216_v53  ;;  %v8843_v60 = vld [vmem:[#allocation36_spill] sm:$0xff] }
 0x201   : > { %v8094_v17 = vadd.f32 %v1385_v41, %v8031_v3  ;;  %v1274_v49 = vadd.f32 %v8046_v10, %v1273_v0  ;;  %v1390_v18 = vmul.f32 %v7554_v20, %v1282_v51  ;;  %v4290_v34 = vpack.c.bf16 %v4279_v25, %v4278_v55  ;;  %v6287_v20 = vpop.eup %6286 }
 0x202   : > { %v5444_v35 = vpop.f32.mrf.mxu1  ;;  %v871_v44 = vmul.f32 %v8842_v43, %v761_v31  ;;  %v774_v8 = vadd.f32 %v8843_v60, %v7938_v16  ;;  %v4266_v54 = vadd.f32 1.0, %v6287_v20  ;;  %v4291_v22 = vpack.c.bf16 %v4281_v52, %v4280_v59  ;;  %v8846_v20 = vld [vmem:[#allocation21_spill] sm:$0xff] }
 0x203   : > { %v1388_v48 = vmul.f32 %v7525_v15, %v1274_v49  ;;  %v1285_v3 = vadd.f32 %v5444_v35, %v8046_v10  ;;  %v8109_v4 = vadd.f32 %v1390_v18, %v8034_v30  ;;  %v6289_v29 = vpop.eup %6288  ;;  %v868_v30 = vmul.f32 %v7543_v33, %v750_v45  ;;  %5829 = vmatprep.mubr.bf16.mxu1 %v4290_v34  ;;  %v8125_v40 = vpop.permute.xlu1 %2417  ;;  %v8844_v49 = vld [vmem:[#allocation11_spill] sm:$0xff]  ;;  %v8845_v35 = vld [vmem:[#allocation9_spill] sm:$0xff] }
 0x204   : > { %v1276_v24 = vpop.f32.mrf.mxu1  ;;  %v6291_v41 = vpop.eup %6290  ;;  %v4269_v51 = vadd.f32 1.0, %v6289_v29  ;;  %v4218_v0 = vmul.f32 0.5, %v8018_v5  ;;  %v4219_v57 = vmul.f32 0.5, %v8057_v19  ;;  %v4221_v18 = vmul.f32 0.5, %v8026_v9 }
 0x205   : > { %v8111_v2 = vadd.f32 %v1388_v48, %v864_v38  ;;  %v1391_v7 = vmul.f32 %v7738_v61, %v1285_v3  ;;  %v1277_v15 = vadd.f32 %v8046_v10, %v1276_v24  ;;  %v753_v38 = vadd.f32 %v7938_v16, %v7982_v27  ;;  %v8841_v61 = vld [vmem:[#allocation16_spill] sm:$0xff]  ;;  %v8140_v48 = vpop.permute.xlu0 %2389 }
 0x206   : > { %v5447_v42 = vpop.f32.mrf.mxu1  ;;  %v6293_v37 = vpop.eup %6292  ;;  %v4268_v25 = vadd.f32 1.0, %v6291_v41  ;;  %v4220_v3 = vmul.f32 0.5, %v8023_v6  ;;  %v4282_v53 = vmul.f32 %v4266_v54, %v4218_v0  ;;  %v4285_v24 = vmul.f32 %v4269_v51, %v4221_v18  ;;  %v8849_v41 = vld [vmem:[#allocation12_spill] sm:$0xff]  ;;  %v8852_v0 = vld [vmem:[#allocation39_spill] sm:$0xff] }
 0x207   : > { %v8122_v62 = vadd.f32 %v1391_v7, %v867_v39  ;;  %v1389_v13 = vmul.f32 %v8841_v61, %v1277_v15  ;;  %v1298_v33 = vadd.f32 %v5447_v42, %v8046_v10  ;;  %v4267_v26 = vadd.f32 1.0, %v6293_v37  ;;  %v8149_v7 = vpop.permute.xlu1 %2425  ;;  %v8847_v15 = vld [vmem:[#allocation5_spill] sm:$0xff]  ;;  %v8848_v61 = vld [vmem:[#allocation19_spill] sm:$0xff]  ;;  %v8854_v18 = vld [vmem:[#allocation8_spill] sm:$0xff] }
 0x208   : > { %v1289_v56 = vpop.f32.mrf.mxu1  ;;  %5830 = vmatmul.mubr.bf16.gmra.mxu1 %v4291_v22  ;;  %v869_v29 = vmul.f32 %v8847_v15, %v753_v38  ;;  %v4284_v59 = vmul.f32 %v4268_v25, %v4220_v3  ;;  %v874_v43 = vmul.f32 %v8849_v41, %v774_v8  ;;  %v777_v60 = vadd.f32 %v8020_v11, %v7938_v16  ;;  %v8851_v22 = vld [vmem:[#allocation10_spill] sm:$0xff]  ;;  %v8853_v11 = vld [vmem:[#allocation13_spill] sm:$0xff] }
 0x209   : > { %v8131_v27 = vadd.f32 %v1389_v13, %v865_v21  ;;  %v1290_v39 = vadd.f32 %v8046_v10, %v1289_v56  ;;  %v1394_v45 = vmul.f32 %v8844_v49, %v1298_v33  ;;  %v4283_v5 = vmul.f32 %v4267_v26, %v4219_v57  ;;  %v8179_v25 = vld [vmem:[%s8800_s4 + $0x2] ss:$0 sm:$0xff] }
 0x20a   : > { %v5448_v55 = vpop.f32.mrf.mxu1  ;;  %v766_v21 = vadd.f32 %v7938_v16, %v8013_v1  ;;  %v4293_v38 = vpack.c.bf16 %v4285_v24, %v4284_v59  ;;  %v8850_v1 = vld [vmem:[#allocation14_spill] sm:$0xff]  ;;  %v769_v8 = vadd.f32 %v7938_v16, %v8852_v0  ;;  %v8855_v16 = vld [vmem:[#allocation25_spill] sm:$0xff] }
 0x20b   : > { %v1392_v12 = vmul.f32 %v8845_v35, %v1290_v39  ;;  %v1301_v58 = vadd.f32 %v5448_v55, %v8046_v10  ;;  %v8143_v31 = vadd.f32 %v1394_v45, %v870_v36  ;;  %v4292_v6 = vpack.c.bf16 %v4283_v5, %v4282_v53  ;;  %v8174_v45 = vpop.permute.xlu1 %2893  ;;  %v8856_v5 = vld [vmem:[#allocation7_spill] sm:$0xff] }
 0x20c   : > { %v1292_v19 = vpop.f32.mrf.mxu1  ;;  %v872_v51 = vmul.f32 %v8851_v22, %v766_v21  ;;  %v875_v35 = vmul.f32 %v8854_v18, %v777_v60 }
 0x20d   : > { %v8145_v34 = vadd.f32 %v1392_v12, %v868_v30  ;;  %v1395_v52 = vmul.f32 %v8846_v20, %v1301_v58  ;;  %v1293_v9 = vadd.f32 %v8046_v10, %v1292_v19  ;;  %5833 = vmatprep.mubr.bf16.mxu1 %v4292_v6  ;;  %v873_v19 = vmul.f32 %v8856_v5, %v769_v8  ;;  %v8857_v20 = vld [vmem:[#allocation23_spill] sm:$0xff]  ;;  %v8858_v6 = vld [vmem:[#allocation17_spill] sm:$0xff] }
 0x20e   : > { %v5451_v42 = vpop.f32.mrf.mxu1 }
 0x20f   : > { %v8154_v36 = vadd.f32 %v1395_v52, %v871_v44  ;;  %v1393_v13 = vmul.f32 %v8848_v61, %v1293_v9  ;;  %v1314_v30 = vadd.f32 %v5451_v42, %v8046_v10  ;;  %v8165_v44 = vpop.permute.xlu0 %2397  ;;  %v8197_v61 = vpop.permute.xlu1 %2901 }
 0x210   : > { %v1305_v54 = vpop.f32.mrf.mxu1  ;;  %5834 = vmatmul.mubr.bf16.gmra.mxu1 %v4293_v38  ;;  %v8860_v38 = vld [vmem:[#allocation18_spill] sm:$0xff] }
 0x211   : > { %v8161_v33 = vadd.f32 %v1393_v13, %v869_v29  ;;  %v1398_v56 = vmul.f32 %v8850_v1, %v1314_v30  ;;  %v1306_v37 = vadd.f32 %v8046_v10, %v1305_v54  ;;  %v8859_v30 = vld [vmem:[#allocation15_spill] sm:$0xff] }
 0x212   : > { %v5452_v39 = vpop.f32.mrf.mxu1 }
 0x213   : > { %v8170_v57 = vadd.f32 %v1398_v56, %v874_v43  ;;  %v1396_v26 = vmul.f32 %v8853_v11, %v1306_v37  ;;  %v1317_v49 = vadd.f32 %v5452_v39, %v8046_v10  ;;  %v8191_v15 = vpop.permute.xlu0 %2405  ;;  %v8216_v8 = vpop.permute.xlu1 %2905 }
 0x214   : > { %v1308_v55 = vpop.f32.mrf.mxu1 }
 0x215   : > { %v8182_v12 = vadd.f32 %v1396_v26, %v872_v51  ;;  %v1399_v58 = vmul.f32 %v8855_v16, %v1317_v49  ;;  %v1309_v3 = vadd.f32 %v8046_v10, %v1308_v55  ;;  %v8862_v26 = vld [vmem:[#allocation31_spill] sm:$0xff] }
 0x216   : > { %v5503_v53 = vpop.f32.mrf.mxu1 }
 0x217   : > { %v8187_v24 = vadd.f32 %v1399_v58, %v875_v35  ;;  %v1397_v52 = vmul.f32 %v8857_v20, %v1309_v3  ;;  %v1790_v9 = vadd.f32 %v5503_v53, %v8179_v25  ;;  %v8209_v37 = vpop.permute.xlu0 %2413 }
 0x218   : > { %v1781_v29 = vpop.f32.mrf.mxu1 }
 0x219   : > { %v8193_v21 = vadd.f32 %v1397_v52, %v873_v19  ;;  %v1910_v42 = vmul.f32 %v8858_v6, %v1790_v9  ;;  %v1782_v59 = vadd.f32 %v8179_v25, %v1781_v29  ;;  %v8235_v52 = vpop.permute.xlu1 %2913  ;;  %v8865_v29 = vld [vmem:[#allocation20_spill] sm:$0xff] }
 0x21a   : > { %v5504_v10 = vpop.f32.mrf.mxu1 }
 0x21b   : > { %v8200_v13 = vadd.f32 %v1910_v42, %v8071_v32  ;;  %v1908_v41 = vmul.f32 %v8859_v30, %v1782_v59  ;;  %v1793_v43 = vadd.f32 %v5504_v10, %v8179_v25  ;;  %v8861_v32 = vld [vmem:[#allocation27_spill] sm:$0xff]  ;;  %v8228_v3 = vpop.permute.xlu0 %2421 }
 0x21c   : > { %v1784_v60 = vpop.f32.mrf.mxu1 }
 0x21d   : > { %v8205_v54 = vadd.f32 %v1908_v41, %v8082_v50  ;;  %v1911_v1 = vmul.f32 %v8860_v38, %v1793_v43  ;;  %v1785_v56 = vadd.f32 %v8179_v25, %v1784_v60 }
 0x21e   : > { %v5507_v22 = vpop.f32.mrf.mxu1 }
 0x21f   : > { %v8212_v51 = vadd.f32 %v1911_v1, %v8085_v47  ;;  %v1909_v39 = vmul.f32 %v8861_v32, %v1785_v56  ;;  %v1806_v0 = vadd.f32 %v5507_v22, %v8179_v25  ;;  %v8863_v47 = vld [vmem:[#allocation29_spill] sm:$0xff]  ;;  %v8247_v43 = vpop.permute.xlu0 %2429  ;;  %v8254_v22 = vpop.permute.xlu1 %2921 }
 0x220   : > { %v1797_v11 = vpop.f32.mrf.mxu1 }
 0x221   : > { %v8219_v50 = vadd.f32 %v1909_v39, %v8094_v17  ;;  %v1914_v49 = vmul.f32 %v8862_v26, %v1806_v0  ;;  %v1798_v55 = vadd.f32 %v8179_v25, %v1797_v11  ;;  %v8864_v17 = vld [vmem:[#allocation22_spill] sm:$0xff] }
 0x222   : > { %v5508_v18 = vpop.f32.mrf.mxu1  ;;  %v8868_v39 = vld [vmem:[#allocation26_spill] sm:$0xff] }
 0x223   : > { %v8224_v35 = vadd.f32 %v1914_v49, %v8109_v4  ;;  %v1912_v16 = vmul.f32 %v8863_v47, %v1798_v55  ;;  %v1809_v58 = vadd.f32 %v5508_v18, %v8179_v25  ;;  %v8261_v26 = vpop.permute.xlu0 %2897  ;;  %v8869_v55 = vld [vmem:[#allocation24_spill] sm:$0xff] }
 0x224   : > { %v1800_v53 = vpop.f32.mrf.mxu1 }
 0x225   : > { %v8231_v5 = vadd.f32 %v1912_v16, %v8111_v2  ;;  %v1915_v19 = vmul.f32 %v8864_v17, %v1809_v58  ;;  %v1801_v20 = vadd.f32 %v8179_v25, %v1800_v53  ;;  %v8866_v2 = vld [vmem:[#allocation35_spill] sm:$0xff]  ;;  %v8273_v17 = vpop.permute.xlu1 %2929 }
 0x226   : > { %v5511_v9 = vpop.f32.mrf.mxu1 }
 0x227   : > { %v8238_v4 = vadd.f32 %v1915_v19, %v8122_v62  ;;  %v1913_v6 = vmul.f32 %v8865_v29, %v1801_v20  ;;  %v1822_v42 = vadd.f32 %v5511_v9, %v8179_v25  ;;  %v8867_v62 = vld [vmem:[#allocation33_spill] sm:$0xff] }
 0x228   : > { %v1813_v59 = vpop.f32.mrf.mxu1 }
 0x229   : > { %v8243_v10 = vadd.f32 %v1913_v6, %v8131_v27  ;;  %v1918_v30 = vmul.f32 %v8866_v2, %v1822_v42  ;;  %v1814_v41 = vadd.f32 %v8179_v25, %v1813_v59  ;;  %v8280_v6 = vpop.permute.xlu0 %2909  ;;  %v8871_v59 = vld [vmem:[#allocation30_spill] sm:$0xff] }
 0x22a   : > { %v5512_v60 = vpop.f32.mrf.mxu1 }
 0x22b   : > { %v8250_v38 = vadd.f32 %v1918_v30, %v8143_v31  ;;  %v1916_v1 = vmul.f32 %v8867_v62, %v1814_v41  ;;  %v1825_v56 = vadd.f32 %v5512_v60, %v8179_v25  ;;  %v8872_v60 = vld [vmem:[#allocation28_spill] sm:$0xff] }
 0x22c   : > { %v1816_v32 = vpop.f32.mrf.mxu1 }
 0x22d   : > { %v8257_v27 = vadd.f32 %v1916_v1, %v8145_v34  ;;  %v1919_v0 = vmul.f32 %v8868_v39, %v1825_v56  ;;  %v1817_v11 = vadd.f32 %v8179_v25, %v1816_v32  ;;  %v8297_v56 = vpop.permute.xlu1 %2937 }
 0x22e   : > { %v5515_v49 = vpop.f32.mrf.mxu1 }
 0x22f   : > { %v8264_v31 = vadd.f32 %v1919_v0, %v8154_v36  ;;  %v1917_v18 = vmul.f32 %v8869_v55, %v1817_v11  ;;  %v1838_v47 = vadd.f32 %v5515_v49, %v8179_v25  ;;  %v8870_v36 = vld [vmem:[#allocation38_spill] sm:$0xff]  ;;  %v8304_v49 = vpop.permute.xlu0 %2917 }
 0x230   : > { %v1829_v16 = vpop.f32.mrf.mxu1 }
 0x231   : > { %v8269_v58 = vadd.f32 %v1917_v18, %v8161_v33  ;;  %v1922_v34 = vmul.f32 %v8061_v46, %v1838_v47  ;;  %v1830_v53 = vadd.f32 %v8179_v25, %v1829_v16  ;;  %v8285_v33 = vld [vmem:[%s8800_s4 + $0x3] ss:$0 sm:$0xff] }
 0x232   : > { %v5516_v19 = vpop.f32.mrf.mxu1 }
 0x233   : > { %v8276_v20 = vadd.f32 %v1922_v34, %v8170_v57  ;;  %v1920_v9 = vmul.f32 %v8870_v36, %v1830_v53  ;;  %v1841_v29 = vadd.f32 %v5516_v19, %v8179_v25  ;;  %v8316_v53 = vpop.permute.xlu1 %2945 }
 0x234   : > { %v1832_v42 = vpop.f32.mrf.mxu1 }
 0x235   : > { %v8288_v46 = vadd.f32 %v1920_v9, %v8182_v12  ;;  %v1923_v2 = vmul.f32 %v8871_v59, %v1841_v29  ;;  %v1833_v57 = vadd.f32 %v8179_v25, %v1832_v42  ;;  %v8873_v12 = vld [vmem:[#allocation34_spill] sm:$0xff]  ;;  %v8323_v29 = vpop.permute.xlu0 %2925  ;;  %v8875_v59 = vld [vmem:[#allocation40_spill] sm:$0xff] }
 0x236   : > { %v5567_v30 = vpop.f32.mrf.mxu1 }
 0x237   : > { %v8293_v41 = vadd.f32 %v1923_v2, %v8187_v24  ;;  %v1921_v62 = vmul.f32 %v8872_v60, %v1833_v57  ;;  %v2314_v1 = vadd.f32 %v5567_v30, %v8285_v33 }
 0x238   : > { %v2305_v32 = vpop.f32.mrf.mxu1 }
 0x239   : > { %v8300_v39 = vadd.f32 %v1921_v62, %v8193_v21  ;;  %v2434_v0 = vmul.f32 %v8873_v12, %v2314_v1  ;;  %v2306_v11 = vadd.f32 %v8285_v33, %v2305_v32  ;;  %v8335_v1 = vpop.permute.xlu1 %2953 }
 0x23a   : > { %v5568_v25 = vpop.f32.mrf.mxu1 }
 0x23b   : > { %v8307_v24 = vadd.f32 %v2434_v0, %v8200_v13  ;;  %v2432_v55 = vmul.f32 %v8088_v23, %v2306_v11  ;;  %v2317_v18 = vadd.f32 %v5568_v25, %v8285_v33  ;;  %v8874_v13 = vld [vmem:[#allocation32_spill] sm:$0xff]  ;;  %v8342_v11 = vpop.permute.xlu0 %2933 }
 0x23c   : > { %v2308_v47 = vpop.f32.mrf.mxu1 }
 0x23d   : > { %v8312_v16 = vadd.f32 %v2432_v55, %v8205_v54  ;;  %v2435_v21 = vmul.f32 %v8115_v14, %v2317_v18  ;;  %v2309_v34 = vadd.f32 %v8285_v33, %v2308_v47  ;;  %v8349_v47 = vpop.permute.xlu1 %3421 }
 0x23e   : > { %v5571_v19 = vpop.f32.mrf.mxu1 }
 0x23f   : > { %v8319_v36 = vadd.f32 %v2435_v21, %v8212_v51  ;;  %v2433_v9 = vmul.f32 %v8874_v13, %v2309_v34  ;;  %v2330_v23 = vadd.f32 %v5571_v19, %v8285_v33  ;;  %v8876_v51 = vld [vmem:[#allocation37_spill] sm:$0xff] }
 0x240   : > { %v2321_v42 = vpop.f32.mrf.mxu1 }
 0x241   : > { %v8326_v54 = vadd.f32 %v2433_v9, %v8219_v50  ;;  %v2438_v14 = vmul.f32 %v8875_v59, %v2330_v23  ;;  %v2322_v2 = vadd.f32 %v8285_v33, %v2321_v42  ;;  %v8361_v9 = vpop.permute.xlu0 %2941  ;;  %v8368_v59 = vpop.permute.xlu1 %3425 }
 0x242   : > { %v5572_v57 = vpop.f32.mrf.mxu1 }
 0x243   : > { %v8331_v30 = vadd.f32 %v2438_v14, %v8224_v35  ;;  %v2436_v60 = vmul.f32 %v8876_v51, %v2322_v2  ;;  %v2333_v62 = vadd.f32 %v5572_v57, %v8285_v33 }
 0x244   : > { %v2324_v32 = vpop.f32.mrf.mxu1 }
 0x245   : > { %v8338_v12 = vadd.f32 %v2436_v60, %v8231_v5  ;;  %v2439_v50 = vmul.f32 %v8165_v44, %v2333_v62  ;;  %v2325_v0 = vadd.f32 %v8285_v33, %v2324_v32  ;;  %v8380_v60 = vpop.permute.xlu0 %2949 }
 0x246   : > { %v5575_v25 = vpop.f32.mrf.mxu1 }
 0x247   : > { %v8345_v35 = vadd.f32 %v2439_v50, %v8238_v4  ;;  %v2437_v55 = vmul.f32 %v8140_v48, %v2325_v0  ;;  %v2346_v18 = vadd.f32 %v5575_v25, %v8285_v33  ;;  %v8387_v50 = vpop.permute.xlu1 %3433 }
 0x248   : > { %v2337_v21 = vpop.f32.mrf.mxu1 }
 0x249   : > { %v8352_v5 = vadd.f32 %v2437_v55, %v8243_v10  ;;  %v2442_v44 = vmul.f32 %v8097_v28, %v2346_v18  ;;  %v2338_v34 = vadd.f32 %v8285_v33, %v2337_v21 }
 0x24a   : > { %v5576_v19 = vpop.f32.mrf.mxu1 }
 0x24b   : > { %v8357_v13 = vadd.f32 %v2442_v44, %v8250_v38  ;;  %v2440_v4 = vmul.f32 %v8067_v63, %v2338_v34  ;;  %v2349_v48 = vadd.f32 %v5576_v19, %v8285_v33  ;;  %v8404_v44 = vpop.permute.xlu0 %3417 }
 0x24c   : > { %v2340_v23 = vpop.f32.mrf.mxu1 }
 0x24d   : > { %v8364_v42 = vadd.f32 %v2440_v4, %v8257_v27  ;;  %v2443_v10 = vmul.f32 %v8209_v37, %v2349_v48  ;;  %v2341_v28 = vadd.f32 %v8285_v33, %v2340_v23  ;;  %v8411_v4 = vpop.permute.xlu1 %3441 }
 0x24e   : > { %v5579_v14 = vpop.f32.mrf.mxu1 }
 0x24f   : > { %v8371_v38 = vadd.f32 %v2443_v10, %v8264_v31  ;;  %v2441_v63 = vmul.f32 %v8191_v15, %v2341_v28  ;;  %v2362_v2 = vadd.f32 %v5579_v14, %v8285_v33  ;;  %v8423_v28 = vpop.permute.xlu0 %3429 }
 0x250   : > { %v2353_v57 = vpop.f32.mrf.mxu1 }
 0x251   : > { %v8376_v51 = vadd.f32 %v2441_v63, %v8269_v58  ;;  %v2446_v27 = vmul.f32 %v8149_v7, %v2362_v2  ;;  %v2354_v37 = vadd.f32 %v8285_v33, %v2353_v57  ;;  %v8392_v58 = vld [vmem:[%s8800_s4 + $0x4] ss:$0 sm:$0xff]  ;;  %v8430_v2 = vpop.permute.xlu1 %3449 }
 0x252   : > { %v5580_v62 = vpop.f32.mrf.mxu1 }
 0x253   : > { %v8383_v32 = vadd.f32 %v2446_v27, %v8276_v20  ;;  %v2444_v31 = vmul.f32 %v8125_v40, %v2354_v37  ;;  %v2365_v15 = vadd.f32 %v5580_v62, %v8285_v33 }
 0x254   : > { %v2356_v0 = vpop.f32.mrf.mxu1 }
 0x255   : > { %v8395_v7 = vadd.f32 %v2444_v31, %v8288_v46  ;;  %v2447_v25 = vmul.f32 %v8247_v43, %v2365_v15  ;;  %v2357_v20 = vadd.f32 %v8285_v33, %v2356_v0  ;;  %v8442_v31 = vpop.permute.xlu0 %3437 }
 0x256   : > { %v5631_v55 = vpop.f32.mrf.mxu1 }
 0x257   : > { %v8400_v40 = vadd.f32 %v2447_v25, %v8293_v41  ;;  %v2445_v18 = vmul.f32 %v8228_v3, %v2357_v20  ;;  %v2838_v21 = vadd.f32 %v5631_v55, %v8392_v58  ;;  %v8449_v25 = vpop.permute.xlu1 %3457 }
 0x258   : > { %v2829_v34 = vpop.f32.mrf.mxu1 }
 0x259   : > { %v8407_v19 = vadd.f32 %v2445_v18, %v8300_v39  ;;  %v2958_v46 = vmul.f32 %v8197_v61, %v2838_v21  ;;  %v2830_v43 = vadd.f32 %v8392_v58, %v2829_v34  ;;  %v8461_v34 = vpop.permute.xlu0 %3445 }
 0x25a   : > { %v5632_v33 = vpop.f32.mrf.mxu1 }
 0x25b   : > { %v8414_v41 = vadd.f32 %v2958_v46, %v8307_v24  ;;  %v2956_v3 = vmul.f32 %v8174_v45, %v2830_v43  ;;  %v2841_v48 = vadd.f32 %v5632_v33, %v8392_v58 }
 0x25c   : > { %v2832_v23 = vpop.f32.mrf.mxu1 }
 0x25d   : > { %v8419_v10 = vadd.f32 %v2956_v3, %v8312_v16  ;;  %v2959_v39 = vmul.f32 %v8216_v8, %v2841_v48  ;;  %v2833_v61 = vadd.f32 %v8392_v58, %v2832_v23 }
 0x25e   : > { %v5635_v14 = vpop.f32.mrf.mxu1 }
 0x25f   : > { %v8426_v63 = vadd.f32 %v2959_v39, %v8319_v36  ;;  %v2957_v24 = vmul.f32 %v8261_v26, %v2833_v61  ;;  %v2854_v45 = vadd.f32 %v5635_v14, %v8392_v58  ;;  %v8478_v61 = vpop.permute.xlu0 %3453 }
 0x260   : > { %v2845_v57 = vpop.f32.mrf.mxu1 }
 0x261   : > { %v8433_v16 = vadd.f32 %v2957_v24, %v8326_v54  ;;  %v2962_v8 = vmul.f32 %v8304_v49, %v2854_v45  ;;  %v2846_v27 = vadd.f32 %v8392_v58, %v2845_v57 }
 0x262   : > { %v5636_v37 = vpop.f32.mrf.mxu1 }
 0x263   : > { %v8438_v62 = vadd.f32 %v2962_v8, %v8331_v30  ;;  %v2960_v36 = vmul.f32 %v8280_v6, %v2846_v27  ;;  %v2857_v26 = vadd.f32 %v5636_v37, %v8392_v58  ;;  %v8491_v37 = vld [vmem:[%s8800_s4 + $0x5] ss:$0 sm:$0xff] }
 0x264   : > { %v2848_v15 = vpop.f32.mrf.mxu1 }
 0x265   : > { %v8445_v0 = vadd.f32 %v2960_v36, %v8338_v12  ;;  %v2963_v54 = vmul.f32 %v8254_v22, %v2857_v26  ;;  %v2849_v49 = vadd.f32 %v8392_v58, %v2848_v15  ;;  %v8498_v26 = vpop.permute.xlu0 %3461 }
 0x266   : > { %v5639_v20 = vpop.f32.mrf.mxu1 }
 0x267   : > { %v8452_v30 = vadd.f32 %v2963_v54, %v8345_v35  ;;  %v2961_v6 = vmul.f32 %v8235_v52, %v2849_v49  ;;  %v2870_v55 = vadd.f32 %v5639_v20, %v8392_v58  ;;  %v8466_v52 = vpop.permute.xlu1 %3465 }
 0x268   : > { %v2861_v18 = vpop.f32.mrf.mxu1  ;;  %8877 = vst [vmem:[#allocation16_spill] sm:$0xff] %v8466_v52 }
 0x269   : > { %v8457_v21 = vadd.f32 %v2961_v6, %v8352_v5  ;;  %v2966_v12 = vmul.f32 %v8342_v11, %v2870_v55  ;;  %v2862_v22 = vadd.f32 %v8392_v58, %v2861_v18  ;;  %v8514_v55 = vpop.permute.xlu0 %3469 }
 0x26a   : > { %v5640_v46 = vpop.f32.mrf.mxu1  ;;  %8883 = vst [vmem:[#allocation5_spill] sm:$0xff] %v8514_v55 }
 0x26b   : > { %v2982_v43 = vadd.f32 %v2966_v12, %v8357_v13  ;;  %v2964_v35 = vmul.f32 %v8323_v29, %v2862_v22  ;;  %v2873_v33 = vadd.f32 %v5640_v46, %v8392_v58  ;;  %v3474_v45 = vpop.permute.xlu1 %3473 }
 0x26c   : > { %v2864_v3 = vpop.f32.mrf.mxu1 }
 0x26d   : > { %v8469_v48 = vadd.f32 %v2964_v35, %v8364_v42  ;;  %v2967_v5 = vmul.f32 %v8297_v56, %v2873_v33  ;;  %v2865_v11 = vadd.f32 %v8392_v58, %v2864_v3  ;;  %v8519_v46 = vpop.permute.xlu0 %3477 }
 0x26e   : > { %v5643_v23 = vpop.f32.mrf.mxu1  ;;  %8884 = vst [vmem:[#allocation19_spill] sm:$0xff] %v8519_v46 }
 0x26f   : > { %v8474_v39 = vadd.f32 %v2967_v5, %v8371_v38  ;;  %v2965_v13 = vmul.f32 %v8273_v17, %v2865_v11  ;;  %v2886_v29 = vadd.f32 %v5643_v23, %v8392_v58  ;;  %v8504_v54 = vpop.permute.xlu1 %3941 }
 0x270   : > { %v2877_v14 = vpop.f32.mrf.mxu1 }
 0x271   : > { %8878 = vst [vmem:[#allocation6_spill] sm:$0xff] %v8474_v39  ;;  %v8481_v24 = vadd.f32 %v2965_v13, %v8376_v51  ;;  %v2970_v42 = vmul.f32 %v8380_v60, %v2886_v29  ;;  %v2878_v56 = vadd.f32 %v8392_v58, %v2877_v14  ;;  %v8531_v3 = vpop.permute.xlu0 %3945 }
 0x272   : > { %v5644_v57 = vpop.f32.mrf.mxu1 }
 0x273   : > { %8879 = vst [vmem:[#allocation36_spill] sm:$0xff] %v8481_v24  ;;  %v2986_v8 = vadd.f32 %v2970_v42, %v8383_v32  ;;  %v2968_v38 = vmul.f32 %v8361_v9, %v2878_v56  ;;  %v2889_v17 = vadd.f32 %v5644_v57, %v8392_v58  ;;  %v8516_v18 = vpop.permute.xlu1 %3949 }
 0x274   : > { %v2880_v27 = vpop.f32.mrf.mxu1 }
 0x275   : > { %v8494_v51 = vadd.f32 %v2968_v38, %v8395_v7  ;;  %v2971_v60 = vmul.f32 %v8335_v1, %v2889_v17  ;;  %v2881_v36 = vadd.f32 %v8392_v58, %v2880_v27  ;;  %v8543_v42 = vpop.permute.xlu0 %3957 }
 0x276   : > { %v5695_v32 = vpop.f32.mrf.mxu1 }
 0x277   : > { %8880 = vst [vmem:[#allocation11_spill] sm:$0xff] %v8494_v51  ;;  %v8501_v9 = vadd.f32 %v2971_v60, %v8400_v40  ;;  %v2969_v15 = vmul.f32 %v8316_v53, %v2881_v36  ;;  %v3362_v49 = vadd.f32 %v5695_v32, %v8491_v37 }
 0x278   : > { %v3353_v20 = vpop.f32.mrf.mxu1 }
 0x279   : > { %8881 = vst [vmem:[#allocation9_spill] sm:$0xff] %v8501_v9  ;;  %v8508_v7 = vadd.f32 %v2969_v15, %v8407_v19  ;;  %v3482_v1 = vmul.f32 %v8368_v59, %v3362_v49  ;;  %v8524_v59 = vpop.permute.xlu1 %3953  ;;  %v8552_v27 = vpop.permute.xlu0 %3965 }
 0x27a   : > { %v5696_v6 = vpop.f32.mrf.mxu1 }
 0x27b   : > { %8882 = vst [vmem:[#allocation21_spill] sm:$0xff] %v8508_v7  ;;  %v8512_v58 = vadd.f32 %v3482_v1, %v8414_v41  ;;  %v3365_v52 = vadd.f32 %v5696_v6, %v8491_v37 }
 0x27c   : > { %v3356_v40 = vpop.f32.mrf.mxu1 }
 0x27d   : > { %v8536_v13 = vpop.permute.xlu1 %3961  ;;  %v8562_v49 = vpop.permute.xlu0 %3973 }
 0x27e   : > { %v5699_v53 = vpop.f32.mrf.mxu1  ;;  %8891 = vst [vmem:[#allocation25_spill] sm:$0xff] %v8562_v49 }
 0x27f   : > { %v3378_v12 = vadd.f32 %v5699_v53, %v8491_v37 }
 0x280   : > { %v3369_v22 = vpop.f32.mrf.mxu1 }
 0x281   : > { %v3486_v19 = vmul.f32 %v8411_v4, %v3378_v12  ;;  %v8547_v57 = vpop.permute.xlu1 %3969  ;;  %v3370_v6 = vadd.f32 %v8491_v37, %v3369_v22 }
 0x282   : > { %v8522_v35 = vpop.f32.mrf.mxu1 }
 0x283   : > { %v8527_v41 = vadd.f32 %v3486_v19, %v8438_v62  ;;  %v8566_v19 = vpop.permute.xlu0 %3981 }
 0x284   : > { %v8529_v33 = vpop.f32.mrf.mxu1 }
 0x285   : > { %v8560_v32 = vpop.permute.xlu1 %3977 }
 0x286   : > { %v5703_v5 = vpop.f32.mrf.mxu1  ;;  %8890 = vst [vmem:[#allocation8_spill] sm:$0xff] %v8560_v32 }
 0x287   : > { %v3394_v11 = vadd.f32 %v5703_v5, %v8491_v37 }
 0x288   : > { %v8534_v23 = vpop.f32.mrf.mxu1 }
 0x289   : > { %v3490_v4 = vmul.f32 %v8449_v25, %v3394_v11  ;;  %v8564_v12 = vpop.permute.xlu1 %3985 }
 0x28a   : > { %v8539_v29 = vpop.f32.mrf.mxu1  ;;  %8892 = vst [vmem:[#allocation7_spill] sm:$0xff] %v8564_v12 }
 0x28b   : > { %v8541_v14 = vadd.f32 %v3490_v4, %v2982_v43  ;;  %v8570_v4 = vpop.permute.xlu0 %3989 }
 0x28c   : > { %v8545_v62 = vpop.f32.mrf.mxu1  ;;  %8894 = vst [vmem:[#allocation17_spill] sm:$0xff] %v8570_v4 }
 0x28d   : > { %8885 = vst [vmem:[#allocation12_spill] sm:$0xff] %v8541_v14  ;;  %v8568_v11 = vpop.permute.xlu1 %3993  ;;  %v3357_v14 = vadd.f32 %v8491_v37, %v3356_v40  ;;  %v8615_v40 = vld [vmem:[%s8800_s4 + $0x7] ss:$0 sm:$0xff] }
 0x28e   : > { %v5707_v56 = vpop.f32.mrf.mxu1  ;;  %8893 = vst [vmem:[#allocation23_spill] sm:$0xff] %v8568_v11 }
 0x28f   : > { %v3410_v38 = vadd.f32 %v5707_v56, %v8491_v37  ;;  %v8576_v7 = vpop.permute.xlu0 %3997 }
 0x290   : > { %v8550_v17 = vpop.f32.mrf.mxu1  ;;  %8896 = vst [vmem:[#allocation18_spill] sm:$0xff] %v8576_v7  ;;  %v3354_v7 = vadd.f32 %v8491_v37, %v3353_v20  ;;  %v3483_v20 = vmul.f32 %v8423_v28, %v3365_v52 }
 0x291   : > { %8886 = vst [vmem:[#allocation14_spill] sm:$0xff] %v8550_v17  ;;  %v3494_v60 = vmul.f32 %v3474_v45, %v3410_v38  ;;  %v8572_v38 = vpop.permute.xlu1 %4001 }
 0x292   : > { %v8554_v36 = vpop.f32.mrf.mxu1  ;;  %8895 = vst [vmem:[#allocation15_spill] sm:$0xff] %v8572_v38  ;;  %v8591_v38 = vld [vmem:[%s8800_s4 + $0x6] ss:$0 sm:$0xff] }
 0x293   : > { %8887 = vst [vmem:[#allocation10_spill] sm:$0xff] %v8554_v36  ;;  %v8556_v25 = vadd.f32 %v3494_v60, %v2986_v8  ;;  %v4466_v11 = vpop.permute.xlu0 %4465 }
 0x294   : > { %v8558_v43 = vpop.f32.mrf.mxu1 }
 0x295   : > { %8888 = vst [vmem:[#allocation39_spill] sm:$0xff] %v8556_v25  ;;  %8889 = vst [vmem:[#allocation13_spill] sm:$0xff] %v8558_v43  ;;  %v8580_v25 = vpop.permute.xlu1 %4469 }
 0x296   : > { %v5759_v15 = vpop.f32.mrf.mxu1 }
 0x297   : > { %v4478_v32 = vpop.permute.xlu0 %4477  ;;  %v3886_v24 = vadd.f32 %v5759_v15, %v8591_v38 }
 0x298   : > { %v3877_v1 = vpop.f32.mrf.mxu1 }
 0x299   : > { %v4474_v4 = vpop.permute.xlu1 %4473  ;;  %v3878_v12 = vadd.f32 %v8591_v38, %v3877_v1  ;;  %v4006_v15 = vmul.f32 %v8516_v18, %v3886_v24  ;;  %v3499_v18 = vadd.f32 %v3483_v20, %v8426_v63 }
 0x29a   : > { %v5760_v53 = vpop.f32.mrf.mxu1 }
 0x29b   : > { %v3889_v1 = vadd.f32 %v5760_v53, %v8591_v38  ;;  %v4004_v28 = vmul.f32 %v8504_v54, %v3878_v12  ;;  %v8623_v52 = vpop.permute.xlu0 %4485  ;;  %v4022_v54 = vadd.f32 %v4006_v15, %v8512_v58 }
 0x29c   : > { %v3880_v5 = vpop.f32.mrf.mxu1  ;;  %8901 = vst [vmem:[#allocation20_spill] sm:$0xff] %v8623_v52 }
 0x29d   : > { %v8602_v17 = vpop.permute.xlu1 %4481  ;;  %v3881_v22 = vadd.f32 %v8591_v38, %v3880_v5  ;;  %v4007_v12 = vmul.f32 %v8524_v59, %v3889_v1  ;;  %v3373_v59 = vadd.f32 %v8491_v37, %v8529_v33  ;;  %v3386_v33 = vadd.f32 %v8491_v37, %v8534_v23 }
 0x29e   : > { %v3397_v23 = vadd.f32 %v8539_v29, %v8491_v37 }
 0x29f   : > { %v5763_v45 = vpop.f32.mrf.mxu1 }
 0x2a1   : > { %v3893_v8 = vpop.f32.mrf.mxu1 }
 0x2a2   : > { %v3894_v63 = vadd.f32 %v8591_v38, %v3893_v8 }
 0x2a3   : > { %v5764_v56 = vpop.f32.mrf.mxu1 }
 0x2a5   : > { %v8574_v60 = vpop.f32.mrf.mxu1 }
 0x2a6   : > { %v3897_v8 = vadd.f32 %v8591_v38, %v8574_v60 }
 0x2a7   : > { %v8578_v9 = vpop.f32.mrf.mxu1 }
 0x2a9   : > { %v8582_v55 = vpop.f32.mrf.mxu1 }
 0x2ab   : > { %v8584_v51 = vpop.f32.mrf.mxu1 }
 0x2ad   : > { %v8586_v46 = vpop.f32.mrf.mxu1 }
 0x2b0   : > { %v8593_v43 = vpop.f32.mrf.mxu1 }
 0x2b1   : > { %8897 = vst [vmem:[#allocation27_spill] sm:$0xff] %v8593_v43  ;;  %v3480_v43 = vmul.f32 %v8404_v44, %v3354_v7  ;;  %v3381_v44 = vadd.f32 %v8522_v35, %v8491_v37  ;;  %v4490_v35 = vpop.permute.xlu1 %4489 }
 0x2b2   : > { %v8597_v36 = vpop.f32.mrf.mxu1 }
 0x2b3   : > { %8898 = vst [vmem:[#allocation31_spill] sm:$0xff] %v8597_v36  ;;  %v3496_v24 = vadd.f32 %v3480_v43, %v8419_v10 }
 0x2b4   : > { %v8604_v39 = vpop.f32.mrf.mxu1 }
 0x2b5   : > { %8899 = vst [vmem:[#allocation29_spill] sm:$0xff] %v8604_v39  ;;  %v3481_v39 = vmul.f32 %v8349_v47, %v3357_v14  ;;  %v3484_v47 = vmul.f32 %v8387_v50, %v3370_v6  ;;  %v3902_v14 = vadd.f32 %v5763_v45, %v8591_v38  ;;  %v4020_v10 = vadd.f32 %v4004_v28, %v3496_v24 }
 0x2b6   : > { %v8609_v49 = vpop.f32.mrf.mxu1  ;;  %v4005_v50 = vmul.f32 %v8531_v3, %v3881_v22 }
 0x2b7   : > { %8900 = vst [vmem:[#allocation22_spill] sm:$0xff] %v8609_v49  ;;  %v3497_v52 = vadd.f32 %v3481_v39, %v8433_v16  ;;  %v3500_v58 = vadd.f32 %v3484_v47, %v8445_v0  ;;  %v3905_v16 = vadd.f32 %v5764_v56, %v8591_v38  ;;  %v8656_v56 = vpop.permute.xlu1 %4497  ;;  %v3488_v47 = vmul.f32 %v8430_v2, %v3386_v33 }
 0x2b8   : > { %v5823_v7 = vpop.f32.mrf.mxu1 }
 0x2b9   : > { %v4410_v49 = vadd.f32 %v5823_v7, %v8615_v40  ;;  %v3487_v7 = vmul.f32 %v8461_v34, %v3381_v44  ;;  %v4494_v34 = vpop.permute.xlu0 %4493  ;;  %v4021_v1 = vadd.f32 %v4005_v50, %v3497_v52  ;;  %v4011_v60 = vmul.f32 %v8547_v57, %v3905_v16 }
 0x2ba   : > { %v4401_v53 = vpop.f32.mrf.mxu1  ;;  %v3918_v52 = vadd.f32 %v8578_v9, %v8591_v38  ;;  %v3910_v9 = vadd.f32 %v8591_v38, %v8582_v55  ;;  %v3913_v50 = vadd.f32 %v8591_v38, %v8586_v46 }
 0x2bb   : > { %v4530_v36 = vmul.f32 %v4474_v4, %v4410_v49  ;;  %v4402_v5 = vadd.f32 %v8615_v40, %v4401_v53  ;;  %v4010_v49 = vmul.f32 %v8552_v27, %v3902_v14  ;;  %v4023_v4 = vadd.f32 %v4007_v12, %v3499_v18 }
 0x2bc   : > { %v5824_v43 = vpop.f32.mrf.mxu1  ;;  %v3503_v0 = vadd.f32 %v3487_v7, %v8452_v30  ;;  %v4008_v27 = vmul.f32 %v8543_v42, %v3894_v63  ;;  %v3485_v30 = vmul.f32 %v8442_v31, %v3373_v59  ;;  %v3389_v31 = vadd.f32 %v8491_v37, %v8545_v62 }
 0x2bd   : > { %v4546_v45 = vadd.f32 %v4530_v36, %v4022_v54  ;;  %v4528_v20 = vmul.f32 %v4466_v11, %v4402_v5  ;;  %v4413_v6 = vadd.f32 %v5824_v43, %v8615_v40  ;;  %v4026_v42 = vadd.f32 %v4010_v49, %v8527_v41  ;;  %v8674_v14 = vpop.permute.xlu0 %4501  ;;  %v4506_v5 = vpop.permute.xlu1 %4505  ;;  %v8904_v49 = vld [vmem:[#allocation6_spill] sm:$0xff] }
 0x2be   : > { %v4404_v39 = vpop.f32.mrf.mxu1  ;;  %v4024_v29 = vadd.f32 %v4008_v27, %v3500_v58  ;;  %v4009_v41 = vmul.f32 %v8536_v13, %v3897_v8  ;;  %v3501_v2 = vadd.f32 %v3485_v30, %v8457_v21  ;;  %v3491_v62 = vmul.f32 %v8498_v26, %v3397_v23  ;;  %v8912_v23 = vld [vmem:[#allocation31_spill] sm:$0xff] }
 0x2bf   : > { %4562 = vst [vmem:[%s8646_s29 + $0x10] sm:$0xff] %v4546_v45  ;;  %v4544_v3 = vadd.f32 %v4528_v20, %v4020_v10  ;;  %v4531_v36 = vmul.f32 %v4478_v32, %v4413_v6  ;;  %v4405_v11 = vadd.f32 %v8615_v40, %v4404_v39  ;;  %v4027_v12 = vadd.f32 %v4011_v60, %v3503_v0 }
 0x2c0   : > { %v5827_v15 = vpop.f32.mrf.mxu1  ;;  %v3921_v13 = vadd.f32 %v8584_v51, %v8591_v38  ;;  %v4014_v10 = vmul.f32 %v8566_v19, %v3918_v52  ;;  %v3504_v43 = vadd.f32 %v3488_v47, %v8469_v48  ;;  %v3489_v21 = vmul.f32 %v8478_v61, %v3389_v31  ;;  %v8902_v51 = vld [vmem:[#allocation25_spill] sm:$0xff]  ;;  %v8903_v19 = vld [vmem:[#allocation20_spill] sm:$0xff]  ;;  %v8906_v61 = vld [vmem:[#allocation7_spill] sm:$0xff] }
 0x2c1   : > { %4560 = vst [vmem:[%s8646_s29] sm:$0xff] %v4544_v3  ;;  %v4547_v44 = vadd.f32 %v4531_v36, %v4023_v4  ;;  %v4529_v32 = vmul.f32 %v8580_v25, %v4405_v11  ;;  %v4426_v28 = vadd.f32 %v5827_v15, %v8615_v40  ;;  %v4025_v26 = vadd.f32 %v4009_v41, %v3501_v2  ;;  %v8907_v4 = vld [vmem:[#allocation27_spill] sm:$0xff]  ;;  %v4510_v3 = vpop.permute.xlu0 %4509  ;;  %v8908_v11 = vld [vmem:[#allocation12_spill] sm:$0xff]  ;;  %v4514_v60 = vpop.permute.xlu1 %4513 }
 0x2c2   : > { %v4417_v22 = vpop.f32.mrf.mxu1  ;;  %v4012_v20 = vmul.f32 %v8902_v51, %v3910_v9  ;;  %v3507_v16 = vadd.f32 %v3491_v62, %v8904_v49  ;;  %v4015_v39 = vmul.f32 %v8906_v61, %v3921_v13  ;;  %v3934_v46 = vadd.f32 %v8907_v4, %v8591_v38  ;;  %v8909_v15 = vld [vmem:[#allocation36_spill] sm:$0xff]  ;;  %v8915_v9 = vld [vmem:[#allocation18_spill] sm:$0xff]  ;;  %v8917_v13 = vld [vmem:[#allocation19_spill] sm:$0xff] }
 0x2c3   : > { %4563 = vst [vmem:[%s8646_s29 + $0x18] sm:$0xff] %v4547_v44  ;;  %v4545_v24 = vadd.f32 %v4529_v32, %v4021_v1  ;;  %v4534_v18 = vmul.f32 %v4490_v35, %v4426_v28  ;;  %v4418_v25 = vadd.f32 %v8615_v40, %v4417_v22  ;;  %v4030_v0 = vadd.f32 %v4014_v10, %v8908_v11  ;;  %v8910_v44 = vld [vmem:[#allocation10_spill] sm:$0xff]  ;;  %v8911_v28 = vld [vmem:[#allocation8_spill] sm:$0xff]  ;;  %v8918_v10 = vld [vmem:[#allocation17_spill] sm:$0xff] }
 0x2c4   : > { %v5828_v57 = vpop.f32.mrf.mxu1  ;;  %v3505_v1 = vadd.f32 %v3489_v21, %v8909_v15  ;;  %v3413_v32 = vadd.f32 %v8910_v44, %v8491_v37  ;;  %v4013_v30 = vmul.f32 %v8911_v28, %v3913_v50  ;;  %v4028_v52 = vadd.f32 %v4012_v20, %v3504_v43  ;;  %v8913_v47 = vld [vmem:[#allocation16_spill] sm:$0xff]  ;;  %v8921_v20 = vld [vmem:[#allocation5_spill] sm:$0xff] }
 0x2c5   : > { %4561 = vst [vmem:[%s8646_s29 + $0x8] sm:$0xff] %v4545_v24  ;;  %v4550_v53 = vadd.f32 %v4534_v18, %v4026_v42  ;;  %v4532_v35 = vmul.f32 %v8602_v17, %v4418_v25  ;;  %v4429_v54 = vadd.f32 %v5828_v57, %v8615_v40  ;;  %v3926_v42 = vadd.f32 %v8591_v38, %v8912_v23 }
 0x2c6   : > { %v4420_v7 = vpop.f32.mrf.mxu1  ;;  %v4031_v57 = vadd.f32 %v4015_v39, %v3507_v16  ;;  %v8923_v16 = vld [vmem:[#allocation15_spill] sm:$0xff] }
 0x2c7   : > { %4566 = vst [vmem:[%s8646_s29 + $0x30] sm:$0xff] %v4550_v53  ;;  %v4548_v55 = vadd.f32 %v4532_v35, %v4024_v29  ;;  %v4535_v63 = vmul.f32 %v4494_v34, %v4429_v54  ;;  %v4421_v17 = vadd.f32 %v8615_v40, %v4420_v7  ;;  %v8905_v34 = vld [vmem:[#allocation14_spill] sm:$0xff]  ;;  %v8914_v29 = vld [vmem:[#allocation13_spill] sm:$0xff]  ;;  %v4018_v53 = vmul.f32 %v8915_v9, %v3934_v46 }
 0x2c8   : > { %v5831_v45 = vpop.f32.mrf.mxu1  ;;  %v3402_v48 = vadd.f32 %v8491_v37, %v8905_v34  ;;  %v3405_v41 = vadd.f32 %v8491_v37, %v8914_v29  ;;  %v8916_v54 = vld [vmem:[#allocation29_spill] sm:$0xff]  ;;  %v4029_v7 = vadd.f32 %v4013_v30, %v3505_v1 }
 0x2c9   : > { %4564 = vst [vmem:[%s8646_s29 + $0x20] sm:$0xff] %v4548_v55  ;;  %v4551_v6 = vadd.f32 %v4535_v63, %v4027_v12  ;;  %v4533_v58 = vmul.f32 %v8903_v19, %v4421_v17  ;;  %v4442_v59 = vadd.f32 %v5831_v45, %v8615_v40  ;;  %v3937_v2 = vadd.f32 %v8916_v54, %v8591_v38  ;;  %v4518_v63 = vpop.permute.xlu0 %4517  ;;  %v8919_v17 = vld [vmem:[#allocation22_spill] sm:$0xff]  ;;  %v8920_v45 = vld [vmem:[#allocation11_spill] sm:$0xff] }
 0x2ca   : > { %v4433_v36 = vpop.f32.mrf.mxu1  ;;  %v3492_v31 = vmul.f32 %v8913_v47, %v3402_v48  ;;  %v4016_v55 = vmul.f32 %v8918_v10, %v3926_v42  ;;  %v3929_v43 = vadd.f32 %v8591_v38, %v8919_v17  ;;  %v8922_v19 = vld [vmem:[#allocation39_spill] sm:$0xff] }
 0x2cb   : > { %4567 = vst [vmem:[%s8646_s29 + $0x38] sm:$0xff] %v4551_v6  ;;  %v4549_v33 = vadd.f32 %v4533_v58, %v4025_v26  ;;  %v4538_v27 = vmul.f32 %v4506_v5, %v4442_v59  ;;  %v4434_v8 = vadd.f32 %v8615_v40, %v4433_v36  ;;  %v3495_v5 = vmul.f32 %v8917_v13, %v3413_v32  ;;  %v4522_v59 = vpop.permute.xlu1 %4521 }
 0x2cc   : > { %v5832_v22 = vpop.f32.mrf.mxu1  ;;  %v3508_v51 = vadd.f32 %v3492_v31, %v8920_v45  ;;  %v3493_v6 = vmul.f32 %v8921_v20, %v3405_v41  ;;  %v4034_v58 = vadd.f32 %v4018_v53, %v8922_v19  ;;  %v4019_v34 = vmul.f32 %v8923_v16, %v3937_v2 }
 0x2cd   : > { %4565 = vst [vmem:[%s8646_s29 + $0x28] sm:$0xff] %v4549_v33  ;;  %v4554_v24 = vadd.f32 %v4538_v27, %v4030_v0  ;;  %v4536_v18 = vmul.f32 %v8656_v56, %v4434_v8  ;;  %v4445_v25 = vadd.f32 %v5832_v22, %v8615_v40  ;;  %v8926_v27 = vld [vmem:[#allocation21_spill] sm:$0xff]  ;;  %v4526_v15 = vpop.permute.xlu0 %4525 }
 0x2ce   : > { %v4436_v35 = vpop.f32.mrf.mxu1  ;;  %v4032_v4 = vadd.f32 %v4016_v55, %v3508_v51  ;;  %v3509_v8 = vadd.f32 %v3493_v6, %v8926_v27 }
 0x2cf   : > { %4570 = vst [vmem:[%s8646_s29 + $0x50] sm:$0xff] %v4554_v24  ;;  %v4552_v62 = vadd.f32 %v4536_v18, %v4028_v52  ;;  %v4539_v12 = vmul.f32 %v4510_v3, %v4445_v25  ;;  %v4437_v56 = vadd.f32 %v8615_v40, %v4436_v35  ;;  %v8925_v3 = vld [vmem:[#allocation23_spill] sm:$0xff] }
 0x2d0   : > { %v5835_v37 = vpop.f32.mrf.mxu1  ;;  %v4017_v36 = vmul.f32 %v8925_v3, %v3929_v43 }
 0x2d1   : > { %4568 = vst [vmem:[%s8646_s29 + $0x40] sm:$0xff] %v4552_v62  ;;  %v4555_v21 = vadd.f32 %v4539_v12, %v4031_v57  ;;  %v4537_v26 = vmul.f32 %v8674_v14, %v4437_v56  ;;  %v4458_v50 = vadd.f32 %v5835_v37, %v8615_v40  ;;  %v8924_v14 = vld [vmem:[#allocation9_spill] sm:$0xff] }
 0x2d2   : > { %v4449_v49 = vpop.f32.mrf.mxu1  ;;  %v3511_v39 = vadd.f32 %v3495_v5, %v8924_v14  ;;  %v4033_v23 = vadd.f32 %v4017_v36, %v3509_v8 }
 0x2d3   : > { %4571 = vst [vmem:[%s8646_s29 + $0x58] sm:$0xff] %v4555_v21  ;;  %v4553_v38 = vadd.f32 %v4537_v26, %v4029_v7  ;;  %v4542_v48 = vmul.f32 %v4522_v59, %v4458_v50  ;;  %v4450_v61 = vadd.f32 %v8615_v40, %v4449_v49 }
 0x2d4   : > { %v5836_v46 = vpop.f32.mrf.mxu1  ;;  %v4035_v44 = vadd.f32 %v4019_v34, %v3511_v39 }
 0x2d5   : > { %4569 = vst [vmem:[%s8646_s29 + $0x48] sm:$0xff] %v4553_v38  ;;  %v4558_v11 = vadd.f32 %v4542_v48, %v4034_v58  ;;  %v4540_v0 = vmul.f32 %v4514_v60, %v4450_v61  ;;  %v4461_v33 = vadd.f32 %v5836_v46, %v8615_v40 }
 0x2d6   : > { %v4452_v1 = vpop.f32.mrf.mxu1 }
 0x2d7   : > { %4574 = vst [vmem:[%s8646_s29 + $0x70] sm:$0xff] %v4558_v11  ;;  %v4556_v32 = vadd.f32 %v4540_v0, %v4032_v4  ;;  %v4543_v28 = vmul.f32 %v4526_v15, %v4461_v33  ;;  %v4453_v30 = vadd.f32 %v8615_v40, %v4452_v1 }
 0x2d9   : > { %4572 = vst [vmem:[%s8646_s29 + $0x60] sm:$0xff] %v4556_v32  ;;  %v4559_v42 = vadd.f32 %v4543_v28, %v4035_v44  ;;  %v4541_v60 = vmul.f32 %v4518_v63, %v4453_v30 }
 0x2db   : > { %4575 = vst [vmem:[%s8646_s29 + $0x78] sm:$0xff] %v4559_v42  ;;  %v4557_v22 = vadd.f32 %v4541_v60, %v4033_v23 }
 0x2dd   : > { %4573 = vst [vmem:[%s8646_s29 + $0x68] sm:$0xff] %v4557_v22 }
 0x2de   : > { %6344 = shalt.err (!%p6341_p3)
}
 0x2df   : > { %s6345_s16 = scalar_lea.hbm %s8748_s28, 2048  ;;  %s6349_s20 = scalar_lea.hbm %s8802_s6, 4096 }
 0x2e0   : > { %p6346_p4 = scmp.ne.s32.totalorder %s8748_s28, %s6345_s16  ;;  %p6350_p9 = scmp.lt.s32.totalorder %s8748_s28, %s8802_s6 }
 0x2e1   : > { %p6351_p10 = scmp.lt.s32.totalorder %s6349_s20, %s6345_s16 }
 0x2e2   : > { %p6347_p7 = pnand %p6346_p4, %p6477_p5 }
 0x2e3   : > { %p6352_p11 = por %p6351_p10, %p6350_p9 }
 0x2e4   : > { %p6348_p8 = pneg %p6347_p7 }
 0x2e6   : > { %p6353_p12 = pnand %p6352_p11, %p6348_p8 }
 0x2e8   : > { %6356 = shalt.err (!%p6353_p12)
}
 0x2e9   : > { %s6402_s9 = smov 128   ;;  %s6403_s19 = smov 8  }
 0x2ea   : > { %5837 = dma.vmem_to_hbm [thread:$0]  (%p6477_p5), %s8750_s11, 2048, %s8748_s28, %s8756_s25, %s6402_s9, %s6402_s9, %s6403_s19  }
 0x2eb PF: > { %p5843_p13 = scmp.ge.s32.totalorder %s6391_s24, 2  ;;  %s4605_s10 = sand.u32 1, %s6379_s21  }
 0x2ec   : > { %s4606_s12 = scalar_lea.sflag [#allocation3], %s4605_s10 }
 0x2ed   : > { %p5840_p0 = pnand %p5843_p13, %p6481_p6 }
 0x2ef   : > { %p5841_p1 = pneg %p5840_p0 }
 0x2f1   : > { %6374 = dma.done.wait (%p5841_p1), %s4606_s12, 2048  }
 0x2f2   : > { %6376 = vsyncadd (%p5841_p1), %s4606_s12, 4294965248  ;;  %p16_p2 = scmp.ge.s32.totalorder %s6464_s27, 4   ;;  %s8927_s21 = smov %s6383_s22 }
 0x2f3   : > { %s8928_s22 = smov %s6387_s23  ;;  %s8929_s23 = smov %s6475_s30 }
 0x2f4   : > { %s8930_s24 = smov %s6464_s27  ;;  %18 = sbr.rel (!%p16_p2) target bundleno = 3 (0x3), region = 110 }
 0x2f9   :  { %4611 = vsyncpa [#allocation3], 1 }
 0x2fa   :  { %4613 = vsyncpa [#allocation3 + $0x1], 1 }

</bundles_post_ra>
